<compile_context>
chip_gen: v7x
topology: tpu7x:2x2x1
jax: 0.10.0
libtpu: 0.0.40
codegen_flags: <defaults>
</compile_context>

<pallas_src>
import functools
import math

import jax
import jax.numpy as jnp
from jax import lax
from jax.experimental import pallas as pl
from jax.experimental.pallas import tpu as pltpu


def _round_up(x, m):
    return ((x + m - 1) // m) * m


def _fused_kernel(x_ref, wf_ref, bf_ref, wi_ref, bi_ref,
                  wih_ref, whh_ref, bl_ref, wo_ref, bo_ref,
                  out_ref,
                  h_scr, c_scr, gates_scr, hseq_scr,
                  *, time_chunk, batch_p, hidden_p, unroll, gate_split):
    Tc, Bp, Hp = time_chunk, batch_p, hidden_p

    @pl.when(pl.program_id(0) == 0)
    def _():
        h_scr[...] = jnp.zeros_like(h_scr)
        c_scr[...] = jnp.zeros_like(c_scr)

    # ---- batched, time-invariant part: big MXU passes (M = Tc*Bp) ----------
    mm_dt = wf_ref.dtype                                         # f32 or bf16
    x = x_ref[...]                                               # (Tc*Bp, Lp)
    x0 = jnp.maximum(
        jnp.dot(x.astype(mm_dt), wf_ref[...],
                preferred_element_type=jnp.float32) + bf_ref[...], 0.0)
    x1 = jnp.maximum(
        jnp.dot(x0.astype(mm_dt), wi_ref[...],
                preferred_element_type=jnp.float32) + bi_ref[...], 0.0)
    # Input-gate projection with (b_ih + b_hh) folded in, hoisted out of the
    # recurrence and stored once per chunk.
    gates_scr[...] = (
        jnp.dot(x1.astype(mm_dt), wih_ref[...],
                preferred_element_type=jnp.float32) + bl_ref[...])

    whh = whh_ref[...]                    # (Hp, 4*Hp); recurrence stays f32

    # ---- serial recurrence: only h @ W_hh + gate math per time step --------
    def step(s, carry):
        h, c = carry
        row = pl.multiple_of(s * Bp, Bp)
        if gate_split:
            # Large-H regime: per-gate slabs keep only (Bp, Hp) live at once.
            acts = []
            for k in range(4):
                gk = (gates_scr[pl.ds(row, Bp), pl.ds(k * Hp, Hp)]
                      + jnp.dot(h, whh[:, k * Hp:(k + 1) * Hp],
                                preferred_element_type=jnp.float32))
                acts.append(jnp.tanh(gk) if k == 2 else jax.nn.sigmoid(gk))
            i_g, f_g, g_g, o_g = acts
        else:
            gates = (gates_scr[pl.ds(row, Bp), :]
                     + jnp.dot(h, whh, preferred_element_type=jnp.float32))
            # cuDNN / PyTorch gate order i, f, g, o; slices are 128-lane aligned
            i_g = jax.nn.sigmoid(gates[:, 0 * Hp:1 * Hp])
            f_g = jax.nn.sigmoid(gates[:, 1 * Hp:2 * Hp])
            g_g = jnp.tanh(gates[:, 2 * Hp:3 * Hp])
            o_g = jax.nn.sigmoid(gates[:, 3 * Hp:4 * Hp])
        c_new = f_g * c + i_g * g_g
        h_new = o_g * jnp.tanh(c_new)
        hseq_scr[pl.ds(row, Bp), :] = h_new
        return (h_new, c_new)

    h_last, c_last = lax.fori_loop(
        0, Tc, step, (h_scr[...], c_scr[...]), unroll=unroll)
    h_scr[...] = h_last
    c_scr[...] = c_last

    # ---- batched output projection; lane-dense (NYp multiple of 128) store -
    y = (jnp.dot(hseq_scr[...].astype(wo_ref.dtype), wo_ref[...],
                 preferred_element_type=jnp.float32) + bo_ref[...])
    out_ref[...] = y.astype(out_ref.dtype)


def linear_cudnn_lstm_forward(x, params, *, time_chunk=None,
                              matmul_dtype=jnp.float32,
                              vmem_budget_bytes=40 * 2**20):
    """x: (T, B, linear_size) float32. Returns (T, B, ny)."""
    T, B, L = x.shape
    wf, bf = params["w_former"], params["b_former"]     # (NX, L), (NX,)
    wi, bi = params["w_in"], params["b_in"]             # (H, NX), (H,)
    w_ih, w_hh = params["w_ih"], params["w_hh"]         # (4H, H), (4H, H)
    b_lstm = params["b_ih"] + params["b_hh"]            # (4H,)
    wo, bo = params["w_out"], params["b_out"]           # (NY, H), (NY,)

    NX = wf.shape[0]
    H = wi.shape[0]
    NY = wo.shape[0]

    Bp = _round_up(B, 8)          # sublane-aligned batch
    NXp = _round_up(NX, 128)      # lane-aligned intermediate widths
    Hp = _round_up(H, 128)
    NYp = _round_up(NY, 128)      # lane-dense output store
    # Lane-dense K only pays when L is sizeable; padding tiny L would inflate
    # the x DMA for no gain.
    Lp = _round_up(L, 128) if L >= 128 else L

    f32 = jnp.float32
    w_dt = jnp.dtype(matmul_dtype)

    # Pre-transposed (in, out), zero-padded weights: no in-kernel .T, and
    # padding is inert (padded hidden/feature dims stay exactly zero).
    wf_p = jnp.zeros((Lp, NXp), w_dt).at[:L, :NX].set(wf.T.astype(w_dt))
    bf_p = jnp.zeros((1, NXp), f32).at[0, :NX].set(bf.astype(f32))
    wi_p = jnp.zeros((NXp, Hp), w_dt).at[:NX, :H].set(wi.T.astype(w_dt))
    bi_p = jnp.zeros((1, Hp), f32).at[0, :H].set(bi.astype(f32))
    wo_p = jnp.zeros((Hp, NYp), w_dt).at[:H, :NY].set(wo.T.astype(w_dt))
    bo_p = jnp.zeros((1, NYp), f32).at[0, :NY].set(bo.astype(f32))

    # LSTM weights: per-gate slabs placed on Hp (128-multiple) boundaries so
    # the in-kernel gate slices are lane-aligned.  W_hh stays f32 (recurrence).
    wih_p = jnp.zeros((Hp, 4 * Hp), w_dt)
    whh_p = jnp.zeros((Hp, 4 * Hp), f32)
    bl_p = jnp.zeros((1, 4 * Hp), f32)
    for k in range(4):
        wih_p = wih_p.at[:H, k * Hp:k * Hp + H].set(
            w_ih[k * H:(k + 1) * H, :].T.astype(w_dt))
        whh_p = whh_p.at[:H, k * Hp:k * Hp + H].set(
            w_hh[k * H:(k + 1) * H, :].T.astype(f32))
        bl_p = bl_p.at[0, k * Hp:k * Hp + H].set(
            b_lstm[k * H:(k + 1) * H].astype(f32))

    consts = (wf_p, bf_p, wi_p, bi_p, wih_p, whh_p, bl_p, wo_p, bo_p)
    w_bytes = sum(int(a.size) * a.dtype.itemsize for a in consts)

    # Per-(time,batch)-row VMEM cost: 2x in/out chunks (double-buffered),
    # gates + hseq scratch, and the x0/x1/y matmul temporaries (all f32).
    per_row = 4 * (2 * Lp + 3 * NYp + 6 * Hp + NXp)
    fixed = w_bytes + 2 * Bp * Hp * 4          # weights + h/c carries

    if time_chunk is None:
        avail = max(vmem_budget_bytes - fixed, per_row * Bp)
        tc_cap = max(1, int(avail // (per_row * Bp)))
        tc_target = -(-512 // Bp)              # rows ~512 fills 256-wide MXU
        time_chunk = max(1, min(tc_target, tc_cap, T))
    Tc = int(time_chunk)
    T_pad = _round_up(T, Tc)
    rows = Tc * Bp

    # Zero-pad time (at the end -> causally inert) and batch; flatten time and
    # batch into a single sublane-dense row dimension.
    x_p = jnp.zeros((T_pad, Bp, Lp), x.dtype).at[:T, :B, :L].set(x)
    x2d = x_p.reshape(T_pad * Bp, Lp)

    gate_split = Hp >= 1024        # per-gate slab recurrence for very large H
    kernel = functools.partial(
        _fused_kernel, time_chunk=Tc, batch_p=Bp, hidden_p=Hp,
        unroll=min(8, Tc), gate_split=gate_split)

    scratch_shapes = [
        pltpu.VMEM((Bp, Hp), jnp.float32),           # h carry
        pltpu.VMEM((Bp, Hp), jnp.float32),           # c carry
        pltpu.VMEM((rows, 4 * Hp), jnp.float32),     # precomputed gate inputs
        pltpu.VMEM((rows, Hp), jnp.float32),         # h sequence for linearOut
    ]

    def _run(single_buffer_weights):
        def const_spec(shape):
            idx = lambda t: (0,) * len(shape)
            if single_buffer_weights:
                # Block index never changes -> double buffering only wastes VMEM.
                return pl.BlockSpec(shape, idx, pipeline_mode=pl.Buffered(1))
            return pl.BlockSpec(shape, idx)

        w_resident = w_bytes if single_buffer_weights else 2 * w_bytes
        total = w_resident + 2 * Bp * Hp * 4 + rows * per_row
        vmem_limit = int(min(max(total * 1.3, 32 * 2**20), 64 * 2**20))

        return pl.pallas_call(
            kernel,
            out_shape=jax.ShapeDtypeStruct((T_pad * Bp, NYp), x.dtype),
            grid_spec=pltpu.PrefetchScalarGridSpec(
                num_scalar_prefetch=0,
                grid=(T_pad // Tc,),
                in_specs=[pl.BlockSpec((rows, Lp), lambda t: (t, 0))]   # x chunk
                         + [const_spec(a.shape) for a in consts],
                out_specs=pl.BlockSpec((rows, NYp), lambda t: (t, 0)),
                scratch_shapes=scratch_shapes,
            ),
            compiler_params=pltpu.CompilerParams(
                dimension_semantics=("arbitrary",),   # time carries h/c
                vmem_limit_bytes=vmem_limit),
        )(x2d, *consts)

    try:
        out2d = _run(True)
    except Exception:  # pragma: no cover - fallback if Buffered(1) unsupported
        out2d = _run(False)

    out = out2d.reshape(T_pad, Bp, NYp)[:T, :B, :NY]
    return out


def init_params(key, linear_size, n_input_features, hidden_size, n_output_features):
    """Deterministic init mimicking the module's shapes (uniform like PyTorch)."""
    ks = jax.random.split(key, 10)

    def u(k, shape, bound):
        return jax.random.uniform(k, shape, jnp.float32, -bound, bound)

    b_former = 1.0 / math.sqrt(linear_size)
    b_in = 1.0 / math.sqrt(n_input_features)
    b_lstm = 1.0 / math.sqrt(hidden_size)
    b_out = 1.0 / math.sqrt(hidden_size)
    return {
        "w_former": u(ks[0], (n_input_features, linear_size), b_former),
        "b_former": u(ks[1], (n_input_features,), b_former),
        "w_in": u(ks[2], (hidden_size, n_input_features), b_in),
        "b_in": u(ks[3], (hidden_size,), b_in),
        "w_ih": u(ks[4], (4 * hidden_size, hidden_size), b_lstm),
        "w_hh": u(ks[5], (4 * hidden_size, hidden_size), b_lstm),
        "b_ih": u(ks[6], (4 * hidden_size,), b_lstm),
        "b_hh": u(ks[7], (4 * hidden_size,), b_lstm),
        "w_out": u(ks[8], (n_output_features, hidden_size), b_out),
        "b_out": u(ks[9], (n_output_features,), b_out),
    }


def reference_forward(x, params):
    """Pure-JAX reference (mirrors the PyTorch eval-mode forward)."""
    H = params["w_in"].shape[0]
    x0 = jax.nn.relu(jnp.einsum("tbl,nl->tbn", x, params["w_former"]) + params["b_former"])
    x1 = jax.nn.relu(jnp.einsum("tbn,hn->tbh", x0, params["w_in"]) + params["b_in"])

    b = params["b_ih"] + params["b_hh"]

    def step(carry, xt):
        h, c = carry
        gates = xt @ params["w_ih"].T + h @ params["w_hh"].T + b
        i = jax.nn.sigmoid(gates[:, 0 * H:1 * H])
        f = jax.nn.sigmoid(gates[:, 1 * H:2 * H])
        g = jnp.tanh(gates[:, 2 * H:3 * H])
        o = jax.nn.sigmoid(gates[:, 3 * H:4 * H])
        c = f * c + i * g
        h = o * jnp.tanh(c)
        return (h, c), h

    B = x.shape[1]
    h0 = jnp.zeros((B, H), jnp.float32)
    c0 = jnp.zeros((B, H), jnp.float32)
    (_, _), hs = jax.lax.scan(step, (h0, c0), x1)
    out = jnp.einsum("tbh,yh->tby", hs, params["w_out"]) + params["b_out"]
    return out


if __name__ == "__main__":
    # Small shapes: seq=8, batch=4, linear_size=6, n_input_features=5,
    # hidden=32, n_output_features=2
    T, B, L, NX, H, NY = 8, 4, 6, 5, 32, 2

    key = jax.random.PRNGKey(0)
    kx, kp = jax.random.split(key)
    x = jax.random.normal(kx, (T, B, L), jnp.float32)
    params = init_params(kp, L, NX, H, NY)

    out = linear_cudnn_lstm_forward(x, params)
    out = jax.block_until_ready(out)

    ref = reference_forward(x, params)
    assert out.shape == (T, B, NY)
    max_err = jnp.max(jnp.abs(out - ref))
    assert jnp.allclose(out, ref, atol=1e-4, rtol=1e-4), f"max abs err {max_err}"

    print("KERNEL_OK")
</pallas_src>

<mosaic_0001>
module attributes {stable_mosaic.version = 11 : i64} {
  func.func @_fused_kernel(%arg0: i32, %arg1: memref<64x6xf32, #tpu.memory_space<vmem>>, %arg2: memref<6x128xf32, #tpu.memory_space<vmem>>, %arg3: memref<1x128xf32, #tpu.memory_space<vmem>>, %arg4: memref<128x128xf32, #tpu.memory_space<vmem>>, %arg5: memref<1x128xf32, #tpu.memory_space<vmem>>, %arg6: memref<128x512xf32, #tpu.memory_space<vmem>>, %arg7: memref<128x512xf32, #tpu.memory_space<vmem>>, %arg8: memref<1x512xf32, #tpu.memory_space<vmem>>, %arg9: memref<128x128xf32, #tpu.memory_space<vmem>>, %arg10: memref<1x128xf32, #tpu.memory_space<vmem>>, %arg11: memref<64x128xf32, #tpu.memory_space<vmem>>, %arg12: memref<8x128xf32, #tpu.memory_space<vmem>>, %arg13: memref<8x128xf32, #tpu.memory_space<vmem>>, %arg14: memref<64x512xf32, #tpu.memory_space<vmem>>, %arg15: memref<64x128xf32, #tpu.memory_space<vmem>>) attributes {dimension_semantics = [#tpu.dimension_semantics<arbitrary>], iteration_bounds = array<i64: 1>, scalar_prefetch = 0 : i64, scratch_operands = 4 : i64, tpu.core_type = #tpu.core_type<tc>, window_params = [{transform_indices = @transform_0, window_bounds = array<i64: 64, 6>}, {pipeline_mode = #tpu.pipeline_mode<synchronous>, transform_indices = @transform_1, window_bounds = array<i64: 6, 128>}, {pipeline_mode = #tpu.pipeline_mode<synchronous>, transform_indices = @transform_2, window_bounds = array<i64: 1, 128>}, {pipeline_mode = #tpu.pipeline_mode<synchronous>, transform_indices = @transform_3, window_bounds = array<i64: 128, 128>}, {pipeline_mode = #tpu.pipeline_mode<synchronous>, transform_indices = @transform_4, window_bounds = array<i64: 1, 128>}, {pipeline_mode = #tpu.pipeline_mode<synchronous>, transform_indices = @transform_5, window_bounds = array<i64: 128, 512>}, {pipeline_mode = #tpu.pipeline_mode<synchronous>, transform_indices = @transform_6, window_bounds = array<i64: 128, 512>}, {pipeline_mode = #tpu.pipeline_mode<synchronous>, transform_indices = @transform_7, window_bounds = array<i64: 1, 512>}, {pipeline_mode = #tpu.pipeline_mode<synchronous>, transform_indices = @transform_8, window_bounds = array<i64: 128, 128>}, {pipeline_mode = #tpu.pipeline_mode<synchronous>, transform_indices = @transform_9, window_bounds = array<i64: 1, 128>}, {transform_indices = @transform_10, window_bounds = array<i64: 64, 128>}]} {
    %c0_i32 = arith.constant 0 : i32
    %0 = arith.cmpi eq, %arg0, %c0_i32 : i32
    %1 = arith.extui %0 : i1 to i32
    %c0_i32_0 = arith.constant 0 : i32
    %2 = arith.cmpi ne, %1, %c0_i32_0 : i32
    scf.if %2 {
      %cst_96 = arith.constant 0.000000e+00 : f32
      %300 = vector.broadcast %cst_96 : f32 to vector<8x128xf32>
      %c0_97 = arith.constant 0 : index
      %c0_98 = arith.constant 0 : index
      %301 = vector.load %arg12[%c0_97, %c0_98] : memref<8x128xf32, #tpu.memory_space<vmem>>, vector<8x128xf32>
      tpu.vector_store %arg12[%c0_97, %c0_98], %300 {strides = array<i32>} : memref<8x128xf32, #tpu.memory_space<vmem>>, vector<8x128xf32>,
      %cst_99 = arith.constant 0.000000e+00 : f32
      %302 = vector.broadcast %cst_99 : f32 to vector<8x128xf32>
      %c0_100 = arith.constant 0 : index
      %c0_101 = arith.constant 0 : index
      %303 = vector.load %arg13[%c0_100, %c0_101] : memref<8x128xf32, #tpu.memory_space<vmem>>, vector<8x128xf32>
      tpu.vector_store %arg13[%c0_100, %c0_101], %302 {strides = array<i32>} : memref<8x128xf32, #tpu.memory_space<vmem>>, vector<8x128xf32>,
    } else {
    }
    %c0 = arith.constant 0 : index
    %c0_1 = arith.constant 0 : index
    %3 = vector.load %arg1[%c0, %c0_1] : memref<64x6xf32, #tpu.memory_space<vmem>>, vector<64x6xf32>
    %c0_2 = arith.constant 0 : index
    %c0_3 = arith.constant 0 : index
    %4 = vector.load %arg2[%c0_2, %c0_3] : memref<6x128xf32, #tpu.memory_space<vmem>>, vector<6x128xf32>
    %cst = arith.constant dense<0.000000e+00> : vector<64x128xf32>
    %5 = tpu.matmul %3, %4, %cst {dimension_numbers = #tpu.dot_dimension_numbers<[1], [0], [0], [1], [0, 0, 1, 1], [], []>} : vector<64x6xf32>, vector<6x128xf32>, vector<64x128xf32> -> vector<64x128xf32>
    %c0_4 = arith.constant 0 : index
    %c0_5 = arith.constant 0 : index
    %6 = vector.load %arg3[%c0_4, %c0_5] : memref<1x128xf32, #tpu.memory_space<vmem>>, vector<1x128xf32>
    %7 = vector.broadcast %6 : vector<1x128xf32> to vector<64x128xf32>
    %8 = arith.addf %5, %7 : vector<64x128xf32>
    %cst_6 = arith.constant 0.000000e+00 : f32
    %9 = vector.broadcast %cst_6 : f32 to vector<64x128xf32>
    %10 = arith.maximumf %8, %9 : vector<64x128xf32>
    %c0_7 = arith.constant 0 : index
    %c0_8 = arith.constant 0 : index
    %11 = vector.load %arg4[%c0_7, %c0_8] : memref<128x128xf32, #tpu.memory_space<vmem>>, vector<128x128xf32>
    %cst_9 = arith.constant dense<0.000000e+00> : vector<64x128xf32>
    %12 = tpu.matmul %10, %11, %cst_9 {dimension_numbers = #tpu.dot_dimension_numbers<[1], [0], [0], [1], [0, 0, 1, 1], [], []>} : vector<64x128xf32>, vector<128x128xf32>, vector<64x128xf32> -> vector<64x128xf32>
    %c0_10 = arith.constant 0 : index
    %c0_11 = arith.constant 0 : index
    %13 = vector.load %arg5[%c0_10, %c0_11] : memref<1x128xf32, #tpu.memory_space<vmem>>, vector<1x128xf32>
    %14 = vector.broadcast %13 : vector<1x128xf32> to vector<64x128xf32>
    %15 = arith.addf %12, %14 : vector<64x128xf32>
    %cst_12 = arith.constant 0.000000e+00 : f32
    %16 = vector.broadcast %cst_12 : f32 to vector<64x128xf32>
    %17 = arith.maximumf %15, %16 : vector<64x128xf32>
    %c0_13 = arith.constant 0 : index
    %c0_14 = arith.constant 0 : index
    %18 = vector.load %arg6[%c0_13, %c0_14] : memref<128x512xf32, #tpu.memory_space<vmem>>, vector<128x512xf32>
    %cst_15 = arith.constant dense<0.000000e+00> : vector<64x512xf32>
    %19 = tpu.matmul %17, %18, %cst_15 {dimension_numbers = #tpu.dot_dimension_numbers<[1], [0], [0], [1], [0, 0, 1, 1], [], []>} : vector<64x128xf32>, vector<128x512xf32>, vector<64x512xf32> -> vector<64x512xf32>
    %c0_16 = arith.constant 0 : index
    %c0_17 = arith.constant 0 : index
    %20 = vector.load %arg8[%c0_16, %c0_17] : memref<1x512xf32, #tpu.memory_space<vmem>>, vector<1x512xf32>
    %21 = vector.broadcast %20 : vector<1x512xf32> to vector<64x512xf32>
    %22 = arith.addf %19, %21 : vector<64x512xf32>
    %c0_18 = arith.constant 0 : index
    %c0_19 = arith.constant 0 : index
    %23 = vector.load %arg14[%c0_18, %c0_19] : memref<64x512xf32, #tpu.memory_space<vmem>>, vector<64x512xf32>
    tpu.vector_store %arg14[%c0_18, %c0_19], %22 {strides = array<i32>} : memref<64x512xf32, #tpu.memory_space<vmem>>, vector<64x512xf32>,
    %c0_20 = arith.constant 0 : index
    %c0_21 = arith.constant 0 : index
    %24 = vector.load %arg7[%c0_20, %c0_21] : memref<128x512xf32, #tpu.memory_space<vmem>>, vector<128x512xf32>
    %c0_22 = arith.constant 0 : index
    %c0_23 = arith.constant 0 : index
    %25 = vector.load %arg12[%c0_22, %c0_23] : memref<8x128xf32, #tpu.memory_space<vmem>>, vector<8x128xf32>
    %c0_24 = arith.constant 0 : index
    %c0_25 = arith.constant 0 : index
    %26 = vector.load %arg13[%c0_24, %c0_25] : memref<8x128xf32, #tpu.memory_space<vmem>>, vector<8x128xf32>
    %c0_i32_26 = arith.constant 0 : i32
    %c8_i32 = arith.constant 8 : i32
    %27 = arith.muli %c0_i32_26, %c8_i32 : i32
    %28 = tpu.assume_multiple %27, 8 : i32
    %29 = arith.index_cast %28 : i32 to index
    %c0_27 = arith.constant 0 : index
    %30 = vector.load %arg14[%29, %c0_27] : memref<64x512xf32, #tpu.memory_space<vmem>>, vector<8x512xf32>
    %cst_28 = arith.constant dense<0.000000e+00> : vector<8x512xf32>
    %31 = tpu.matmul %25, %24, %cst_28 {dimension_numbers = #tpu.dot_dimension_numbers<[1], [0], [0], [1], [0, 0, 1, 1], [], []>} : vector<8x128xf32>, vector<128x512xf32>, vector<8x512xf32> -> vector<8x512xf32>
    %32 = arith.addf %30, %31 : vector<8x512xf32>
    %33 = vector.extract_strided_slice %32 {offsets = [0, 0], sizes = [8, 128], strides = [1, 1]} : vector<8x512xf32> to vector<8x128xf32>
    %34 = arith.negf %33 : vector<8x128xf32>
    %35 = math.exp %34 : vector<8x128xf32>
    %cst_29 = arith.constant 1.000000e+00 : f32
    %36 = vector.broadcast %cst_29 : f32 to vector<8x128xf32>
    %37 = arith.addf %36, %35 : vector<8x128xf32>
    %38 = arith.divf %36, %37 : vector<8x128xf32>
    %39 = vector.extract_strided_slice %32 {offsets = [0, 128], sizes = [8, 128], strides = [1, 1]} : vector<8x512xf32> to vector<8x128xf32>
    %40 = arith.negf %39 : vector<8x128xf32>
    %41 = math.exp %40 : vector<8x128xf32>
    %cst_30 = arith.constant 1.000000e+00 : f32
    %42 = vector.broadcast %cst_30 : f32 to vector<8x128xf32>
    %43 = arith.addf %42, %41 : vector<8x128xf32>
    %44 = arith.divf %42, %43 : vector<8x128xf32>
    %45 = vector.extract_strided_slice %32 {offsets = [0, 256], sizes = [8, 128], strides = [1, 1]} : vector<8x512xf32> to vector<8x128xf32>
    %46 = math.tanh %45 : vector<8x128xf32>
    %47 = vector.extract_strided_slice %32 {offsets = [0, 384], sizes = [8, 128], strides = [1, 1]} : vector<8x512xf32> to vector<8x128xf32>
    %48 = arith.negf %47 : vector<8x128xf32>
    %49 = math.exp %48 : vector<8x128xf32>
    %cst_31 = arith.constant 1.000000e+00 : f32
    %50 = vector.broadcast %cst_31 : f32 to vector<8x128xf32>
    %51 = arith.addf %50, %49 : vector<8x128xf32>
    %52 = arith.divf %50, %51 : vector<8x128xf32>
    %53 = arith.mulf %44, %26 : vector<8x128xf32>
    %54 = arith.mulf %38, %46 : vector<8x128xf32>
    %55 = arith.addf %53, %54 : vector<8x128xf32>
    %56 = math.tanh %55 : vector<8x128xf32>
    %57 = arith.mulf %52, %56 : vector<8x128xf32>
    %58 = arith.index_cast %28 : i32 to index
    %c0_32 = arith.constant 0 : index
    %59 = vector.load %arg15[%58, %c0_32] : memref<64x128xf32, #tpu.memory_space<vmem>>, vector<8x128xf32>
    tpu.vector_store %arg15[%58, %c0_32], %57 {strides = array<i32>} : memref<64x128xf32, #tpu.memory_space<vmem>>, vector<8x128xf32>,
    %c1_i32 = arith.constant 1 : i32
    %c8_i32_33 = arith.constant 8 : i32
    %60 = arith.muli %c1_i32, %c8_i32_33 : i32
    %61 = tpu.assume_multiple %60, 8 : i32
    %62 = arith.index_cast %61 : i32 to index
    %c0_34 = arith.constant 0 : index
    %63 = vector.load %arg14[%62, %c0_34] : memref<64x512xf32, #tpu.memory_space<vmem>>, vector<8x512xf32>
    %cst_35 = arith.constant dense<0.000000e+00> : vector<8x512xf32>
    %64 = tpu.matmul %57, %24, %cst_35 {dimension_numbers = #tpu.dot_dimension_numbers<[1], [0], [0], [1], [0, 0, 1, 1], [], []>} : vector<8x128xf32>, vector<128x512xf32>, vector<8x512xf32> -> vector<8x512xf32>
    %65 = arith.addf %63, %64 : vector<8x512xf32>
    %66 = vector.extract_strided_slice %65 {offsets = [0, 0], sizes = [8, 128], strides = [1, 1]} : vector<8x512xf32> to vector<8x128xf32>
    %67 = arith.negf %66 : vector<8x128xf32>
    %68 = math.exp %67 : vector<8x128xf32>
    %cst_36 = arith.constant 1.000000e+00 : f32
    %69 = vector.broadcast %cst_36 : f32 to vector<8x128xf32>
    %70 = arith.addf %69, %68 : vector<8x128xf32>
    %71 = arith.divf %69, %70 : vector<8x128xf32>
    %72 = vector.extract_strided_slice %65 {offsets = [0, 128], sizes = [8, 128], strides = [1, 1]} : vector<8x512xf32> to vector<8x128xf32>
    %73 = arith.negf %72 : vector<8x128xf32>
    %74 = math.exp %73 : vector<8x128xf32>
    %cst_37 = arith.constant 1.000000e+00 : f32
    %75 = vector.broadcast %cst_37 : f32 to vector<8x128xf32>
    %76 = arith.addf %75, %74 : vector<8x128xf32>
    %77 = arith.divf %75, %76 : vector<8x128xf32>
    %78 = vector.extract_strided_slice %65 {offsets = [0, 256], sizes = [8, 128], strides = [1, 1]} : vector<8x512xf32> to vector<8x128xf32>
    %79 = math.tanh %78 : vector<8x128xf32>
    %80 = vector.extract_strided_slice %65 {offsets = [0, 384], sizes = [8, 128], strides = [1, 1]} : vector<8x512xf32> to vector<8x128xf32>
    %81 = arith.negf %80 : vector<8x128xf32>
    %82 = math.exp %81 : vector<8x128xf32>
    %cst_38 = arith.constant 1.000000e+00 : f32
    %83 = vector.broadcast %cst_38 : f32 to vector<8x128xf32>
    %84 = arith.addf %83, %82 : vector<8x128xf32>
    %85 = arith.divf %83, %84 : vector<8x128xf32>
    %86 = arith.mulf %77, %55 : vector<8x128xf32>
    %87 = arith.mulf %71, %79 : vector<8x128xf32>
    %88 = arith.addf %86, %87 : vector<8x128xf32>
    %89 = math.tanh %88 : vector<8x128xf32>
    %90 = arith.mulf %85, %89 : vector<8x128xf32>
    %91 = arith.index_cast %61 : i32 to index
    %c0_39 = arith.constant 0 : index
    %92 = vector.load %arg15[%91, %c0_39] : memref<64x128xf32, #tpu.memory_space<vmem>>, vector<8x128xf32>
    tpu.vector_store %arg15[%91, %c0_39], %90 {strides = array<i32>} : memref<64x128xf32, #tpu.memory_space<vmem>>, vector<8x128xf32>,
    %c2_i32 = arith.constant 2 : i32
    %c8_i32_40 = arith.constant 8 : i32
    %93 = arith.muli %c2_i32, %c8_i32_40 : i32
    %94 = tpu.assume_multiple %93, 8 : i32
    %95 = arith.index_cast %94 : i32 to index
    %c0_41 = arith.constant 0 : index
    %96 = vector.load %arg14[%95, %c0_41] : memref<64x512xf32, #tpu.memory_space<vmem>>, vector<8x512xf32>
    %cst_42 = arith.constant dense<0.000000e+00> : vector<8x512xf32>
    %97 = tpu.matmul %90, %24, %cst_42 {dimension_numbers = #tpu.dot_dimension_numbers<[1], [0], [0], [1], [0, 0, 1, 1], [], []>} : vector<8x128xf32>, vector<128x512xf32>, vector<8x512xf32> -> vector<8x512xf32>
    %98 = arith.addf %96, %97 : vector<8x512xf32>
    %99 = vector.extract_strided_slice %98 {offsets = [0, 0], sizes = [8, 128], strides = [1, 1]} : vector<8x512xf32> to vector<8x128xf32>
    %100 = arith.negf %99 : vector<8x128xf32>
    %101 = math.exp %100 : vector<8x128xf32>
    %cst_43 = arith.constant 1.000000e+00 : f32
    %102 = vector.broadcast %cst_43 : f32 to vector<8x128xf32>
    %103 = arith.addf %102, %101 : vector<8x128xf32>
    %104 = arith.divf %102, %103 : vector<8x128xf32>
    %105 = vector.extract_strided_slice %98 {offsets = [0, 128], sizes = [8, 128], strides = [1, 1]} : vector<8x512xf32> to vector<8x128xf32>
    %106 = arith.negf %105 : vector<8x128xf32>
    %107 = math.exp %106 : vector<8x128xf32>
    %cst_44 = arith.constant 1.000000e+00 : f32
    %108 = vector.broadcast %cst_44 : f32 to vector<8x128xf32>
    %109 = arith.addf %108, %107 : vector<8x128xf32>
    %110 = arith.divf %108, %109 : vector<8x128xf32>
    %111 = vector.extract_strided_slice %98 {offsets = [0, 256], sizes = [8, 128], strides = [1, 1]} : vector<8x512xf32> to vector<8x128xf32>
    %112 = math.tanh %111 : vector<8x128xf32>
    %113 = vector.extract_strided_slice %98 {offsets = [0, 384], sizes = [8, 128], strides = [1, 1]} : vector<8x512xf32> to vector<8x128xf32>
    %114 = arith.negf %113 : vector<8x128xf32>
    %115 = math.exp %114 : vector<8x128xf32>
    %cst_45 = arith.constant 1.000000e+00 : f32
    %116 = vector.broadcast %cst_45 : f32 to vector<8x128xf32>
    %117 = arith.addf %116, %115 : vector<8x128xf32>
    %118 = arith.divf %116, %117 : vector<8x128xf32>
    %119 = arith.mulf %110, %88 : vector<8x128xf32>
    %120 = arith.mulf %104, %112 : vector<8x128xf32>
    %121 = arith.addf %119, %120 : vector<8x128xf32>
    %122 = math.tanh %121 : vector<8x128xf32>
    %123 = arith.mulf %118, %122 : vector<8x128xf32>
    %124 = arith.index_cast %94 : i32 to index
    %c0_46 = arith.constant 0 : index
    %125 = vector.load %arg15[%124, %c0_46] : memref<64x128xf32, #tpu.memory_space<vmem>>, vector<8x128xf32>
    tpu.vector_store %arg15[%124, %c0_46], %123 {strides = array<i32>} : memref<64x128xf32, #tpu.memory_space<vmem>>, vector<8x128xf32>,
    %c3_i32 = arith.constant 3 : i32
    %c8_i32_47 = arith.constant 8 : i32
    %126 = arith.muli %c3_i32, %c8_i32_47 : i32
    %127 = tpu.assume_multiple %126, 8 : i32
    %128 = arith.index_cast %127 : i32 to index
    %c0_48 = arith.constant 0 : index
    %129 = vector.load %arg14[%128, %c0_48] : memref<64x512xf32, #tpu.memory_space<vmem>>, vector<8x512xf32>
    %cst_49 = arith.constant dense<0.000000e+00> : vector<8x512xf32>
    %130 = tpu.matmul %123, %24, %cst_49 {dimension_numbers = #tpu.dot_dimension_numbers<[1], [0], [0], [1], [0, 0, 1, 1], [], []>} : vector<8x128xf32>, vector<128x512xf32>, vector<8x512xf32> -> vector<8x512xf32>
    %131 = arith.addf %129, %130 : vector<8x512xf32>
    %132 = vector.extract_strided_slice %131 {offsets = [0, 0], sizes = [8, 128], strides = [1, 1]} : vector<8x512xf32> to vector<8x128xf32>
    %133 = arith.negf %132 : vector<8x128xf32>
    %134 = math.exp %133 : vector<8x128xf32>
    %cst_50 = arith.constant 1.000000e+00 : f32
    %135 = vector.broadcast %cst_50 : f32 to vector<8x128xf32>
    %136 = arith.addf %135, %134 : vector<8x128xf32>
    %137 = arith.divf %135, %136 : vector<8x128xf32>
    %138 = vector.extract_strided_slice %131 {offsets = [0, 128], sizes = [8, 128], strides = [1, 1]} : vector<8x512xf32> to vector<8x128xf32>
    %139 = arith.negf %138 : vector<8x128xf32>
    %140 = math.exp %139 : vector<8x128xf32>
    %cst_51 = arith.constant 1.000000e+00 : f32
    %141 = vector.broadcast %cst_51 : f32 to vector<8x128xf32>
    %142 = arith.addf %141, %140 : vector<8x128xf32>
    %143 = arith.divf %141, %142 : vector<8x128xf32>
    %144 = vector.extract_strided_slice %131 {offsets = [0, 256], sizes = [8, 128], strides = [1, 1]} : vector<8x512xf32> to vector<8x128xf32>
    %145 = math.tanh %144 : vector<8x128xf32>
    %146 = vector.extract_strided_slice %131 {offsets = [0, 384], sizes = [8, 128], strides = [1, 1]} : vector<8x512xf32> to vector<8x128xf32>
    %147 = arith.negf %146 : vector<8x128xf32>
    %148 = math.exp %147 : vector<8x128xf32>
    %cst_52 = arith.constant 1.000000e+00 : f32
    %149 = vector.broadcast %cst_52 : f32 to vector<8x128xf32>
    %150 = arith.addf %149, %148 : vector<8x128xf32>
    %151 = arith.divf %149, %150 : vector<8x128xf32>
    %152 = arith.mulf %143, %121 : vector<8x128xf32>
    %153 = arith.mulf %137, %145 : vector<8x128xf32>
    %154 = arith.addf %152, %153 : vector<8x128xf32>
    %155 = math.tanh %154 : vector<8x128xf32>
    %156 = arith.mulf %151, %155 : vector<8x128xf32>
    %157 = arith.index_cast %127 : i32 to index
    %c0_53 = arith.constant 0 : index
    %158 = vector.load %arg15[%157, %c0_53] : memref<64x128xf32, #tpu.memory_space<vmem>>, vector<8x128xf32>
    tpu.vector_store %arg15[%157, %c0_53], %156 {strides = array<i32>} : memref<64x128xf32, #tpu.memory_space<vmem>>, vector<8x128xf32>,
    %c4_i32 = arith.constant 4 : i32
    %c8_i32_54 = arith.constant 8 : i32
    %159 = arith.muli %c4_i32, %c8_i32_54 : i32
    %160 = tpu.assume_multiple %159, 8 : i32
    %161 = arith.index_cast %160 : i32 to index
    %c0_55 = arith.constant 0 : index
    %162 = vector.load %arg14[%161, %c0_55] : memref<64x512xf32, #tpu.memory_space<vmem>>, vector<8x512xf32>
    %cst_56 = arith.constant dense<0.000000e+00> : vector<8x512xf32>
    %163 = tpu.matmul %156, %24, %cst_56 {dimension_numbers = #tpu.dot_dimension_numbers<[1], [0], [0], [1], [0, 0, 1, 1], [], []>} : vector<8x128xf32>, vector<128x512xf32>, vector<8x512xf32> -> vector<8x512xf32>
    %164 = arith.addf %162, %163 : vector<8x512xf32>
    %165 = vector.extract_strided_slice %164 {offsets = [0, 0], sizes = [8, 128], strides = [1, 1]} : vector<8x512xf32> to vector<8x128xf32>
    %166 = arith.negf %165 : vector<8x128xf32>
    %167 = math.exp %166 : vector<8x128xf32>
    %cst_57 = arith.constant 1.000000e+00 : f32
    %168 = vector.broadcast %cst_57 : f32 to vector<8x128xf32>
    %169 = arith.addf %168, %167 : vector<8x128xf32>
    %170 = arith.divf %168, %169 : vector<8x128xf32>
    %171 = vector.extract_strided_slice %164 {offsets = [0, 128], sizes = [8, 128], strides = [1, 1]} : vector<8x512xf32> to vector<8x128xf32>
    %172 = arith.negf %171 : vector<8x128xf32>
    %173 = math.exp %172 : vector<8x128xf32>
    %cst_58 = arith.constant 1.000000e+00 : f32
    %174 = vector.broadcast %cst_58 : f32 to vector<8x128xf32>
    %175 = arith.addf %174, %173 : vector<8x128xf32>
    %176 = arith.divf %174, %175 : vector<8x128xf32>
    %177 = vector.extract_strided_slice %164 {offsets = [0, 256], sizes = [8, 128], strides = [1, 1]} : vector<8x512xf32> to vector<8x128xf32>
    %178 = math.tanh %177 : vector<8x128xf32>
    %179 = vector.extract_strided_slice %164 {offsets = [0, 384], sizes = [8, 128], strides = [1, 1]} : vector<8x512xf32> to vector<8x128xf32>
    %180 = arith.negf %179 : vector<8x128xf32>
    %181 = math.exp %180 : vector<8x128xf32>
    %cst_59 = arith.constant 1.000000e+00 : f32
    %182 = vector.broadcast %cst_59 : f32 to vector<8x128xf32>
    %183 = arith.addf %182, %181 : vector<8x128xf32>
    %184 = arith.divf %182, %183 : vector<8x128xf32>
    %185 = arith.mulf %176, %154 : vector<8x128xf32>
    %186 = arith.mulf %170, %178 : vector<8x128xf32>
    %187 = arith.addf %185, %186 : vector<8x128xf32>
    %188 = math.tanh %187 : vector<8x128xf32>
    %189 = arith.mulf %184, %188 : vector<8x128xf32>
    %190 = arith.index_cast %160 : i32 to index
    %c0_60 = arith.constant 0 : index
    %191 = vector.load %arg15[%190, %c0_60] : memref<64x128xf32, #tpu.memory_space<vmem>>, vector<8x128xf32>
    tpu.vector_store %arg15[%190, %c0_60], %189 {strides = array<i32>} : memref<64x128xf32, #tpu.memory_space<vmem>>, vector<8x128xf32>,
    %c5_i32 = arith.constant 5 : i32
    %c8_i32_61 = arith.constant 8 : i32
    %192 = arith.muli %c5_i32, %c8_i32_61 : i32
    %193 = tpu.assume_multiple %192, 8 : i32
    %194 = arith.index_cast %193 : i32 to index
    %c0_62 = arith.constant 0 : index
    %195 = vector.load %arg14[%194, %c0_62] : memref<64x512xf32, #tpu.memory_space<vmem>>, vector<8x512xf32>
    %cst_63 = arith.constant dense<0.000000e+00> : vector<8x512xf32>
    %196 = tpu.matmul %189, %24, %cst_63 {dimension_numbers = #tpu.dot_dimension_numbers<[1], [0], [0], [1], [0, 0, 1, 1], [], []>} : vector<8x128xf32>, vector<128x512xf32>, vector<8x512xf32> -> vector<8x512xf32>
    %197 = arith.addf %195, %196 : vector<8x512xf32>
    %198 = vector.extract_strided_slice %197 {offsets = [0, 0], sizes = [8, 128], strides = [1, 1]} : vector<8x512xf32> to vector<8x128xf32>
    %199 = arith.negf %198 : vector<8x128xf32>
    %200 = math.exp %199 : vector<8x128xf32>
    %cst_64 = arith.constant 1.000000e+00 : f32
    %201 = vector.broadcast %cst_64 : f32 to vector<8x128xf32>
    %202 = arith.addf %201, %200 : vector<8x128xf32>
    %203 = arith.divf %201, %202 : vector<8x128xf32>
    %204 = vector.extract_strided_slice %197 {offsets = [0, 128], sizes = [8, 128], strides = [1, 1]} : vector<8x512xf32> to vector<8x128xf32>
    %205 = arith.negf %204 : vector<8x128xf32>
    %206 = math.exp %205 : vector<8x128xf32>
    %cst_65 = arith.constant 1.000000e+00 : f32
    %207 = vector.broadcast %cst_65 : f32 to vector<8x128xf32>
    %208 = arith.addf %207, %206 : vector<8x128xf32>
    %209 = arith.divf %207, %208 : vector<8x128xf32>
    %210 = vector.extract_strided_slice %197 {offsets = [0, 256], sizes = [8, 128], strides = [1, 1]} : vector<8x512xf32> to vector<8x128xf32>
    %211 = math.tanh %210 : vector<8x128xf32>
    %212 = vector.extract_strided_slice %197 {offsets = [0, 384], sizes = [8, 128], strides = [1, 1]} : vector<8x512xf32> to vector<8x128xf32>
    %213 = arith.negf %212 : vector<8x128xf32>
    %214 = math.exp %213 : vector<8x128xf32>
    %cst_66 = arith.constant 1.000000e+00 : f32
    %215 = vector.broadcast %cst_66 : f32 to vector<8x128xf32>
    %216 = arith.addf %215, %214 : vector<8x128xf32>
    %217 = arith.divf %215, %216 : vector<8x128xf32>
    %218 = arith.mulf %209, %187 : vector<8x128xf32>
    %219 = arith.mulf %203, %211 : vector<8x128xf32>
    %220 = arith.addf %218, %219 : vector<8x128xf32>
    %221 = math.tanh %220 : vector<8x128xf32>
    %222 = arith.mulf %217, %221 : vector<8x128xf32>
    %223 = arith.index_cast %193 : i32 to index
    %c0_67 = arith.constant 0 : index
    %224 = vector.load %arg15[%223, %c0_67] : memref<64x128xf32, #tpu.memory_space<vmem>>, vector<8x128xf32>
    tpu.vector_store %arg15[%223, %c0_67], %222 {strides = array<i32>} : memref<64x128xf32, #tpu.memory_space<vmem>>, vector<8x128xf32>,
    %c6_i32 = arith.constant 6 : i32
    %c8_i32_68 = arith.constant 8 : i32
    %225 = arith.muli %c6_i32, %c8_i32_68 : i32
    %226 = tpu.assume_multiple %225, 8 : i32
    %227 = arith.index_cast %226 : i32 to index
    %c0_69 = arith.constant 0 : index
    %228 = vector.load %arg14[%227, %c0_69] : memref<64x512xf32, #tpu.memory_space<vmem>>, vector<8x512xf32>
    %cst_70 = arith.constant dense<0.000000e+00> : vector<8x512xf32>
    %229 = tpu.matmul %222, %24, %cst_70 {dimension_numbers = #tpu.dot_dimension_numbers<[1], [0], [0], [1], [0, 0, 1, 1], [], []>} : vector<8x128xf32>, vector<128x512xf32>, vector<8x512xf32> -> vector<8x512xf32>
    %230 = arith.addf %228, %229 : vector<8x512xf32>
    %231 = vector.extract_strided_slice %230 {offsets = [0, 0], sizes = [8, 128], strides = [1, 1]} : vector<8x512xf32> to vector<8x128xf32>
    %232 = arith.negf %231 : vector<8x128xf32>
    %233 = math.exp %232 : vector<8x128xf32>
    %cst_71 = arith.constant 1.000000e+00 : f32
    %234 = vector.broadcast %cst_71 : f32 to vector<8x128xf32>
    %235 = arith.addf %234, %233 : vector<8x128xf32>
    %236 = arith.divf %234, %235 : vector<8x128xf32>
    %237 = vector.extract_strided_slice %230 {offsets = [0, 128], sizes = [8, 128], strides = [1, 1]} : vector<8x512xf32> to vector<8x128xf32>
    %238 = arith.negf %237 : vector<8x128xf32>
    %239 = math.exp %238 : vector<8x128xf32>
    %cst_72 = arith.constant 1.000000e+00 : f32
    %240 = vector.broadcast %cst_72 : f32 to vector<8x128xf32>
    %241 = arith.addf %240, %239 : vector<8x128xf32>
    %242 = arith.divf %240, %241 : vector<8x128xf32>
    %243 = vector.extract_strided_slice %230 {offsets = [0, 256], sizes = [8, 128], strides = [1, 1]} : vector<8x512xf32> to vector<8x128xf32>
    %244 = math.tanh %243 : vector<8x128xf32>
    %245 = vector.extract_strided_slice %230 {offsets = [0, 384], sizes = [8, 128], strides = [1, 1]} : vector<8x512xf32> to vector<8x128xf32>
    %246 = arith.negf %245 : vector<8x128xf32>
    %247 = math.exp %246 : vector<8x128xf32>
    %cst_73 = arith.constant 1.000000e+00 : f32
    %248 = vector.broadcast %cst_73 : f32 to vector<8x128xf32>
    %249 = arith.addf %248, %247 : vector<8x128xf32>
    %250 = arith.divf %248, %249 : vector<8x128xf32>
    %251 = arith.mulf %242, %220 : vector<8x128xf32>
    %252 = arith.mulf %236, %244 : vector<8x128xf32>
    %253 = arith.addf %251, %252 : vector<8x128xf32>
    %254 = math.tanh %253 : vector<8x128xf32>
    %255 = arith.mulf %250, %254 : vector<8x128xf32>
    %256 = arith.index_cast %226 : i32 to index
    %c0_74 = arith.constant 0 : index
    %257 = vector.load %arg15[%256, %c0_74] : memref<64x128xf32, #tpu.memory_space<vmem>>, vector<8x128xf32>
    tpu.vector_store %arg15[%256, %c0_74], %255 {strides = array<i32>} : memref<64x128xf32, #tpu.memory_space<vmem>>, vector<8x128xf32>,
    %c7_i32 = arith.constant 7 : i32
    %c8_i32_75 = arith.constant 8 : i32
    %258 = arith.muli %c7_i32, %c8_i32_75 : i32
    %259 = tpu.assume_multiple %258, 8 : i32
    %260 = arith.index_cast %259 : i32 to index
    %c0_76 = arith.constant 0 : index
    %261 = vector.load %arg14[%260, %c0_76] : memref<64x512xf32, #tpu.memory_space<vmem>>, vector<8x512xf32>
    %cst_77 = arith.constant dense<0.000000e+00> : vector<8x512xf32>
    %262 = tpu.matmul %255, %24, %cst_77 {dimension_numbers = #tpu.dot_dimension_numbers<[1], [0], [0], [1], [0, 0, 1, 1], [], []>} : vector<8x128xf32>, vector<128x512xf32>, vector<8x512xf32> -> vector<8x512xf32>
    %263 = arith.addf %261, %262 : vector<8x512xf32>
    %264 = vector.extract_strided_slice %263 {offsets = [0, 0], sizes = [8, 128], strides = [1, 1]} : vector<8x512xf32> to vector<8x128xf32>
    %265 = arith.negf %264 : vector<8x128xf32>
    %266 = math.exp %265 : vector<8x128xf32>
    %cst_78 = arith.constant 1.000000e+00 : f32
    %267 = vector.broadcast %cst_78 : f32 to vector<8x128xf32>
    %268 = arith.addf %267, %266 : vector<8x128xf32>
    %269 = arith.divf %267, %268 : vector<8x128xf32>
    %270 = vector.extract_strided_slice %263 {offsets = [0, 128], sizes = [8, 128], strides = [1, 1]} : vector<8x512xf32> to vector<8x128xf32>
    %271 = arith.negf %270 : vector<8x128xf32>
    %272 = math.exp %271 : vector<8x128xf32>
    %cst_79 = arith.constant 1.000000e+00 : f32
    %273 = vector.broadcast %cst_79 : f32 to vector<8x128xf32>
    %274 = arith.addf %273, %272 : vector<8x128xf32>
    %275 = arith.divf %273, %274 : vector<8x128xf32>
    %276 = vector.extract_strided_slice %263 {offsets = [0, 256], sizes = [8, 128], strides = [1, 1]} : vector<8x512xf32> to vector<8x128xf32>
    %277 = math.tanh %276 : vector<8x128xf32>
    %278 = vector.extract_strided_slice %263 {offsets = [0, 384], sizes = [8, 128], strides = [1, 1]} : vector<8x512xf32> to vector<8x128xf32>
    %279 = arith.negf %278 : vector<8x128xf32>
    %280 = math.exp %279 : vector<8x128xf32>
    %cst_80 = arith.constant 1.000000e+00 : f32
    %281 = vector.broadcast %cst_80 : f32 to vector<8x128xf32>
    %282 = arith.addf %281, %280 : vector<8x128xf32>
    %283 = arith.divf %281, %282 : vector<8x128xf32>
    %284 = arith.mulf %275, %253 : vector<8x128xf32>
    %285 = arith.mulf %269, %277 : vector<8x128xf32>
    %286 = arith.addf %284, %285 : vector<8x128xf32>
    %287 = math.tanh %286 : vector<8x128xf32>
    %288 = arith.mulf %283, %287 : vector<8x128xf32>
    %289 = arith.index_cast %259 : i32 to index
    %c0_81 = arith.constant 0 : index
    %290 = vector.load %arg15[%289, %c0_81] : memref<64x128xf32, #tpu.memory_space<vmem>>, vector<8x128xf32>
    tpu.vector_store %arg15[%289, %c0_81], %288 {strides = array<i32>} : memref<64x128xf32, #tpu.memory_space<vmem>>, vector<8x128xf32>,
    %c8_i32_82 = arith.constant 8 : i32
    %c0_83 = arith.constant 0 : index
    %c0_84 = arith.constant 0 : index
    %291 = vector.load %arg12[%c0_83, %c0_84] : memref<8x128xf32, #tpu.memory_space<vmem>>, vector<8x128xf32>
    tpu.vector_store %arg12[%c0_83, %c0_84], %288 {strides = array<i32>} : memref<8x128xf32, #tpu.memory_space<vmem>>, vector<8x128xf32>,
    %c0_85 = arith.constant 0 : index
    %c0_86 = arith.constant 0 : index
    %292 = vector.load %arg13[%c0_85, %c0_86] : memref<8x128xf32, #tpu.memory_space<vmem>>, vector<8x128xf32>
    tpu.vector_store %arg13[%c0_85, %c0_86], %286 {strides = array<i32>} : memref<8x128xf32, #tpu.memory_space<vmem>>, vector<8x128xf32>,
    %c0_87 = arith.constant 0 : index
    %c0_88 = arith.constant 0 : index
    %293 = vector.load %arg15[%c0_87, %c0_88] : memref<64x128xf32, #tpu.memory_space<vmem>>, vector<64x128xf32>
    %c0_89 = arith.constant 0 : index
    %c0_90 = arith.constant 0 : index
    %294 = vector.load %arg9[%c0_89, %c0_90] : memref<128x128xf32, #tpu.memory_space<vmem>>, vector<128x128xf32>
    %cst_91 = arith.constant dense<0.000000e+00> : vector<64x128xf32>
    %295 = tpu.matmul %293, %294, %cst_91 {dimension_numbers = #tpu.dot_dimension_numbers<[1], [0], [0], [1], [0, 0, 1, 1], [], []>} : vector<64x128xf32>, vector<128x128xf32>, vector<64x128xf32> -> vector<64x128xf32>
    %c0_92 = arith.constant 0 : index
    %c0_93 = arith.constant 0 : index
    %296 = vector.load %arg10[%c0_92, %c0_93] : memref<1x128xf32, #tpu.memory_space<vmem>>, vector<1x128xf32>
    %297 = vector.broadcast %296 : vector<1x128xf32> to vector<64x128xf32>
    %298 = arith.addf %295, %297 : vector<64x128xf32>
    %c0_94 = arith.constant 0 : index
    %c0_95 = arith.constant 0 : index
    %299 = vector.load %arg11[%c0_94, %c0_95] : memref<64x128xf32, #tpu.memory_space<vmem>>, vector<64x128xf32>
    tpu.vector_store %arg11[%c0_94, %c0_95], %298 {strides = array<i32>} : memref<64x128xf32, #tpu.memory_space<vmem>>, vector<64x128xf32>,
    return
  }
  func.func @transform_0(%arg0: i32) -> (i32, i32) {
    %c0_i32 = arith.constant 0 : i32
    %c0_i32_0 = arith.constant 0 : i32
    return %arg0, %c0_i32 : i32, i32
  }
  func.func @transform_1(%arg0: i32) -> (i32, i32) {
    %c0_i32 = arith.constant 0 : i32
    %c0_i32_0 = arith.constant 0 : i32
    %c0_i32_1 = arith.constant 0 : i32
    return %c0_i32, %c0_i32_0 : i32, i32
  }
  func.func @transform_2(%arg0: i32) -> (i32, i32) {
    %c0_i32 = arith.constant 0 : i32
    %c0_i32_0 = arith.constant 0 : i32
    %c0_i32_1 = arith.constant 0 : i32
    return %c0_i32, %c0_i32_0 : i32, i32
  }
  func.func @transform_3(%arg0: i32) -> (i32, i32) {
    %c0_i32 = arith.constant 0 : i32
    %c0_i32_0 = arith.constant 0 : i32
    %c0_i32_1 = arith.constant 0 : i32
    return %c0_i32, %c0_i32_0 : i32, i32
  }
  func.func @transform_4(%arg0: i32) -> (i32, i32) {
    %c0_i32 = arith.constant 0 : i32
    %c0_i32_0 = arith.constant 0 : i32
    %c0_i32_1 = arith.constant 0 : i32
    return %c0_i32, %c0_i32_0 : i32, i32
  }
  func.func @transform_5(%arg0: i32) -> (i32, i32) {
    %c0_i32 = arith.constant 0 : i32
    %c0_i32_0 = arith.constant 0 : i32
    %c0_i32_1 = arith.constant 0 : i32
    return %c0_i32, %c0_i32_0 : i32, i32
  }
  func.func @transform_6(%arg0: i32) -> (i32, i32) {
    %c0_i32 = arith.constant 0 : i32
    %c0_i32_0 = arith.constant 0 : i32
    %c0_i32_1 = arith.constant 0 : i32
    return %c0_i32, %c0_i32_0 : i32, i32
  }
  func.func @transform_7(%arg0: i32) -> (i32, i32) {
    %c0_i32 = arith.constant 0 : i32
    %c0_i32_0 = arith.constant 0 : i32
    %c0_i32_1 = arith.constant 0 : i32
    return %c0_i32, %c0_i32_0 : i32, i32
  }
  func.func @transform_8(%arg0: i32) -> (i32, i32) {
    %c0_i32 = arith.constant 0 : i32
    %c0_i32_0 = arith.constant 0 : i32
    %c0_i32_1 = arith.constant 0 : i32
    return %c0_i32, %c0_i32_0 : i32, i32
  }
  func.func @transform_9(%arg0: i32) -> (i32, i32) {
    %c0_i32 = arith.constant 0 : i32
    %c0_i32_0 = arith.constant 0 : i32
    %c0_i32_1 = arith.constant 0 : i32
    return %c0_i32, %c0_i32_0 : i32, i32
  }
  func.func @transform_10(%arg0: i32) -> (i32, i32) {
    %c0_i32 = arith.constant 0 : i32
    %c0_i32_0 = arith.constant 0 : i32
    return %arg0, %c0_i32 : i32, i32
  }
}

module attributes {stable_mosaic.version = 11 : i64} {
  func.func @_fused_kernel(%arg0: i32, %arg1: memref<64x6xf32, #tpu.memory_space<vmem>>, %arg2: memref<6x128xf32, #tpu.memory_space<vmem>>, %arg3: memref<1x128xf32, #tpu.memory_space<vmem>>, %arg4: memref<128x128xf32, #tpu.memory_space<vmem>>, %arg5: memref<1x128xf32, #tpu.memory_space<vmem>>, %arg6: memref<128x512xf32, #tpu.memory_space<vmem>>, %arg7: memref<128x512xf32, #tpu.memory_space<vmem>>, %arg8: memref<1x512xf32, #tpu.memory_space<vmem>>, %arg9: memref<128x128xf32, #tpu.memory_space<vmem>>, %arg10: memref<1x128xf32, #tpu.memory_space<vmem>>, %arg11: memref<64x128xf32, #tpu.memory_space<vmem>>, %arg12: memref<8x128xf32, #tpu.memory_space<vmem>>, %arg13: memref<8x128xf32, #tpu.memory_space<vmem>>, %arg14: memref<64x512xf32, #tpu.memory_space<vmem>>, %arg15: memref<64x128xf32, #tpu.memory_space<vmem>>) attributes {dimension_semantics = [#tpu.dimension_semantics<arbitrary>], iteration_bounds = array<i64: 1>, scalar_prefetch = 0 : i64, scratch_operands = 4 : i64, tpu.core_type = #tpu.core_type<tc>, window_params = [{transform_indices = @transform_0, window_bounds = array<i64: 64, 6>}, {pipeline_mode = #tpu.pipeline_mode<synchronous>, transform_indices = @transform_1, window_bounds = array<i64: 6, 128>}, {pipeline_mode = #tpu.pipeline_mode<synchronous>, transform_indices = @transform_2, window_bounds = array<i64: 1, 128>}, {pipeline_mode = #tpu.pipeline_mode<synchronous>, transform_indices = @transform_3, window_bounds = array<i64: 128, 128>}, {pipeline_mode = #tpu.pipeline_mode<synchronous>, transform_indices = @transform_4, window_bounds = array<i64: 1, 128>}, {pipeline_mode = #tpu.pipeline_mode<synchronous>, transform_indices = @transform_5, window_bounds = array<i64: 128, 512>}, {pipeline_mode = #tpu.pipeline_mode<synchronous>, transform_indices = @transform_6, window_bounds = array<i64: 128, 512>}, {pipeline_mode = #tpu.pipeline_mode<synchronous>, transform_indices = @transform_7, window_bounds = array<i64: 1, 512>}, {pipeline_mode = #tpu.pipeline_mode<synchronous>, transform_indices = @transform_8, window_bounds = array<i64: 128, 128>}, {pipeline_mode = #tpu.pipeline_mode<synchronous>, transform_indices = @transform_9, window_bounds = array<i64: 1, 128>}, {transform_indices = @transform_10, window_bounds = array<i64: 64, 128>}]} {
    %c0_i32 = arith.constant 0 : i32
    %0 = arith.cmpi eq, %arg0, %c0_i32 : i32
    %1 = arith.extui %0 : i1 to i32
    %c0_i32_0 = arith.constant 0 : i32
    %2 = arith.cmpi ne, %1, %c0_i32_0 : i32
    scf.if %2 {
      %cst_96 = arith.constant 0.000000e+00 : f32
      %300 = vector.broadcast %cst_96 : f32 to vector<8x128xf32>
      %c0_97 = arith.constant 0 : index
      %c0_98 = arith.constant 0 : index
      %301 = vector.load %arg12[%c0_97, %c0_98] : memref<8x128xf32, #tpu.memory_space<vmem>>, vector<8x128xf32>
      tpu.vector_store %arg12[%c0_97, %c0_98], %300 {strides = array<i32>} : memref<8x128xf32, #tpu.memory_space<vmem>>, vector<8x128xf32>,
      %cst_99 = arith.constant 0.000000e+00 : f32
      %302 = vector.broadcast %cst_99 : f32 to vector<8x128xf32>
      %c0_100 = arith.constant 0 : index
      %c0_101 = arith.constant 0 : index
      %303 = vector.load %arg13[%c0_100, %c0_101] : memref<8x128xf32, #tpu.memory_space<vmem>>, vector<8x128xf32>
      tpu.vector_store %arg13[%c0_100, %c0_101], %302 {strides = array<i32>} : memref<8x128xf32, #tpu.memory_space<vmem>>, vector<8x128xf32>,
    } else {
    }
    %c0 = arith.constant 0 : index
    %c0_1 = arith.constant 0 : index
    %3 = vector.load %arg1[%c0, %c0_1] : memref<64x6xf32, #tpu.memory_space<vmem>>, vector<64x6xf32>
    %c0_2 = arith.constant 0 : index
    %c0_3 = arith.constant 0 : index
    %4 = vector.load %arg2[%c0_2, %c0_3] : memref<6x128xf32, #tpu.memory_space<vmem>>, vector<6x128xf32>
    %cst = arith.constant dense<0.000000e+00> : vector<64x128xf32>
    %5 = tpu.matmul %3, %4, %cst {dimension_numbers = #tpu.dot_dimension_numbers<[1], [0], [0], [1], [0, 0, 1, 1], [], []>} : vector<64x6xf32>, vector<6x128xf32>, vector<64x128xf32> -> vector<64x128xf32>
    %c0_4 = arith.constant 0 : index
    %c0_5 = arith.constant 0 : index
    %6 = vector.load %arg3[%c0_4, %c0_5] : memref<1x128xf32, #tpu.memory_space<vmem>>, vector<1x128xf32>
    %7 = vector.broadcast %6 : vector<1x128xf32> to vector<64x128xf32>
    %8 = arith.addf %5, %7 : vector<64x128xf32>
    %cst_6 = arith.constant 0.000000e+00 : f32
    %9 = vector.broadcast %cst_6 : f32 to vector<64x128xf32>
    %10 = arith.maximumf %8, %9 : vector<64x128xf32>
    %c0_7 = arith.constant 0 : index
    %c0_8 = arith.constant 0 : index
    %11 = vector.load %arg4[%c0_7, %c0_8] : memref<128x128xf32, #tpu.memory_space<vmem>>, vector<128x128xf32>
    %cst_9 = arith.constant dense<0.000000e+00> : vector<64x128xf32>
    %12 = tpu.matmul %10, %11, %cst_9 {dimension_numbers = #tpu.dot_dimension_numbers<[1], [0], [0], [1], [0, 0, 1, 1], [], []>} : vector<64x128xf32>, vector<128x128xf32>, vector<64x128xf32> -> vector<64x128xf32>
    %c0_10 = arith.constant 0 : index
    %c0_11 = arith.constant 0 : index
    %13 = vector.load %arg5[%c0_10, %c0_11] : memref<1x128xf32, #tpu.memory_space<vmem>>, vector<1x128xf32>
    %14 = vector.broadcast %13 : vector<1x128xf32> to vector<64x128xf32>
    %15 = arith.addf %12, %14 : vector<64x128xf32>
    %cst_12 = arith.constant 0.000000e+00 : f32
    %16 = vector.broadcast %cst_12 : f32 to vector<64x128xf32>
    %17 = arith.maximumf %15, %16 : vector<64x128xf32>
    %c0_13 = arith.constant 0 : index
    %c0_14 = arith.constant 0 : index
    %18 = vector.load %arg6[%c0_13, %c0_14] : memref<128x512xf32, #tpu.memory_space<vmem>>, vector<128x512xf32>
    %cst_15 = arith.constant dense<0.000000e+00> : vector<64x512xf32>
    %19 = tpu.matmul %17, %18, %cst_15 {dimension_numbers = #tpu.dot_dimension_numbers<[1], [0], [0], [1], [0, 0, 1, 1], [], []>} : vector<64x128xf32>, vector<128x512xf32>, vector<64x512xf32> -> vector<64x512xf32>
    %c0_16 = arith.constant 0 : index
    %c0_17 = arith.constant 0 : index
    %20 = vector.load %arg8[%c0_16, %c0_17] : memref<1x512xf32, #tpu.memory_space<vmem>>, vector<1x512xf32>
    %21 = vector.broadcast %20 : vector<1x512xf32> to vector<64x512xf32>
    %22 = arith.addf %19, %21 : vector<64x512xf32>
    %c0_18 = arith.constant 0 : index
    %c0_19 = arith.constant 0 : index
    %23 = vector.load %arg14[%c0_18, %c0_19] : memref<64x512xf32, #tpu.memory_space<vmem>>, vector<64x512xf32>
    tpu.vector_store %arg14[%c0_18, %c0_19], %22 {strides = array<i32>} : memref<64x512xf32, #tpu.memory_space<vmem>>, vector<64x512xf32>,
    %c0_20 = arith.constant 0 : index
    %c0_21 = arith.constant 0 : index
    %24 = vector.load %arg7[%c0_20, %c0_21] : memref<128x512xf32, #tpu.memory_space<vmem>>, vector<128x512xf32>
    %c0_22 = arith.constant 0 : index
    %c0_23 = arith.constant 0 : index
    %25 = vector.load %arg12[%c0_22, %c0_23] : memref<8x128xf32, #tpu.memory_space<vmem>>, vector<8x128xf32>
    %c0_24 = arith.constant 0 : index
    %c0_25 = arith.constant 0 : index
    %26 = vector.load %arg13[%c0_24, %c0_25] : memref<8x128xf32, #tpu.memory_space<vmem>>, vector<8x128xf32>
    %c0_i32_26 = arith.constant 0 : i32
    %c8_i32 = arith.constant 8 : i32
    %27 = arith.muli %c0_i32_26, %c8_i32 : i32
    %28 = tpu.assume_multiple %27, 8 : i32
    %29 = arith.index_cast %28 : i32 to index
    %c0_27 = arith.constant 0 : index
    %30 = vector.load %arg14[%29, %c0_27] : memref<64x512xf32, #tpu.memory_space<vmem>>, vector<8x512xf32>
    %cst_28 = arith.constant dense<0.000000e+00> : vector<8x512xf32>
    %31 = tpu.matmul %25, %24, %cst_28 {dimension_numbers = #tpu.dot_dimension_numbers<[1], [0], [0], [1], [0, 0, 1, 1], [], []>} : vector<8x128xf32>, vector<128x512xf32>, vector<8x512xf32> -> vector<8x512xf32>
    %32 = arith.addf %30, %31 : vector<8x512xf32>
    %33 = vector.extract_strided_slice %32 {offsets = [0, 0], sizes = [8, 128], strides = [1, 1]} : vector<8x512xf32> to vector<8x128xf32>
    %34 = arith.negf %33 : vector<8x128xf32>
    %35 = math.exp %34 : vector<8x128xf32>
    %cst_29 = arith.constant 1.000000e+00 : f32
    %36 = vector.broadcast %cst_29 : f32 to vector<8x128xf32>
    %37 = arith.addf %36, %35 : vector<8x128xf32>
    %38 = arith.divf %36, %37 : vector<8x128xf32>
    %39 = vector.extract_strided_slice %32 {offsets = [0, 128], sizes = [8, 128], strides = [1, 1]} : vector<8x512xf32> to vector<8x128xf32>
    %40 = arith.negf %39 : vector<8x128xf32>
    %41 = math.exp %40 : vector<8x128xf32>
    %cst_30 = arith.constant 1.000000e+00 : f32
    %42 = vector.broadcast %cst_30 : f32 to vector<8x128xf32>
    %43 = arith.addf %42, %41 : vector<8x128xf32>
    %44 = arith.divf %42, %43 : vector<8x128xf32>
    %45 = vector.extract_strided_slice %32 {offsets = [0, 256], sizes = [8, 128], strides = [1, 1]} : vector<8x512xf32> to vector<8x128xf32>
    %46 = math.tanh %45 : vector<8x128xf32>
    %47 = vector.extract_strided_slice %32 {offsets = [0, 384], sizes = [8, 128], strides = [1, 1]} : vector<8x512xf32> to vector<8x128xf32>
    %48 = arith.negf %47 : vector<8x128xf32>
    %49 = math.exp %48 : vector<8x128xf32>
    %cst_31 = arith.constant 1.000000e+00 : f32
    %50 = vector.broadcast %cst_31 : f32 to vector<8x128xf32>
    %51 = arith.addf %50, %49 : vector<8x128xf32>
    %52 = arith.divf %50, %51 : vector<8x128xf32>
    %53 = arith.mulf %44, %26 : vector<8x128xf32>
    %54 = arith.mulf %38, %46 : vector<8x128xf32>
    %55 = arith.addf %53, %54 : vector<8x128xf32>
    %56 = math.tanh %55 : vector<8x128xf32>
    %57 = arith.mulf %52, %56 : vector<8x128xf32>
    %58 = arith.index_cast %28 : i32 to index
    %c0_32 = arith.constant 0 : index
    %59 = vector.load %arg15[%58, %c0_32] : memref<64x128xf32, #tpu.memory_space<vmem>>, vector<8x128xf32>
    tpu.vector_store %arg15[%58, %c0_32], %57 {strides = array<i32>} : memref<64x128xf32, #tpu.memory_space<vmem>>, vector<8x128xf32>,
    %c1_i32 = arith.constant 1 : i32
    %c8_i32_33 = arith.constant 8 : i32
    %60 = arith.muli %c1_i32, %c8_i32_33 : i32
    %61 = tpu.assume_multiple %60, 8 : i32
    %62 = arith.index_cast %61 : i32 to index
    %c0_34 = arith.constant 0 : index
    %63 = vector.load %arg14[%62, %c0_34] : memref<64x512xf32, #tpu.memory_space<vmem>>, vector<8x512xf32>
    %cst_35 = arith.constant dense<0.000000e+00> : vector<8x512xf32>
    %64 = tpu.matmul %57, %24, %cst_35 {dimension_numbers = #tpu.dot_dimension_numbers<[1], [0], [0], [1], [0, 0, 1, 1], [], []>} : vector<8x128xf32>, vector<128x512xf32>, vector<8x512xf32> -> vector<8x512xf32>
    %65 = arith.addf %63, %64 : vector<8x512xf32>
    %66 = vector.extract_strided_slice %65 {offsets = [0, 0], sizes = [8, 128], strides = [1, 1]} : vector<8x512xf32> to vector<8x128xf32>
    %67 = arith.negf %66 : vector<8x128xf32>
    %68 = math.exp %67 : vector<8x128xf32>
    %cst_36 = arith.constant 1.000000e+00 : f32
    %69 = vector.broadcast %cst_36 : f32 to vector<8x128xf32>
    %70 = arith.addf %69, %68 : vector<8x128xf32>
    %71 = arith.divf %69, %70 : vector<8x128xf32>
    %72 = vector.extract_strided_slice %65 {offsets = [0, 128], sizes = [8, 128], strides = [1, 1]} : vector<8x512xf32> to vector<8x128xf32>
    %73 = arith.negf %72 : vector<8x128xf32>
    %74 = math.exp %73 : vector<8x128xf32>
    %cst_37 = arith.constant 1.000000e+00 : f32
    %75 = vector.broadcast %cst_37 : f32 to vector<8x128xf32>
    %76 = arith.addf %75, %74 : vector<8x128xf32>
    %77 = arith.divf %75, %76 : vector<8x128xf32>
    %78 = vector.extract_strided_slice %65 {offsets = [0, 256], sizes = [8, 128], strides = [1, 1]} : vector<8x512xf32> to vector<8x128xf32>
    %79 = math.tanh %78 : vector<8x128xf32>
    %80 = vector.extract_strided_slice %65 {offsets = [0, 384], sizes = [8, 128], strides = [1, 1]} : vector<8x512xf32> to vector<8x128xf32>
    %81 = arith.negf %80 : vector<8x128xf32>
    %82 = math.exp %81 : vector<8x128xf32>
    %cst_38 = arith.constant 1.000000e+00 : f32
    %83 = vector.broadcast %cst_38 : f32 to vector<8x128xf32>
    %84 = arith.addf %83, %82 : vector<8x128xf32>
    %85 = arith.divf %83, %84 : vector<8x128xf32>
    %86 = arith.mulf %77, %55 : vector<8x128xf32>
    %87 = arith.mulf %71, %79 : vector<8x128xf32>
    %88 = arith.addf %86, %87 : vector<8x128xf32>
    %89 = math.tanh %88 : vector<8x128xf32>
    %90 = arith.mulf %85, %89 : vector<8x128xf32>
    %91 = arith.index_cast %61 : i32 to index
    %c0_39 = arith.constant 0 : index
    %92 = vector.load %arg15[%91, %c0_39] : memref<64x128xf32, #tpu.memory_space<vmem>>, vector<8x128xf32>
    tpu.vector_store %arg15[%91, %c0_39], %90 {strides = array<i32>} : memref<64x128xf32, #tpu.memory_space<vmem>>, vector<8x128xf32>,
    %c2_i32 = arith.constant 2 : i32
    %c8_i32_40 = arith.constant 8 : i32
    %93 = arith.muli %c2_i32, %c8_i32_40 : i32
    %94 = tpu.assume_multiple %93, 8 : i32
    %95 = arith.index_cast %94 : i32 to index
    %c0_41 = arith.constant 0 : index
    %96 = vector.load %arg14[%95, %c0_41] : memref<64x512xf32, #tpu.memory_space<vmem>>, vector<8x512xf32>
    %cst_42 = arith.constant dense<0.000000e+00> : vector<8x512xf32>
    %97 = tpu.matmul %90, %24, %cst_42 {dimension_numbers = #tpu.dot_dimension_numbers<[1], [0], [0], [1], [0, 0, 1, 1], [], []>} : vector<8x128xf32>, vector<128x512xf32>, vector<8x512xf32> -> vector<8x512xf32>
    %98 = arith.addf %96, %97 : vector<8x512xf32>
    %99 = vector.extract_strided_slice %98 {offsets = [0, 0], sizes = [8, 128], strides = [1, 1]} : vector<8x512xf32> to vector<8x128xf32>
    %100 = arith.negf %99 : vector<8x128xf32>
    %101 = math.exp %100 : vector<8x128xf32>
    %cst_43 = arith.constant 1.000000e+00 : f32
    %102 = vector.broadcast %cst_43 : f32 to vector<8x128xf32>
    %103 = arith.addf %102, %101 : vector<8x128xf32>
    %104 = arith.divf %102, %103 : vector<8x128xf32>
    %105 = vector.extract_strided_slice %98 {offsets = [0, 128], sizes = [8, 128], strides = [1, 1]} : vector<8x512xf32> to vector<8x128xf32>
    %106 = arith.negf %105 : vector<8x128xf32>
    %107 = math.exp %106 : vector<8x128xf32>
    %cst_44 = arith.constant 1.000000e+00 : f32
    %108 = vector.broadcast %cst_44 : f32 to vector<8x128xf32>
    %109 = arith.addf %108, %107 : vector<8x128xf32>
    %110 = arith.divf %108, %109 : vector<8x128xf32>
    %111 = vector.extract_strided_slice %98 {offsets = [0, 256], sizes = [8, 128], strides = [1, 1]} : vector<8x512xf32> to vector<8x128xf32>
    %112 = math.tanh %111 : vector<8x128xf32>
    %113 = vector.extract_strided_slice %98 {offsets = [0, 384], sizes = [8, 128], strides = [1, 1]} : vector<8x512xf32> to vector<8x128xf32>
    %114 = arith.negf %113 : vector<8x128xf32>
    %115 = math.exp %114 : vector<8x128xf32>
    %cst_45 = arith.constant 1.000000e+00 : f32
    %116 = vector.broadcast %cst_45 : f32 to vector<8x128xf32>
    %117 = arith.addf %116, %115 : vector<8x128xf32>
    %118 = arith.divf %116, %117 : vector<8x128xf32>
    %119 = arith.mulf %110, %88 : vector<8x128xf32>
    %120 = arith.mulf %104, %112 : vector<8x128xf32>
    %121 = arith.addf %119, %120 : vector<8x128xf32>
    %122 = math.tanh %121 : vector<8x128xf32>
    %123 = arith.mulf %118, %122 : vector<8x128xf32>
    %124 = arith.index_cast %94 : i32 to index
    %c0_46 = arith.constant 0 : index
    %125 = vector.load %arg15[%124, %c0_46] : memref<64x128xf32, #tpu.memory_space<vmem>>, vector<8x128xf32>
    tpu.vector_store %arg15[%124, %c0_46], %123 {strides = array<i32>} : memref<64x128xf32, #tpu.memory_space<vmem>>, vector<8x128xf32>,
    %c3_i32 = arith.constant 3 : i32
    %c8_i32_47 = arith.constant 8 : i32
    %126 = arith.muli %c3_i32, %c8_i32_47 : i32
    %127 = tpu.assume_multiple %126, 8 : i32
    %128 = arith.index_cast %127 : i32 to index
    %c0_48 = arith.constant 0 : index
    %129 = vector.load %arg14[%128, %c0_48] : memref<64x512xf32, #tpu.memory_space<vmem>>, vector<8x512xf32>
    %cst_49 = arith.constant dense<0.000000e+00> : vector<8x512xf32>
    %130 = tpu.matmul %123, %24, %cst_49 {dimension_numbers = #tpu.dot_dimension_numbers<[1], [0], [0], [1], [0, 0, 1, 1], [], []>} : vector<8x128xf32>, vector<128x512xf32>, vector<8x512xf32> -> vector<8x512xf32>
    %131 = arith.addf %129, %130 : vector<8x512xf32>
    %132 = vector.extract_strided_slice %131 {offsets = [0, 0], sizes = [8, 128], strides = [1, 1]} : vector<8x512xf32> to vector<8x128xf32>
    %133 = arith.negf %132 : vector<8x128xf32>
    %134 = math.exp %133 : vector<8x128xf32>
    %cst_50 = arith.constant 1.000000e+00 : f32
    %135 = vector.broadcast %cst_50 : f32 to vector<8x128xf32>
    %136 = arith.addf %135, %134 : vector<8x128xf32>
    %137 = arith.divf %135, %136 : vector<8x128xf32>
    %138 = vector.extract_strided_slice %131 {offsets = [0, 128], sizes = [8, 128], strides = [1, 1]} : vector<8x512xf32> to vector<8x128xf32>
    %139 = arith.negf %138 : vector<8x128xf32>
    %140 = math.exp %139 : vector<8x128xf32>
    %cst_51 = arith.constant 1.000000e+00 : f32
    %141 = vector.broadcast %cst_51 : f32 to vector<8x128xf32>
    %142 = arith.addf %141, %140 : vector<8x128xf32>
    %143 = arith.divf %141, %142 : vector<8x128xf32>
    %144 = vector.extract_strided_slice %131 {offsets = [0, 256], sizes = [8, 128], strides = [1, 1]} : vector<8x512xf32> to vector<8x128xf32>
    %145 = math.tanh %144 : vector<8x128xf32>
    %146 = vector.extract_strided_slice %131 {offsets = [0, 384], sizes = [8, 128], strides = [1, 1]} : vector<8x512xf32> to vector<8x128xf32>
    %147 = arith.negf %146 : vector<8x128xf32>
    %148 = math.exp %147 : vector<8x128xf32>
    %cst_52 = arith.constant 1.000000e+00 : f32
    %149 = vector.broadcast %cst_52 : f32 to vector<8x128xf32>
    %150 = arith.addf %149, %148 : vector<8x128xf32>
    %151 = arith.divf %149, %150 : vector<8x128xf32>
    %152 = arith.mulf %143, %121 : vector<8x128xf32>
    %153 = arith.mulf %137, %145 : vector<8x128xf32>
    %154 = arith.addf %152, %153 : vector<8x128xf32>
    %155 = math.tanh %154 : vector<8x128xf32>
    %156 = arith.mulf %151, %155 : vector<8x128xf32>
    %157 = arith.index_cast %127 : i32 to index
    %c0_53 = arith.constant 0 : index
    %158 = vector.load %arg15[%157, %c0_53] : memref<64x128xf32, #tpu.memory_space<vmem>>, vector<8x128xf32>
    tpu.vector_store %arg15[%157, %c0_53], %156 {strides = array<i32>} : memref<64x128xf32, #tpu.memory_space<vmem>>, vector<8x128xf32>,
    %c4_i32 = arith.constant 4 : i32
    %c8_i32_54 = arith.constant 8 : i32
    %159 = arith.muli %c4_i32, %c8_i32_54 : i32
    %160 = tpu.assume_multiple %159, 8 : i32
    %161 = arith.index_cast %160 : i32 to index
    %c0_55 = arith.constant 0 : index
    %162 = vector.load %arg14[%161, %c0_55] : memref<64x512xf32, #tpu.memory_space<vmem>>, vector<8x512xf32>
    %cst_56 = arith.constant dense<0.000000e+00> : vector<8x512xf32>
    %163 = tpu.matmul %156, %24, %cst_56 {dimension_numbers = #tpu.dot_dimension_numbers<[1], [0], [0], [1], [0, 0, 1, 1], [], []>} : vector<8x128xf32>, vector<128x512xf32>, vector<8x512xf32> -> vector<8x512xf32>
    %164 = arith.addf %162, %163 : vector<8x512xf32>
    %165 = vector.extract_strided_slice %164 {offsets = [0, 0], sizes = [8, 128], strides = [1, 1]} : vector<8x512xf32> to vector<8x128xf32>
    %166 = arith.negf %165 : vector<8x128xf32>
    %167 = math.exp %166 : vector<8x128xf32>
    %cst_57 = arith.constant 1.000000e+00 : f32
    %168 = vector.broadcast %cst_57 : f32 to vector<8x128xf32>
    %169 = arith.addf %168, %167 : vector<8x128xf32>
    %170 = arith.divf %168, %169 : vector<8x128xf32>
    %171 = vector.extract_strided_slice %164 {offsets = [0, 128], sizes = [8, 128], strides = [1, 1]} : vector<8x512xf32> to vector<8x128xf32>
    %172 = arith.negf %171 : vector<8x128xf32>
    %173 = math.exp %172 : vector<8x128xf32>
    %cst_58 = arith.constant 1.000000e+00 : f32
    %174 = vector.broadcast %cst_58 : f32 to vector<8x128xf32>
    %175 = arith.addf %174, %173 : vector<8x128xf32>
    %176 = arith.divf %174, %175 : vector<8x128xf32>
    %177 = vector.extract_strided_slice %164 {offsets = [0, 256], sizes = [8, 128], strides = [1, 1]} : vector<8x512xf32> to vector<8x128xf32>
    %178 = math.tanh %177 : vector<8x128xf32>
    %179 = vector.extract_strided_slice %164 {offsets = [0, 384], sizes = [8, 128], strides = [1, 1]} : vector<8x512xf32> to vector<8x128xf32>
    %180 = arith.negf %179 : vector<8x128xf32>
    %181 = math.exp %180 : vector<8x128xf32>
    %cst_59 = arith.constant 1.000000e+00 : f32
    %182 = vector.broadcast %cst_59 : f32 to vector<8x128xf32>
    %183 = arith.addf %182, %181 : vector<8x128xf32>
    %184 = arith.divf %182, %183 : vector<8x128xf32>
    %185 = arith.mulf %176, %154 : vector<8x128xf32>
    %186 = arith.mulf %170, %178 : vector<8x128xf32>
    %187 = arith.addf %185, %186 : vector<8x128xf32>
    %188 = math.tanh %187 : vector<8x128xf32>
    %189 = arith.mulf %184, %188 : vector<8x128xf32>
    %190 = arith.index_cast %160 : i32 to index
    %c0_60 = arith.constant 0 : index
    %191 = vector.load %arg15[%190, %c0_60] : memref<64x128xf32, #tpu.memory_space<vmem>>, vector<8x128xf32>
    tpu.vector_store %arg15[%190, %c0_60], %189 {strides = array<i32>} : memref<64x128xf32, #tpu.memory_space<vmem>>, vector<8x128xf32>,
    %c5_i32 = arith.constant 5 : i32
    %c8_i32_61 = arith.constant 8 : i32
    %192 = arith.muli %c5_i32, %c8_i32_61 : i32
    %193 = tpu.assume_multiple %192, 8 : i32
    %194 = arith.index_cast %193 : i32 to index
    %c0_62 = arith.constant 0 : index
    %195 = vector.load %arg14[%194, %c0_62] : memref<64x512xf32, #tpu.memory_space<vmem>>, vector<8x512xf32>
    %cst_63 = arith.constant dense<0.000000e+00> : vector<8x512xf32>
    %196 = tpu.matmul %189, %24, %cst_63 {dimension_numbers = #tpu.dot_dimension_numbers<[1], [0], [0], [1], [0, 0, 1, 1], [], []>} : vector<8x128xf32>, vector<128x512xf32>, vector<8x512xf32> -> vector<8x512xf32>
    %197 = arith.addf %195, %196 : vector<8x512xf32>
    %198 = vector.extract_strided_slice %197 {offsets = [0, 0], sizes = [8, 128], strides = [1, 1]} : vector<8x512xf32> to vector<8x128xf32>
    %199 = arith.negf %198 : vector<8x128xf32>
    %200 = math.exp %199 : vector<8x128xf32>
    %cst_64 = arith.constant 1.000000e+00 : f32
    %201 = vector.broadcast %cst_64 : f32 to vector<8x128xf32>
    %202 = arith.addf %201, %200 : vector<8x128xf32>
    %203 = arith.divf %201, %202 : vector<8x128xf32>
    %204 = vector.extract_strided_slice %197 {offsets = [0, 128], sizes = [8, 128], strides = [1, 1]} : vector<8x512xf32> to vector<8x128xf32>
    %205 = arith.negf %204 : vector<8x128xf32>
    %206 = math.exp %205 : vector<8x128xf32>
    %cst_65 = arith.constant 1.000000e+00 : f32
    %207 = vector.broadcast %cst_65 : f32 to vector<8x128xf32>
    %208 = arith.addf %207, %206 : vector<8x128xf32>
    %209 = arith.divf %207, %208 : vector<8x128xf32>
    %210 = vector.extract_strided_slice %197 {offsets = [0, 256], sizes = [8, 128], strides = [1, 1]} : vector<8x512xf32> to vector<8x128xf32>
    %211 = math.tanh %210 : vector<8x128xf32>
    %212 = vector.extract_strided_slice %197 {offsets = [0, 384], sizes = [8, 128], strides = [1, 1]} : vector<8x512xf32> to vector<8x128xf32>
    %213 = arith.negf %212 : vector<8x128xf32>
    %214 = math.exp %213 : vector<8x128xf32>
    %cst_66 = arith.constant 1.000000e+00 : f32
    %215 = vector.broadcast %cst_66 : f32 to vector<8x128xf32>
    %216 = arith.addf %215, %214 : vector<8x128xf32>
    %217 = arith.divf %215, %216 : vector<8x128xf32>
    %218 = arith.mulf %209, %187 : vector<8x128xf32>
    %219 = arith.mulf %203, %211 : vector<8x128xf32>
    %220 = arith.addf %218, %219 : vector<8x128xf32>
    %221 = math.tanh %220 : vector<8x128xf32>
    %222 = arith.mulf %217, %221 : vector<8x128xf32>
    %223 = arith.index_cast %193 : i32 to index
    %c0_67 = arith.constant 0 : index
    %224 = vector.load %arg15[%223, %c0_67] : memref<64x128xf32, #tpu.memory_space<vmem>>, vector<8x128xf32>
    tpu.vector_store %arg15[%223, %c0_67], %222 {strides = array<i32>} : memref<64x128xf32, #tpu.memory_space<vmem>>, vector<8x128xf32>,
    %c6_i32 = arith.constant 6 : i32
    %c8_i32_68 = arith.constant 8 : i32
    %225 = arith.muli %c6_i32, %c8_i32_68 : i32
    %226 = tpu.assume_multiple %225, 8 : i32
    %227 = arith.index_cast %226 : i32 to index
    %c0_69 = arith.constant 0 : index
    %228 = vector.load %arg14[%227, %c0_69] : memref<64x512xf32, #tpu.memory_space<vmem>>, vector<8x512xf32>
    %cst_70 = arith.constant dense<0.000000e+00> : vector<8x512xf32>
    %229 = tpu.matmul %222, %24, %cst_70 {dimension_numbers = #tpu.dot_dimension_numbers<[1], [0], [0], [1], [0, 0, 1, 1], [], []>} : vector<8x128xf32>, vector<128x512xf32>, vector<8x512xf32> -> vector<8x512xf32>
    %230 = arith.addf %228, %229 : vector<8x512xf32>
    %231 = vector.extract_strided_slice %230 {offsets = [0, 0], sizes = [8, 128], strides = [1, 1]} : vector<8x512xf32> to vector<8x128xf32>
    %232 = arith.negf %231 : vector<8x128xf32>
    %233 = math.exp %232 : vector<8x128xf32>
    %cst_71 = arith.constant 1.000000e+00 : f32
    %234 = vector.broadcast %cst_71 : f32 to vector<8x128xf32>
    %235 = arith.addf %234, %233 : vector<8x128xf32>
    %236 = arith.divf %234, %235 : vector<8x128xf32>
    %237 = vector.extract_strided_slice %230 {offsets = [0, 128], sizes = [8, 128], strides = [1, 1]} : vector<8x512xf32> to vector<8x128xf32>
    %238 = arith.negf %237 : vector<8x128xf32>
    %239 = math.exp %238 : vector<8x128xf32>
    %cst_72 = arith.constant 1.000000e+00 : f32
    %240 = vector.broadcast %cst_72 : f32 to vector<8x128xf32>
    %241 = arith.addf %240, %239 : vector<8x128xf32>
    %242 = arith.divf %240, %241 : vector<8x128xf32>
    %243 = vector.extract_strided_slice %230 {offsets = [0, 256], sizes = [8, 128], strides = [1, 1]} : vector<8x512xf32> to vector<8x128xf32>
    %244 = math.tanh %243 : vector<8x128xf32>
    %245 = vector.extract_strided_slice %230 {offsets = [0, 384], sizes = [8, 128], strides = [1, 1]} : vector<8x512xf32> to vector<8x128xf32>
    %246 = arith.negf %245 : vector<8x128xf32>
    %247 = math.exp %246 : vector<8x128xf32>
    %cst_73 = arith.constant 1.000000e+00 : f32
    %248 = vector.broadcast %cst_73 : f32 to vector<8x128xf32>
    %249 = arith.addf %248, %247 : vector<8x128xf32>
    %250 = arith.divf %248, %249 : vector<8x128xf32>
    %251 = arith.mulf %242, %220 : vector<8x128xf32>
    %252 = arith.mulf %236, %244 : vector<8x128xf32>
    %253 = arith.addf %251, %252 : vector<8x128xf32>
    %254 = math.tanh %253 : vector<8x128xf32>
    %255 = arith.mulf %250, %254 : vector<8x128xf32>
    %256 = arith.index_cast %226 : i32 to index
    %c0_74 = arith.constant 0 : index
    %257 = vector.load %arg15[%256, %c0_74] : memref<64x128xf32, #tpu.memory_space<vmem>>, vector<8x128xf32>
    tpu.vector_store %arg15[%256, %c0_74], %255 {strides = array<i32>} : memref<64x128xf32, #tpu.memory_space<vmem>>, vector<8x128xf32>,
    %c7_i32 = arith.constant 7 : i32
    %c8_i32_75 = arith.constant 8 : i32
    %258 = arith.muli %c7_i32, %c8_i32_75 : i32
    %259 = tpu.assume_multiple %258, 8 : i32
    %260 = arith.index_cast %259 : i32 to index
    %c0_76 = arith.constant 0 : index
    %261 = vector.load %arg14[%260, %c0_76] : memref<64x512xf32, #tpu.memory_space<vmem>>, vector<8x512xf32>
    %cst_77 = arith.constant dense<0.000000e+00> : vector<8x512xf32>
    %262 = tpu.matmul %255, %24, %cst_77 {dimension_numbers = #tpu.dot_dimension_numbers<[1], [0], [0], [1], [0, 0, 1, 1], [], []>} : vector<8x128xf32>, vector<128x512xf32>, vector<8x512xf32> -> vector<8x512xf32>
    %263 = arith.addf %261, %262 : vector<8x512xf32>
    %264 = vector.extract_strided_slice %263 {offsets = [0, 0], sizes = [8, 128], strides = [1, 1]} : vector<8x512xf32> to vector<8x128xf32>
    %265 = arith.negf %264 : vector<8x128xf32>
    %266 = math.exp %265 : vector<8x128xf32>
    %cst_78 = arith.constant 1.000000e+00 : f32
    %267 = vector.broadcast %cst_78 : f32 to vector<8x128xf32>
    %268 = arith.addf %267, %266 : vector<8x128xf32>
    %269 = arith.divf %267, %268 : vector<8x128xf32>
    %270 = vector.extract_strided_slice %263 {offsets = [0, 128], sizes = [8, 128], strides = [1, 1]} : vector<8x512xf32> to vector<8x128xf32>
    %271 = arith.negf %270 : vector<8x128xf32>
    %272 = math.exp %271 : vector<8x128xf32>
    %cst_79 = arith.constant 1.000000e+00 : f32
    %273 = vector.broadcast %cst_79 : f32 to vector<8x128xf32>
    %274 = arith.addf %273, %272 : vector<8x128xf32>
    %275 = arith.divf %273, %274 : vector<8x128xf32>
    %276 = vector.extract_strided_slice %263 {offsets = [0, 256], sizes = [8, 128], strides = [1, 1]} : vector<8x512xf32> to vector<8x128xf32>
    %277 = math.tanh %276 : vector<8x128xf32>
    %278 = vector.extract_strided_slice %263 {offsets = [0, 384], sizes = [8, 128], strides = [1, 1]} : vector<8x512xf32> to vector<8x128xf32>
    %279 = arith.negf %278 : vector<8x128xf32>
    %280 = math.exp %279 : vector<8x128xf32>
    %cst_80 = arith.constant 1.000000e+00 : f32
    %281 = vector.broadcast %cst_80 : f32 to vector<8x128xf32>
    %282 = arith.addf %281, %280 : vector<8x128xf32>
    %283 = arith.divf %281, %282 : vector<8x128xf32>
    %284 = arith.mulf %275, %253 : vector<8x128xf32>
    %285 = arith.mulf %269, %277 : vector<8x128xf32>
    %286 = arith.addf %284, %285 : vector<8x128xf32>
    %287 = math.tanh %286 : vector<8x128xf32>
    %288 = arith.mulf %283, %287 : vector<8x128xf32>
    %289 = arith.index_cast %259 : i32 to index
    %c0_81 = arith.constant 0 : index
    %290 = vector.load %arg15[%289, %c0_81] : memref<64x128xf32, #tpu.memory_space<vmem>>, vector<8x128xf32>
    tpu.vector_store %arg15[%289, %c0_81], %288 {strides = array<i32>} : memref<64x128xf32, #tpu.memory_space<vmem>>, vector<8x128xf32>,
    %c8_i32_82 = arith.constant 8 : i32
    %c0_83 = arith.constant 0 : index
    %c0_84 = arith.constant 0 : index
    %291 = vector.load %arg12[%c0_83, %c0_84] : memref<8x128xf32, #tpu.memory_space<vmem>>, vector<8x128xf32>
    tpu.vector_store %arg12[%c0_83, %c0_84], %288 {strides = array<i32>} : memref<8x128xf32, #tpu.memory_space<vmem>>, vector<8x128xf32>,
    %c0_85 = arith.constant 0 : index
    %c0_86 = arith.constant 0 : index
    %292 = vector.load %arg13[%c0_85, %c0_86] : memref<8x128xf32, #tpu.memory_space<vmem>>, vector<8x128xf32>
    tpu.vector_store %arg13[%c0_85, %c0_86], %286 {strides = array<i32>} : memref<8x128xf32, #tpu.memory_space<vmem>>, vector<8x128xf32>,
    %c0_87 = arith.constant 0 : index
    %c0_88 = arith.constant 0 : index
    %293 = vector.load %arg15[%c0_87, %c0_88] : memref<64x128xf32, #tpu.memory_space<vmem>>, vector<64x128xf32>
    %c0_89 = arith.constant 0 : index
    %c0_90 = arith.constant 0 : index
    %294 = vector.load %arg9[%c0_89, %c0_90] : memref<128x128xf32, #tpu.memory_space<vmem>>, vector<128x128xf32>
    %cst_91 = arith.constant dense<0.000000e+00> : vector<64x128xf32>
    %295 = tpu.matmul %293, %294, %cst_91 {dimension_numbers = #tpu.dot_dimension_numbers<[1], [0], [0], [1], [0, 0, 1, 1], [], []>} : vector<64x128xf32>, vector<128x128xf32>, vector<64x128xf32> -> vector<64x128xf32>
    %c0_92 = arith.constant 0 : index
    %c0_93 = arith.constant 0 : index
    %296 = vector.load %arg10[%c0_92, %c0_93] : memref<1x128xf32, #tpu.memory_space<vmem>>, vector<1x128xf32>
    %297 = vector.broadcast %296 : vector<1x128xf32> to vector<64x128xf32>
    %298 = arith.addf %295, %297 : vector<64x128xf32>
    %c0_94 = arith.constant 0 : index
    %c0_95 = arith.constant 0 : index
    %299 = vector.load %arg11[%c0_94, %c0_95] : memref<64x128xf32, #tpu.memory_space<vmem>>, vector<64x128xf32>
    tpu.vector_store %arg11[%c0_94, %c0_95], %298 {strides = array<i32>} : memref<64x128xf32, #tpu.memory_space<vmem>>, vector<64x128xf32>,
    return
  }
  func.func @transform_0(%arg0: i32) -> (i32, i32) {
    %c0_i32 = arith.constant 0 : i32
    %c0_i32_0 = arith.constant 0 : i32
    return %arg0, %c0_i32 : i32, i32
  }
  func.func @transform_1(%arg0: i32) -> (i32, i32) {
    %c0_i32 = arith.constant 0 : i32
    %c0_i32_0 = arith.constant 0 : i32
    %c0_i32_1 = arith.constant 0 : i32
    return %c0_i32, %c0_i32_0 : i32, i32
  }
  func.func @transform_2(%arg0: i32) -> (i32, i32) {
    %c0_i32 = arith.constant 0 : i32
    %c0_i32_0 = arith.constant 0 : i32
    %c0_i32_1 = arith.constant 0 : i32
    return %c0_i32, %c0_i32_0 : i32, i32
  }
  func.func @transform_3(%arg0: i32) -> (i32, i32) {
    %c0_i32 = arith.constant 0 : i32
    %c0_i32_0 = arith.constant 0 : i32
    %c0_i32_1 = arith.constant 0 : i32
    return %c0_i32, %c0_i32_0 : i32, i32
  }
  func.func @transform_4(%arg0: i32) -> (i32, i32) {
    %c0_i32 = arith.constant 0 : i32
    %c0_i32_0 = arith.constant 0 : i32
    %c0_i32_1 = arith.constant 0 : i32
    return %c0_i32, %c0_i32_0 : i32, i32
  }
  func.func @transform_5(%arg0: i32) -> (i32, i32) {
    %c0_i32 = arith.constant 0 : i32
    %c0_i32_0 = arith.constant 0 : i32
    %c0_i32_1 = arith.constant 0 : i32
    return %c0_i32, %c0_i32_0 : i32, i32
  }
  func.func @transform_6(%arg0: i32) -> (i32, i32) {
    %c0_i32 = arith.constant 0 : i32
    %c0_i32_0 = arith.constant 0 : i32
    %c0_i32_1 = arith.constant 0 : i32
    return %c0_i32, %c0_i32_0 : i32, i32
  }
  func.func @transform_7(%arg0: i32) -> (i32, i32) {
    %c0_i32 = arith.constant 0 : i32
    %c0_i32_0 = arith.constant 0 : i32
    %c0_i32_1 = arith.constant 0 : i32
    return %c0_i32, %c0_i32_0 : i32, i32
  }
  func.func @transform_8(%arg0: i32) -> (i32, i32) {
    %c0_i32 = arith.constant 0 : i32
    %c0_i32_0 = arith.constant 0 : i32
    %c0_i32_1 = arith.constant 0 : i32
    return %c0_i32, %c0_i32_0 : i32, i32
  }
  func.func @transform_9(%arg0: i32) -> (i32, i32) {
    %c0_i32 = arith.constant 0 : i32
    %c0_i32_0 = arith.constant 0 : i32
    %c0_i32_1 = arith.constant 0 : i32
    return %c0_i32, %c0_i32_0 : i32, i32
  }
  func.func @transform_10(%arg0: i32) -> (i32, i32) {
    %c0_i32 = arith.constant 0 : i32
    %c0_i32_0 = arith.constant 0 : i32
    return %arg0, %c0_i32 : i32, i32
  }
}

</mosaic_0001>

<bundles_post_ra>
// kernel: tpu_custom_call.1
= control target key start
LH: loop header
LB: loop body
LE: loop exit
PB: predicated region body
PF: predicated region fallthrough
CT: control target
= control target key end

     0   :  { %15 = vsyncpa [#allocation7], 0  ;;  %s4221_s0 = inlined_call_operand.vmem [shape: f32[64,6], index: 0, kind: input, shape index: {}]   ;;  %s4222_s1 = inlined_call_operand.vmem [shape: f32[6,128], index: 1, kind: input, shape index: {}]   ;;  %s4223_s2 = inlined_call_operand.vmem [shape: f32[1,128], index: 2, kind: input, shape index: {}]   ;;  %s4224_s3 = inlined_call_operand.hbm [shape: f32[128,128], index: 3, kind: input, shape index: {}]   ;;  %s4225_s4 = inlined_call_operand.vmem [shape: f32[1,128], index: 4, kind: input, shape index: {}]   ;;  %s4226_s5 = inlined_call_operand.hbm [shape: f32[128,512], index: 5, kind: input, shape index: {}]   ;;  %s4227_s6 = inlined_call_operand.hbm [shape: f32[128,512], index: 6, kind: input, shape index: {}]   ;;  %s4228_s7 = inlined_call_operand.vmem [shape: f32[1,512], index: 7, kind: input, shape index: {}]   ;;  %s4229_s8 = inlined_call_operand.hbm [shape: f32[128,128], index: 8, kind: input, shape index: {}]   ;;  %s4230_s9 = inlined_call_operand.vmem [shape: f32[1,128], index: 9, kind: input, shape index: {}]   ;;  %s4231_s10 = inlined_call_operand.hbm [shape: f32[64,128], index: 10, kind: output, shape index: {}]  }
   0x1   :  { %16 = vsyncpa [#allocation10], 0 }
   0x2   :  { %17 = vsyncpa [#allocation13], 0 }
   0x3   :  { %18 = vsyncpa [#allocation8], 0  ;;  %s3559_s13 = smov [#allocation9]   ;;  %s3441_s17 = scalar_lea.hbm %s4226_s5, 8192 }
   0x4   :  { %s44_s14 = sshll.u32 %s3559_s13, 4  ;;  %p3442_p0 = scmp.ne.s32.totalorder %s4226_s5, %s3441_s17  ;;  %s45_s14 = int_to_ptr.vmem [resolvable:$true] %s44_s14 }
   0x5   :  { %p3445_p1 = scmp.lt.u32.totalorder %s3441_s17, %s4226_s5 }
   0x7   :  { %p3447_p2 = pnand %p3445_p1, %p3442_p0 }
   0x9   :  { %3450 = shalt.err (!%p3447_p2)
}
   0xa   :  { %s3451_s22 = scalar_lea.vmem %s45_s14, 8192  ;;  %p3456_p4 = scmp.lt.s32.totalorder %s45_s14, %s45_s14 }
   0xb   :  { %p3452_p3 = scmp.ne.s32.totalorder %s45_s14, %s3451_s22  ;;  %p3457_p5 = scmp.lt.s32.totalorder %s3451_s22, %s3451_s22 }
   0xd   :  { %p3458_p6 = por %p3457_p5, %p3456_p4 }
   0xf   :  { %p3459_p7 = pnand %p3458_p6, %p3452_p3 }
  0x11   :  { %3462 = shalt.err (!%p3459_p7)
}
  0x12   :  { %s3560_s23 = smov 512   ;;  %s3561_s24 = smov 32  }
  0x13   :  { %50 = dma.hbm_to_vmem [thread:$0]  %s4226_s5, 8192, %s45_s14, [#allocation10], %s3560_s23, %s3560_s23, %s3561_s24  }
  0x14   :  { %s3562_s27 = smov [#allocation6]   ;;  %s3463_s11 = scalar_lea.hbm %s4224_s3, 2048 }
  0x15   :  { %s30_s28 = sshll.u32 %s3562_s27, 4  ;;  %p3464_p8 = scmp.ne.s32.totalorder %s4224_s3, %s3463_s11  ;;  %s31_s28 = int_to_ptr.vmem [resolvable:$true] %s30_s28 }
  0x16   :  { %p3467_p9 = scmp.lt.u32.totalorder %s3463_s11, %s4224_s3 }
  0x18   :  { %p3469_p10 = pnand %p3467_p9, %p3464_p8 }
  0x1a   :  { %3472 = shalt.err (!%p3469_p10)
}
  0x1b   :  { %s3473_s17 = scalar_lea.vmem %s31_s28, 2048  ;;  %p3478_p12 = scmp.lt.s32.totalorder %s31_s28, %s31_s28 }
  0x1c   :  { %p3474_p11 = scmp.ne.s32.totalorder %s31_s28, %s3473_s17  ;;  %p3479_p13 = scmp.lt.s32.totalorder %s3473_s17, %s3473_s17 }
  0x1e   :  { %p3480_p0 = por %p3479_p13, %p3478_p12 }
  0x20   :  { %p3481_p1 = pnand %p3480_p0, %p3474_p11 }
  0x22   :  { %3484 = shalt.err (!%p3481_p1)
}
  0x23   :  { %s3563_s5 = smov 128   ;;  %s3564_s14 = smov 8  }
  0x24   :  { %36 = dma.hbm_to_vmem [thread:$0]  %s4224_s3, 2048, %s31_s28, [#allocation7], %s3563_s5, %s3563_s5, %s3564_s14  }
  0x25   :  { %s3565_s20 = smov [#allocation11]   ;;  %s3566_s22 = smov [#allocation12]  }
  0x26   :  { %s56_s21 = sshll.u32 %s3565_s20, 4  ;;  %s70_s25 = sshll.u32 %s3566_s22, 4  ;;  %s57_s21 = int_to_ptr.vmem [resolvable:$true] %s56_s21  ;;  %s3654_s25 = int_to_ptr.vmem [resolvable:$true] %s70_s25 }
  0x27   :  { %s3485_s29 = scalar_lea.hbm %s4227_s6, 8192 }
  0x28   :  { %p3486_p2 = scmp.ne.s32.totalorder %s4227_s6, %s3485_s29  ;;  %p3489_p3 = scmp.lt.u32.totalorder %s3485_s29, %s4227_s6 }
  0x2a   :  { %p3491_p4 = pnand %p3489_p3, %p3486_p2 }
  0x2c   :  { %3494 = shalt.err (!%p3491_p4)
}
  0x2d   :  { %s3495_s3 = scalar_lea.vmem %s57_s21, 8192  ;;  %p3500_p6 = scmp.lt.s32.totalorder %s57_s21, %s57_s21 }
  0x2e   :  { %p3496_p5 = scmp.ne.s32.totalorder %s57_s21, %s3495_s3  ;;  %p3501_p7 = scmp.lt.s32.totalorder %s3495_s3, %s3495_s3 }
  0x30   :  { %p3502_p8 = por %p3501_p7, %p3500_p6 }
  0x32   :  { %p3503_p9 = pnand %p3502_p8, %p3496_p5 }
  0x34   :  { %3506 = shalt.err (!%p3503_p9)
}
  0x35   :  { %62 = dma.hbm_to_vmem [thread:$0]  %s4227_s6, 8192, %s57_s21, [#allocation10], %s3560_s23, %s3560_s23, %s3561_s24  }
  0x36   :  { %s3507_s18 = scalar_lea.hbm %s4229_s8, 2048 }
  0x37   :  { %p3508_p10 = scmp.ne.s32.totalorder %s4229_s8, %s3507_s18  ;;  %p3511_p11 = scmp.lt.u32.totalorder %s3507_s18, %s4229_s8 }
  0x39   :  { %p3513_p12 = pnand %p3511_p11, %p3508_p10 }
  0x3b   :  { %3516 = shalt.err (!%p3513_p12)
}
  0x3c   :  { %s3517_s27 = scalar_lea.vmem %s3654_s25, 2048  ;;  %p3522_p0 = scmp.lt.s32.totalorder %s3654_s25, %s3654_s25 }
  0x3d   :  { %p3518_p13 = scmp.ne.s32.totalorder %s3654_s25, %s3517_s27  ;;  %p3523_p1 = scmp.lt.s32.totalorder %s3517_s27, %s3517_s27 }
  0x3f   :  { %p3524_p2 = por %p3523_p1, %p3522_p0 }
  0x41   :  { %p3525_p3 = pnand %p3524_p2, %p3518_p13 }
  0x43   :  { %3528 = shalt.err (!%p3525_p3)
}
  0x44   :  { %76 = dma.hbm_to_vmem [thread:$0]  %s4229_s8, 2048, %s3654_s25, [#allocation13], %s3563_s5, %s3563_s5, %s3564_s14  }
  0x45   :  { %3551 = dma.done.wait [#allocation7], 2048  }
  0x46   :  { %3552 = vsyncadd [#allocation7], 4294965248 }
  0x47   :  { %3553 = dma.done.wait [#allocation10], 16384  }
  0x48   :  { %3554 = vsyncadd [#allocation10], 4294950912 }
  0x49   :  { %3555 = dma.done.wait [#allocation13], 2048  }
  0x4a   :  { %3556 = vsyncadd [#allocation13], 4294965248  ;;  %vm138_vm0 = vcmask 1045504   ;;  %vm113_vm1 = vcmask 48128   ;;  %v105_v0 = vld [vmem:[%s4222_s1] sm:$0x3f] }
  0x4b   :  { %v97_v1 = vld [vmem:[%s4221_s0] sm:$0xff]  ;;  %v98_v2 = vld [vmem:[%s4221_s0 + $0x8] sm:$0xff]  ;;  %2497 = vmatprep.subr.msk.mxu1 %vm138_vm0, %v105_v0  ;;  %v99_v3 = vld [vmem:[%s4221_s0 + $0x10] sm:$0xff] }
  0x4c   :  { %2499 = vmatprep.mubr.msk.f32.mxu1 %vm113_vm1, %v97_v1  ;;  %2498 = vmatpush3.msk.msra.mxu1 %vm138_vm0, %v105_v0  ;;  %v255_v4 = vld [vmem:[#allocation6] sm:$0xff]  ;;  %v256_v5 = vld [vmem:[#allocation6 + $0x8] sm:$0xff]  ;;  %v257_v6 = vld [vmem:[#allocation6 + $0x10] sm:$0xff] }
  0x4d   :  { %2500 = vmatmul.mubr.msk.f32.vlgmr.msra.gmra.mrb[0].mxu1 %vm113_vm1, %v98_v2  ;;  %v100_v7 = vld [vmem:[%s4221_s0 + $0x18] sm:$0xff]  ;;  %v2599_v8 = vpack.c.bf16 %v256_v5, %v255_v4  ;;  %v258_v9 = vld [vmem:[#allocation6 + $0x18] sm:$0xff]  ;;  %v259_v12 = vld [vmem:[#allocation6 + $0x20] sm:$0xff] }
  0x4e   :  { %2502 = vmatprep.mubr.msk.f32.mxu1 %vm113_vm1, %v99_v3  ;;  %v101_v10 = vld [vmem:[%s4221_s0 + $0x20] sm:$0xff]  ;;  %v2603_v11 = vpack.c.bf16 %v258_v9, %v257_v6  ;;  %v260_v13 = vld [vmem:[#allocation6 + $0x28] sm:$0xff]  ;;  %v102_v14 = vld [vmem:[%s4221_s0 + $0x28] sm:$0xff] }
  0x4f   :  { %2600 = vmatprep.subr.bf16.mxu1 %v2599_v8  ;;  %v103_v15 = vld [vmem:[%s4221_s0 + $0x30] sm:$0xff]  ;;  %v2607_v16 = vpack.c.bf16 %v260_v13, %v259_v12  ;;  %v261_v17 = vld [vmem:[#allocation6 + $0x30] sm:$0xff]  ;;  %v262_v18 = vld [vmem:[#allocation6 + $0x38] sm:$0xff] }
  0x50   :  { %2602 = vmatpush3.bf16.msra.mxu1 %v2599_v8  ;;  %v104_v19 = vld [vmem:[%s4221_s0 + $0x38] sm:$0xff]  ;;  %v2611_v20 = vpack.c.bf16 %v262_v18, %v261_v17  ;;  %v263_v21 = vld [vmem:[#allocation6 + $0x40] sm:$0xff]  ;;  %v264_v22 = vld [vmem:[#allocation6 + $0x48] sm:$0xff] }
  0x51   :  { %2503 = vmatmul.mubr.msk.f32.gmra.mrb[2].mxu1 %vm113_vm1, %v100_v7  ;;  %2604 = vmatprep.subr.bf16.mxu1 %v2603_v11  ;;  %v2615_v23 = vpack.c.bf16 %v264_v22, %v263_v21  ;;  %v265_v24 = vld [vmem:[#allocation6 + $0x50] sm:$0xff]  ;;  %v266_v25 = vld [vmem:[#allocation6 + $0x58] sm:$0xff]  ;;  %v267_v27 = vld [vmem:[#allocation6 + $0x60] sm:$0xff] }
  0x52   :  { %2505 = vmatprep.mubr.msk.f32.mxu1 %vm113_vm1, %v101_v10  ;;  %v2619_v26 = vpack.c.bf16 %v266_v25, %v265_v24  ;;  %v268_v28 = vld [vmem:[#allocation6 + $0x68] sm:$0xff]  ;;  %v269_v30 = vld [vmem:[#allocation6 + $0x70] sm:$0xff]  ;;  %v270_v31 = vld [vmem:[#allocation6 + $0x78] sm:$0xff] }
  0x53   :  { %v2623_v29 = vpack.c.bf16 %v268_v28, %v267_v27  ;;  %v2627_v32 = vpack.c.bf16 %v270_v31, %v269_v30  ;;  %v392_v33 = vld [vmem:[#allocation9 + $0x8] sm:$0xff]  ;;  %v391_v35 = vld [vmem:[#allocation9] sm:$0xff]  ;;  %v394_v38 = vld [vmem:[#allocation9 + $0x18] sm:$0xff] }
  0x54   :  { %2606 = vmatpush3.bf16.msra.mxu1 %v2603_v11  ;;  %v396_v34 = vld [vmem:[#allocation9 + $0x28] sm:$0xff]  ;;  %v395_v37 = vld [vmem:[#allocation9 + $0x20] sm:$0xff]  ;;  %v398_v39 = vld [vmem:[#allocation9 + $0x38] sm:$0xff] }
  0x55   :  { %2506 = vmatmul.mubr.msk.f32.gmra.mrb[4].mxu1 %vm113_vm1, %v102_v14  ;;  %2608 = vmatprep.subr.bf16.mxu1 %v2607_v16  ;;  %v2631_v36 = vpack.c.bf16 %v396_v34, %v392_v33  ;;  %v2633_v40 = vpack.c.bf16 %v395_v37, %v391_v35  ;;  %v2663_v41 = vpack.c.bf16 %v398_v39, %v394_v38  ;;  %v400_v42 = vld [vmem:[#allocation9 + $0x48] sm:$0xff]  ;;  %v399_v44 = vld [vmem:[#allocation9 + $0x40] sm:$0xff]  ;;  %v2404_v14 = vld [vmem:[%s4223_s2] ss:$0 sm:$0xff] }
  0x56   :  { %2508 = vmatprep.mubr.msk.f32.mxu1 %vm113_vm1, %v103_v15  ;;  %v404_v43 = vld [vmem:[#allocation9 + $0x68] sm:$0xff]  ;;  %v403_v45 = vld [vmem:[#allocation9 + $0x60] sm:$0xff]  ;;  %v393_v18 = vld [vmem:[#allocation9 + $0x10] sm:$0xff] }
  0x57   :  { %2632 = vmatprep.subr.bf16.mxu0 %v2631_v36  ;;  %v2635_v46 = vpack.c.bf16 %v404_v43, %v400_v42  ;;  %v2637_v47 = vpack.c.bf16 %v403_v45, %v399_v44  ;;  %v408_v48 = vld [vmem:[#allocation9 + $0x88] sm:$0xff]  ;;  %v407_v51 = vld [vmem:[#allocation9 + $0x80] sm:$0xff]  ;;  %v402_v21 = vld [vmem:[#allocation9 + $0x58] sm:$0xff] }
  0x58   :  { %2610 = vmatpush3.bf16.msra.mxu1 %v2607_v16  ;;  %2634 = vmatpush1.bf16.msra.mxu0 %v2633_v40  ;;  %v412_v49 = vld [vmem:[#allocation9 + $0xa8] sm:$0xff]  ;;  %v411_v52 = vld [vmem:[#allocation9 + $0xa0] sm:$0xff]  ;;  %v406_v22 = vld [vmem:[#allocation9 + $0x78] sm:$0xff] }
  0x59   :  { %2509 = vmatmul.mubr.msk.f32.gmra.mrb[6].mxu1 %vm113_vm1, %v104_v19  ;;  %2612 = vmatprep.subr.bf16.mxu1 %v2611_v20  ;;  %v2639_v50 = vpack.c.bf16 %v412_v49, %v408_v48  ;;  %v2641_v53 = vpack.c.bf16 %v411_v52, %v407_v51  ;;  %v416_v54 = vld [vmem:[#allocation9 + $0xc8] sm:$0xff]  ;;  %v415_v57 = vld [vmem:[#allocation9 + $0xc0] sm:$0xff]  ;;  %v397_v19 = vld [vmem:[#allocation9 + $0x30] sm:$0xff] }
  0x5a   :  { %2636 = vmatprep.subr.bf16.mxu0 %v2635_v46  ;;  %v420_v55 = vld [vmem:[#allocation9 + $0xe8] sm:$0xff]  ;;  %v419_v58 = vld [vmem:[#allocation9 + $0xe0] sm:$0xff]  ;;  %v2665_v25 = vpack.c.bf16 %v397_v19, %v393_v18  ;;  %v401_v30 = vld [vmem:[#allocation9 + $0x50] sm:$0xff] }
  0x5b   :  { %v2643_v56 = vpack.c.bf16 %v420_v55, %v416_v54  ;;  %v424_v59 = vld [vmem:[#allocation9 + $0x108] sm:$0xff]  ;;  %v2645_v61 = vpack.c.bf16 %v419_v58, %v415_v57  ;;  %v423_v63 = vld [vmem:[#allocation9 + $0x100] sm:$0xff]  ;;  %v405_v31 = vld [vmem:[#allocation9 + $0x70] sm:$0xff] }
  0x5c   :  { %2614 = vmatpush3.bf16.msra.mxu1 %v2611_v20  ;;  %2638 = vmatpush1.bf16.msra.mxu0 %v2637_v47  ;;  %v428_v60 = vld [vmem:[#allocation9 + $0x128] sm:$0xff]  ;;  %v427_v0 = vld [vmem:[#allocation9 + $0x120] sm:$0xff]  ;;  %v410_v33 = vld [vmem:[#allocation9 + $0x98] sm:$0xff]  ;;  %v2669_v38 = vpack.c.bf16 %v405_v31, %v401_v30  ;;  %v3567_v31 = vmov 0.0  }
  0x5d   :  { %2616 = vmatprep.subr.bf16.mxu1 %v2615_v23  ;;  %2640 = vmatprep.subr.bf16.mxu0 %v2639_v50  ;;  %v2647_v62 = vpack.c.bf16 %v428_v60, %v424_v59  ;;  %v432_v1 = vld [vmem:[#allocation9 + $0x148] sm:$0xff]  ;;  %v2649_v3 = vpack.c.bf16 %v427_v0, %v423_v63  ;;  %v431_v5 = vld [vmem:[#allocation9 + $0x140] sm:$0xff]  ;;  %v414_v34 = vld [vmem:[#allocation9 + $0xb8] sm:$0xff] }
  0x5e   :  { %v436_v2 = vld [vmem:[#allocation9 + $0x168] sm:$0xff]  ;;  %v435_v6 = vld [vmem:[#allocation9 + $0x160] sm:$0xff]  ;;  %v409_v42 = vld [vmem:[#allocation9 + $0x90] sm:$0xff]  ;;  %541 = vmatprep.mubr.f32.mxu0 %v3567_v31 }
  0x5f   :  { %v2651_v4 = vpack.c.bf16 %v436_v2, %v432_v1  ;;  %v440_v7 = vld [vmem:[#allocation9 + $0x188] sm:$0xff]  ;;  %v2653_v9 = vpack.c.bf16 %v435_v6, %v431_v5  ;;  %v439_v11 = vld [vmem:[#allocation9 + $0x180] sm:$0xff]  ;;  %v413_v43 = vld [vmem:[#allocation9 + $0xb0] sm:$0xff] }
  0x60   :  { %2618 = vmatpush3.bf16.msra.mxu1 %v2615_v23  ;;  %2642 = vmatpush1.bf16.msra.mxu0 %v2641_v53  ;;  %v444_v8 = vld [vmem:[#allocation9 + $0x1a8] sm:$0xff]  ;;  %v443_v12 = vld [vmem:[#allocation9 + $0x1a0] sm:$0xff]  ;;  %v418_v45 = vld [vmem:[#allocation9 + $0xd8] sm:$0xff]  ;;  %v2673_v50 = vpack.c.bf16 %v413_v43, %v409_v42 }
  0x61   :  { %2620 = vmatprep.subr.bf16.mxu1 %v2619_v26  ;;  %2644 = vmatprep.subr.bf16.mxu0 %v2643_v56  ;;  %v2655_v10 = vpack.c.bf16 %v444_v8, %v440_v7  ;;  %v2657_v13 = vpack.c.bf16 %v443_v12, %v439_v11  ;;  %v422_v46 = vld [vmem:[#allocation9 + $0xf8] sm:$0xff]  ;;  %v417_v54 = vld [vmem:[#allocation9 + $0xd0] sm:$0xff]  ;;  %v447_v18 = vld [vmem:[#allocation9 + $0x1c0] sm:$0xff] }
  0x62   :  { %v2675_v53 = vpack.c.bf16 %v422_v46, %v418_v45  ;;  %v421_v55 = vld [vmem:[#allocation9 + $0xf0] sm:$0xff]  ;;  %v426_v57 = vld [vmem:[#allocation9 + $0x118] sm:$0xff]  ;;  %v451_v19 = vld [vmem:[#allocation9 + $0x1e0] sm:$0xff] }
  0x63   :  { %v430_v58 = vld [vmem:[#allocation9 + $0x138] sm:$0xff]  ;;  %v425_v63 = vld [vmem:[#allocation9 + $0x110] sm:$0xff]  ;;  %v748_v42 = vld [vmem:[#allocation11 + $0x68] sm:$0xff] }
  0x64   :  { %2622 = vmatpush3.bf16.msra.mxu1 %v2619_v26  ;;  %2646 = vmatpush1.bf16.msra.mxu0 %v2645_v61  ;;  %v2677_v61 = vpack.c.bf16 %v421_v55, %v417_v54  ;;  %v429_v0 = vld [vmem:[#allocation9 + $0x130] sm:$0xff]  ;;  %v434_v1 = vld [vmem:[#allocation9 + $0x158] sm:$0xff] }
  0x65   :  { %2624 = vmatprep.subr.bf16.mxu1 %v2623_v29  ;;  %2648 = vmatprep.subr.bf16.mxu0 %v2647_v62  ;;  %v2679_v62 = vpack.c.bf16 %v430_v58, %v426_v57  ;;  %v438_v2 = vld [vmem:[#allocation9 + $0x178] sm:$0xff]  ;;  %v433_v5 = vld [vmem:[#allocation9 + $0x150] sm:$0xff]  ;;  %v752_v57 = vld [vmem:[#allocation11 + $0x88] sm:$0xff] }
  0x66   :  { %v437_v6 = vld [vmem:[#allocation9 + $0x170] sm:$0xff]  ;;  %v442_v7 = vld [vmem:[#allocation9 + $0x198] sm:$0xff]  ;;  %v756_v58 = vld [vmem:[#allocation11 + $0xa8] sm:$0xff] }
  0x67   :  { %v446_v8 = vld [vmem:[#allocation9 + $0x1b8] sm:$0xff]  ;;  %v441_v11 = vld [vmem:[#allocation9 + $0x190] sm:$0xff] }
  0x68   :  { %2626 = vmatpush3.bf16.msra.mxu1 %v2623_v29  ;;  %2650 = vmatpush1.bf16.msra.mxu0 %v2649_v3  ;;  %v2667_v29 = vpack.c.bf16 %v406_v22, %v402_v21  ;;  %v2681_v3 = vpack.c.bf16 %v429_v0, %v425_v63  ;;  %v445_v12 = vld [vmem:[#allocation9 + $0x1b0] sm:$0xff]  ;;  %v454_v21 = vld [vmem:[#allocation9 + $0x1f8] sm:$0xff]  ;;  %v751_v63 = vld [vmem:[#allocation11 + $0x80] sm:$0xff] }
  0x69   :  { %2628 = vmatprep.subr.bf16.mxu1 %v2627_v32  ;;  %2652 = vmatprep.subr.bf16.mxu0 %v2651_v4  ;;  %v2683_v4 = vpack.c.bf16 %v438_v2, %v434_v1  ;;  %v449_v22 = vld [vmem:[#allocation9 + $0x1d0] sm:$0xff]  ;;  %v742_v30 = vld [vmem:[#allocation11 + $0x38] sm:$0xff] }
  0x6a   :  { %v746_v43 = vld [vmem:[#allocation11 + $0x58] sm:$0xff] }
  0x6c   :  { %2630 = vmatpush3.bf16.msra.mxu1 %v2627_v32  ;;  %2654 = vmatpush1.bf16.msra.mxu0 %v2653_v9  ;;  %v2685_v9 = vpack.c.bf16 %v437_v6, %v433_v5  ;;  %v757_v5 = vld [vmem:[#allocation11 + $0xb0] sm:$0xff]  ;;  %v3765_v6 = vpack.c.bf16 %v756_v58, %v752_v57 }
  0x6d   :  { %2664 = vmatprep.subr.bf16.mxu1 %v2663_v41  ;;  %2656 = vmatprep.subr.bf16.mxu0 %v2655_v10  ;;  %v2671_v41 = vpack.c.bf16 %v414_v34, %v410_v33  ;;  %v2687_v10 = vpack.c.bf16 %v446_v8, %v442_v7  ;;  %v3740_v33 = vld [vmem:[%s4225_s4] ss:$0 sm:$0xff]  ;;  %v735_v34 = vld [vmem:[#allocation11] sm:$0xff]  ;;  %v777_v57 = vld [vmem:[#allocation11 + $0x150] sm:$0xff] }
  0x6e   :  { %v781_v58 = vld [vmem:[#allocation11 + $0x170] sm:$0xff] }
  0x70   :  { %2658 = vmatpush1.bf16.msra.mxu0 %v2657_v13  ;;  %v2689_v13 = vpack.c.bf16 %v445_v12, %v441_v11  ;;  %v762_v11 = vld [vmem:[#allocation11 + $0xd8] sm:$0xff] }
  0x71   :  { %v766_v12 = vld [vmem:[#allocation11 + $0xf8] sm:$0xff] }
 0x120   :  { %v2501_v15 = vpop.f32.mrb[0].mxu1 }
 0x121   :  { %v214_v16 = vadd.f32 %v2501_v15, %v2404_v14  ;;  %v208_v17 = vpop.f32.mrb[1].mxu1  ;;  %v452_v15 = vld [vmem:[#allocation9 + $0x1e8] sm:$0xff] }
 0x122   :  { %v209_v20 = vadd.f32 %v2404_v14, %v208_v17 }
 0x123   :  { %v248_v26 = vmax.f32 %v214_v16, 0.0  ;;  %v450_v16 = vld [vmem:[#allocation9 + $0x1d8] sm:$0xff] }
 0x124   :  { %v247_v23 = vmax.f32 %v209_v20, 0.0  ;;  %v2504_v24 = vpop.f32.mrb[2].mxu1  ;;  %v2661_v20 = vpack.c.bf16 %v451_v19, %v447_v18  ;;  %v763_v18 = vld [vmem:[#allocation11 + $0xe0] sm:$0xff]  ;;  %v761_v19 = vld [vmem:[#allocation11 + $0xd0] sm:$0xff] }
 0x125   :  { %v224_v27 = vadd.f32 %v2504_v24, %v2404_v14  ;;  %v218_v28 = vpop.f32.mrb[3].mxu1  ;;  %v2691_v24 = vpack.c.bf16 %v454_v21, %v450_v16 }
 0x126   :  { %v219_v32 = vadd.f32 %v2404_v14, %v218_v28  ;;  %2543 = vmatprep.mubr.f32.mxu1 %v247_v23  ;;  %v453_v23 = vld [vmem:[#allocation9 + $0x1f0] sm:$0xff]  ;;  %v738_v28 = vld [vmem:[#allocation11 + $0x18] sm:$0xff] }
 0x127   :  { %v250_v35 = vmax.f32 %v224_v27, 0.0  ;;  %2544 = vmatmul.mubr.f32.vlgmr.msra.gmra.mrb[8].mxu1 %v248_v26  ;;  %v736_v26 = vld [vmem:[#allocation11 + $0x8] sm:$0xff] }
 0x128   :  { %v249_v36 = vmax.f32 %v219_v32, 0.0  ;;  %v2507_v37 = vpop.f32.mrb[4].mxu1  ;;  %2666 = vmatpush1.bf16.msra.mxu1 %v2665_v25  ;;  %v2693_v25 = vpack.c.bf16 %v453_v23, %v449_v22  ;;  %v740_v27 = vld [vmem:[#allocation11 + $0x28] sm:$0xff]  ;;  %v3732_v32 = vpack.c.bf16 %v742_v30, %v738_v28  ;;  %v3784_v23 = vpack.c.bf16 %v766_v12, %v762_v11  ;;  %v774_v28 = vld [vmem:[#allocation11 + $0x138] sm:$0xff]  ;;  %v785_v11 = vld [vmem:[#allocation11 + $0x190] sm:$0xff] }
 0x129   :  { %v234_v39 = vadd.f32 %v2507_v37, %v2404_v14  ;;  %v228_v40 = vpop.f32.mrb[5].mxu1  ;;  %2668 = vmatprep.subr.bf16.mxu1 %v2667_v29  ;;  %v3729_v29 = vpack.c.bf16 %v740_v27, %v736_v26  ;;  %v737_v37 = vld [vmem:[#allocation11 + $0x10] sm:$0xff]  ;;  %v772_v26 = vld [vmem:[#allocation11 + $0x128] sm:$0xff]  ;;  %v770_v27 = vld [vmem:[#allocation11 + $0x118] sm:$0xff] }
 0x12a   :  { %2546 = vmatprep.mubr.f32.mxu1 %v249_v36  ;;  %v229_v44 = vadd.f32 %v2404_v14, %v228_v40  ;;  %v739_v36 = vld [vmem:[#allocation11 + $0x20] sm:$0xff]  ;;  %v744_v40 = vld [vmem:[#allocation11 + $0x48] sm:$0xff]  ;;  %v789_v12 = vld [vmem:[#allocation11 + $0x1b0] sm:$0xff] }
 0x12b   :  { %2547 = vmatmul.mubr.f32.gmra.mrb[10].mxu1 %v250_v35  ;;  %v252_v47 = vmax.f32 %v234_v39, 0.0  ;;  %v3743_v45 = vpack.c.bf16 %v739_v36, %v735_v34  ;;  %v3748_v55 = vpack.c.bf16 %v748_v42, %v744_v40  ;;  %v773_v40 = vld [vmem:[#allocation11 + $0x130] sm:$0xff]  ;;  %v3799_v42 = vpack.c.bf16 %v774_v28, %v770_v27 }
 0x12c   :  { %v251_v48 = vmax.f32 %v229_v44, 0.0  ;;  %v2510_v49 = vpop.f32.mrb[6].mxu1  ;;  %2670 = vmatpush1.bf16.msra.mxu1 %v2669_v38  ;;  %v741_v38 = vld [vmem:[#allocation11 + $0x30] sm:$0xff]  ;;  %v750_v44 = vld [vmem:[#allocation11 + $0x78] sm:$0xff] }
 0x12d   :  { %v244_v51 = vadd.f32 %v2510_v49, %v2404_v14  ;;  %v238_v52 = vpop.f32.mrb[7].mxu1  ;;  %2672 = vmatprep.subr.bf16.mxu1 %v2671_v41  ;;  %v3745_v46 = vpack.c.bf16 %v741_v38, %v737_v37  ;;  %v771_v38 = vld [vmem:[#allocation11 + $0x120] sm:$0xff] }
 0x12e   :  { %2549 = vmatprep.mubr.f32.mxu1 %v251_v48  ;;  %v239_v56 = vadd.f32 %v2404_v14, %v238_v52  ;;  %v448_v14 = vld [vmem:[#allocation9 + $0x1c8] sm:$0xff]  ;;  %v745_v52 = vld [vmem:[#allocation11 + $0x50] sm:$0xff] }
 0x12f   :  { %2550 = vmatmul.mubr.f32.gmra.mrb[12].mxu1 %v252_v47  ;;  %v254_v59 = vmax.f32 %v244_v51, 0.0  ;;  %v2659_v17 = vpack.c.bf16 %v452_v15, %v448_v14  ;;  %v743_v47 = vld [vmem:[#allocation11 + $0x40] sm:$0xff] }
 0x130   :  { %v253_v60 = vmax.f32 %v239_v56, 0.0  ;;  %2674 = vmatpush1.bf16.msra.mxu1 %v2673_v50  ;;  %v747_v51 = vld [vmem:[#allocation11 + $0x60] sm:$0xff]  ;;  %v3750_v56 = vpack.c.bf16 %v750_v44, %v746_v43  ;;  %v776_v43 = vld [vmem:[#allocation11 + $0x148] sm:$0xff] }
 0x131   :  { %2676 = vmatprep.subr.bf16.mxu1 %v2675_v53  ;;  %2660 = vmatprep.subr.bf16.mxu0 %v2659_v17  ;;  %v749_v53 = vld [vmem:[#allocation11 + $0x70] sm:$0xff]  ;;  %v759_v15 = vld [vmem:[#allocation11 + $0xc0] sm:$0xff]  ;;  %v780_v44 = vld [vmem:[#allocation11 + $0x168] sm:$0xff] }
 0x132   :  { %2552 = vmatprep.mubr.f32.mxu1 %v253_v60  ;;  %2662 = vmatpush1.bf16.msra.mxu0 %v2661_v20  ;;  %v758_v60 = vld [vmem:[#allocation11 + $0xb8] sm:$0xff]  ;;  %v765_v20 = vld [vmem:[#allocation11 + $0xf0] sm:$0xff]  ;;  %v3788_v30 = vpack.c.bf16 %v763_v18, %v759_v15  ;;  %v796_v18 = vld [vmem:[#allocation11 + $0x1e8] sm:$0xff] }
 0x133   :  { %2553 = vmatmul.mubr.f32.gmra.mrb[14].mxu1 %v254_v59  ;;  %2696 = vmatprep.subr.bf16.mxu0 %v3729_v29  ;;  %v754_v59 = vld [vmem:[#allocation11 + $0x98] sm:$0xff]  ;;  %v3790_v34 = vpack.c.bf16 %v765_v20, %v761_v19 }
 0x134   :  { %2678 = vmatpush1.bf16.msra.mxu1 %v2677_v61  ;;  %654 = vmatprep.mubr.f32.mxu1 %v3567_v31  ;;  %v3754_v61 = vpack.c.bf16 %v747_v51, %v743_v47  ;;  %v3767_v8 = vpack.c.bf16 %v758_v60, %v754_v59  ;;  %v778_v47 = vld [vmem:[#allocation11 + $0x158] sm:$0xff]  ;;  %v775_v51 = vld [vmem:[#allocation11 + $0x140] sm:$0xff]  ;;  %v3813_v59 = vpack.c.bf16 %v780_v44, %v776_v43  ;;  %v457_v43 = vlaneseq }
 0x135   :  { %2680 = vmatprep.subr.bf16.mxu1 %v2679_v62  ;;  %v3756_v62 = vpack.c.bf16 %v749_v53, %v745_v52  ;;  %v794_v19 = vld [vmem:[#allocation11 + $0x1d8] sm:$0xff] }
 0x136   :  { %v798_v20 = vld [vmem:[#allocation11 + $0x1f8] sm:$0xff]  ;;  %v458_v44 = vshrl.u32 %v457_v43, 7 }
 0x138   :  { %2682 = vmatpush1.bf16.msra.mxu1 %v2681_v3  ;;  %v755_v3 = vld [vmem:[#allocation11 + $0xa0] sm:$0xff] }
 0x139   :  { %2684 = vmatprep.subr.bf16.mxu1 %v2683_v4  ;;  %v753_v4 = vld [vmem:[#allocation11 + $0x90] sm:$0xff] }
 0x13a   :  { %v3773_v14 = vpack.c.bf16 %v757_v5, %v753_v4  ;;  %v3821_v4 = vpack.c.bf16 %v781_v58, %v777_v57  ;;  %v783_v5 = vld [vmem:[#allocation11 + $0x180] sm:$0xff]  ;;  %v471_v58 = vsub.s32 3, %v458_v44 }
 0x13c   :  { %2686 = vmatpush1.bf16.msra.mxu1 %v2685_v9  ;;  %v760_v9 = vld [vmem:[#allocation11 + $0xc8] sm:$0xff] }
 0x13d   :  { %2688 = vmatprep.subr.bf16.mxu1 %v2687_v10  ;;  %v764_v10 = vld [vmem:[#allocation11 + $0xe8] sm:$0xff] }
 0x13e   :  { %v3782_v22 = vpack.c.bf16 %v764_v10, %v760_v9  ;;  %v787_v10 = vld [vmem:[#allocation11 + $0x1a0] sm:$0xff] }
 0x140   :  { %2690 = vmatpush1.bf16.msra.mxu1 %v2689_v13  ;;  %v3771_v13 = vpack.c.bf16 %v755_v3, %v751_v63  ;;  %v784_v63 = vld [vmem:[#allocation11 + $0x188] sm:$0xff] }
 0x141   :  { %2692 = vmatprep.subr.bf16.mxu1 %v2691_v24  ;;  %v768_v24 = vld [vmem:[#allocation11 + $0x108] sm:$0xff] }
 0x144   :  { %2694 = vmatpush1.bf16.msra.mxu1 %v2693_v25 }
 0x145   :  { %2728 = vmatprep.subr.bf16.mxu1 %v3732_v32 }
 0x1fa   :  { %v2545_v35 = vpop.f32.mrb[8].mxu1 }
 0x1fb   :  { %v344_v39 = vpop.f32.mrb[9].mxu1  ;;  %v350_v48 = vadd.f32 %v2545_v35, %v3740_v33  ;;  %v767_v35 = vld [vmem:[#allocation11 + $0x100] sm:$0xff] }
 0x1fc   :  { %v345_v41 = vadd.f32 %v3740_v33, %v344_v39  ;;  %v769_v39 = vld [vmem:[#allocation11 + $0x110] sm:$0xff] }
 0x1fd   :  { %v384_v0 = vmax.f32 %v350_v48, 0.0  ;;  %v782_v48 = vld [vmem:[#allocation11 + $0x178] sm:$0xff] }
 0x1fe   :  { %v383_v49 = vmax.f32 %v345_v41, 0.0  ;;  %v2548_v50 = vpop.f32.mrb[10].mxu1  ;;  %v3797_v41 = vpack.c.bf16 %v772_v26, %v768_v24  ;;  %v3815_v60 = vpack.c.bf16 %v782_v48, %v778_v47  ;;  %v3834_v24 = vpack.c.bf16 %v787_v10, %v783_v5  ;;  %v791_v26 = vld [vmem:[#allocation11 + $0x1c0] sm:$0xff]  ;;  %v455_v48 = vld [vmem:[%s4228_s7] sm:$0xf] }
 0x1ff   :  { %v354_v54 = vpop.f32.mrb[11].mxu1  ;;  %v360_v16 = vadd.f32 %v2548_v50, %v3740_v33  ;;  %v3805_v50 = vpack.c.bf16 %v773_v40, %v769_v39  ;;  %v3846_v39 = vpack.c.bf16 %v798_v20, %v794_v19  ;;  %v459_v47 = vsub.s32 0, %v458_v44 }
 0x200   :  { %542 = vmatmul.mubr.f32.vlgmr.msra.gmra.mrb[0].mxu0 %v383_v49  ;;  %655 = vmatmul.mubr.f32.vlgmr.msra.gmra.mrb[16].mxu1 %v383_v49  ;;  %v355_v1 = vadd.f32 %v3740_v33, %v354_v54  ;;  %v3803_v49 = vpack.c.bf16 %v771_v38, %v767_v35  ;;  %v779_v54 = vld [vmem:[#allocation11 + $0x160] sm:$0xff]  ;;  %v467_v10 = vsub.s32 2, %v458_v44 }
 0x201   :  { %2698 = vmatpush1.bf16.msra.mxu0 %v3743_v45  ;;  %2730 = vmatpush1.bf16.msra.mxu1 %v3745_v46  ;;  %v386_v36 = vmax.f32 %v360_v16, 0.0  ;;  %v3819_v3 = vpack.c.bf16 %v779_v54, %v775_v51  ;;  %v795_v35 = vld [vmem:[#allocation11 + $0x1e0] sm:$0xff]  ;;  %v463_v51 = vsub.s32 1, %v458_v44 }
 0x202   :  { %547 = vmatprep.mubr.f32.mxu0 %v3567_v31  ;;  %660 = vmatprep.mubr.f32.mxu1 %v3567_v31  ;;  %v3761_v2 = vpop.f32.mrb[12].mxu1  ;;  %v385_v17 = vmax.f32 %v355_v1, 0.0  ;;  %v786_v1 = vld [vmem:[#allocation11 + $0x198] sm:$0xff] }
 0x203   :  { %2700 = vmatprep.subr.bf16.mxu0 %v3748_v55  ;;  %2732 = vmatprep.subr.bf16.mxu1 %v3750_v56  ;;  %v364_v7 = vpop.f32.mrb[13].mxu1  ;;  %v370_v52 = vadd.f32 %v3761_v2, %v3740_v33  ;;  %v790_v2 = vld [vmem:[#allocation11 + $0x1b8] sm:$0xff] }
 0x204   :  { %548 = vmatmul.mubr.f32.gmra.mrb[2].mxu0 %v384_v0  ;;  %661 = vmatmul.mubr.f32.gmra.mrb[18].mxu1 %v384_v0  ;;  %v365_v37 = vadd.f32 %v3740_v33, %v364_v7  ;;  %v788_v0 = vld [vmem:[#allocation11 + $0x1a8] sm:$0xff]  ;;  %v3830_v16 = vpack.c.bf16 %v790_v2, %v786_v1 }
 0x205   :  { %2702 = vmatpush1.bf16.msra.mxu0 %v3754_v61  ;;  %2734 = vmatpush1.bf16.msra.mxu1 %v3756_v62  ;;  %v388_v7 = vmax.f32 %v370_v52, 0.0  ;;  %v3828_v15 = vpack.c.bf16 %v788_v0, %v784_v63  ;;  %v3903_v52 = vrot.slane %v455_v48, %v459_v47 }
 0x206   :  { %553 = vmatprep.mubr.f32.mxu0 %v3567_v31  ;;  %666 = vmatprep.mubr.f32.mxu1 %v3567_v31  ;;  %v3778_v21 = vpop.f32.mrb[14].mxu1  ;;  %v387_v53 = vmax.f32 %v365_v37, 0.0  ;;  %v797_v37 = vld [vmem:[#allocation11 + $0x1f0] sm:$0xff] }
 0x207   :  { %2704 = vmatprep.subr.bf16.mxu0 %v3765_v6  ;;  %2736 = vmatprep.subr.bf16.mxu1 %v3767_v8  ;;  %v374_v25 = vpop.f32.mrb[15].mxu1  ;;  %v380_v27 = vadd.f32 %v3778_v21, %v3740_v33 }
 0x208   :  { %554 = vmatmul.mubr.f32.gmra.mrb[4].mxu0 %v385_v17  ;;  %667 = vmatmul.mubr.f32.gmra.mrb[20].mxu1 %v385_v17  ;;  %v375_v9 = vadd.f32 %v3740_v33, %v374_v25  ;;  %v792_v17 = vld [vmem:[#allocation11 + $0x1c8] sm:$0xff]  ;;  %v3836_v25 = vpack.c.bf16 %v789_v12, %v785_v11  ;;  %v3850_v33 = vpack.c.bf16 %v795_v35, %v791_v26 }
 0x209   :  { %2706 = vmatpush1.bf16.msra.mxu0 %v3771_v13  ;;  %2738 = vmatpush1.bf16.msra.mxu1 %v3773_v14  ;;  %v3844_v38 = vpack.c.bf16 %v796_v18, %v792_v17  ;;  %v390_v40 = vmax.f32 %v380_v27, 0.0  ;;  %v3912_v12 = vrot.slane %v455_v48, %v467_v10 }
 0x20a   :  { %559 = vmatprep.mubr.f32.mxu0 %v3567_v31  ;;  %672 = vmatprep.mubr.f32.mxu1 %v3567_v31  ;;  %v389_v28 = vmax.f32 %v375_v9, 0.0  ;;  %v3909_v9 = vrot.slane %v455_v48, %v471_v58 }
 0x20b   :  { %2708 = vmatprep.subr.bf16.mxu0 %v3782_v22  ;;  %2740 = vmatprep.subr.bf16.mxu1 %v3784_v23 }
 0x20c   :  { %560 = vmatmul.mubr.f32.gmra.mrb[6].mxu0 %v386_v36  ;;  %673 = vmatmul.mubr.f32.gmra.mrb[22].mxu1 %v386_v36  ;;  %v793_v36 = vld [vmem:[#allocation11 + $0x1d0] sm:$0xff] }
 0x20d   :  { %2710 = vmatpush1.bf16.msra.mxu0 %v3788_v30  ;;  %2742 = vmatpush1.bf16.msra.mxu1 %v3790_v34  ;;  %v3852_v21 = vpack.c.bf16 %v797_v37, %v793_v36 }
 0x20e   :  { %565 = vmatprep.mubr.f32.mxu0 %v3567_v31  ;;  %678 = vmatprep.mubr.f32.mxu1 %v3567_v31 }
 0x20f   :  { %2712 = vmatprep.subr.bf16.mxu0 %v3797_v41  ;;  %2744 = vmatprep.subr.bf16.mxu1 %v3799_v42 }
 0x210   :  { %566 = vmatmul.mubr.f32.gmra.mrb[8].mxu0 %v387_v53  ;;  %679 = vmatmul.mubr.f32.gmra.mrb[24].mxu1 %v387_v53  ;;  %v3905_v53 = vrot.slane %v455_v48, %v463_v51 }
 0x211   :  { %2714 = vmatpush1.bf16.msra.mxu0 %v3803_v49  ;;  %2746 = vmatpush1.bf16.msra.mxu1 %v3805_v50 }
 0x212   :  { %571 = vmatprep.mubr.f32.mxu0 %v3567_v31  ;;  %684 = vmatprep.mubr.f32.mxu1 %v3567_v31 }
 0x213   :  { %2716 = vmatprep.subr.bf16.mxu0 %v3813_v59  ;;  %2748 = vmatprep.subr.bf16.mxu1 %v3815_v60 }
 0x214   :  { %572 = vmatmul.mubr.f32.gmra.mrb[10].mxu0 %v388_v7  ;;  %685 = vmatmul.mubr.f32.gmra.mrb[26].mxu1 %v388_v7 }
 0x215   :  { %2718 = vmatpush1.bf16.msra.mxu0 %v3819_v3  ;;  %2750 = vmatpush1.bf16.msra.mxu1 %v3821_v4 }
 0x216   :  { %577 = vmatprep.mubr.f32.mxu0 %v3567_v31  ;;  %690 = vmatprep.mubr.f32.mxu1 %v3567_v31 }
 0x217   :  { %2720 = vmatprep.subr.bf16.mxu0 %v3828_v15  ;;  %2752 = vmatprep.subr.bf16.mxu1 %v3830_v16 }
 0x218   :  { %578 = vmatmul.mubr.f32.gmra.mrb[12].mxu0 %v389_v28  ;;  %691 = vmatmul.mubr.f32.gmra.mrb[28].mxu1 %v389_v28 }
 0x219   :  { %2722 = vmatpush1.bf16.msra.mxu0 %v3834_v24  ;;  %2754 = vmatpush1.bf16.msra.mxu1 %v3836_v25 }
 0x21a   :  { %583 = vmatprep.mubr.f32.mxu0 %v3567_v31  ;;  %696 = vmatprep.mubr.f32.mxu1 %v3567_v31 }
 0x21b   :  { %2724 = vmatprep.subr.bf16.mxu0 %v3844_v38  ;;  %2756 = vmatprep.subr.bf16.mxu1 %v3846_v39 }
 0x21c   :  { %584 = vmatmul.mubr.f32.gmra.mrb[14].mxu0 %v390_v40  ;;  %697 = vmatmul.mubr.f32.gmra.mrb[30].mxu1 %v390_v40 }
 0x21d   :  { %2726 = vmatpush1.bf16.msra.mxu0 %v3850_v33  ;;  %2758 = vmatpush1.bf16.msra.mxu1 %v3852_v21 }
 0x21e   :  { %872 = vmatprep.mubr.f32.mxu0 %v3567_v31  ;;  %943 = vmatprep.mubr.f32.mxu1 %v3567_v31 }
 0x21f   :  { %2760 = vmatprep.subr.bf16.mxu0 %v3729_v29  ;;  %2792 = vmatprep.subr.bf16.mxu1 %v3732_v32 }
 0x220   :  { %873 = vmatmul.mubr.f32.vlgmr.msra.gmra.mrb[0].mxu0 %v3567_v31  ;;  %944 = vmatmul.mubr.f32.vlgmr.msra.gmra.mrb[16].mxu1 %v3567_v31 }
 0x221   :  { %2762 = vmatpush1.bf16.msra.mxu0 %v3743_v45  ;;  %2794 = vmatpush1.bf16.msra.mxu1 %v3745_v46 }
 0x222   :  { %2764 = vmatprep.subr.bf16.mxu0 %v3748_v55  ;;  %2796 = vmatprep.subr.bf16.mxu1 %v3750_v56 }
 0x223   :  { %1050 = vmatprep.mubr.f32.mxu0 %v3567_v31  ;;  %1121 = vmatprep.mubr.f32.mxu1 %v3567_v31 }
 0x225   :  { %2766 = vmatpush1.bf16.msra.mxu0 %v3754_v61  ;;  %2798 = vmatpush1.bf16.msra.mxu1 %v3756_v62 }
 0x226   :  { %2768 = vmatprep.subr.bf16.mxu0 %v3765_v6  ;;  %2800 = vmatprep.subr.bf16.mxu1 %v3767_v8 }
 0x229   :  { %2770 = vmatpush1.bf16.msra.mxu0 %v3771_v13  ;;  %2802 = vmatpush1.bf16.msra.mxu1 %v3773_v14 }
 0x22a   :  { %2772 = vmatprep.subr.bf16.mxu0 %v3782_v22  ;;  %2804 = vmatprep.subr.bf16.mxu1 %v3784_v23 }
 0x22d   :  { %2774 = vmatpush1.bf16.msra.mxu0 %v3788_v30  ;;  %2806 = vmatpush1.bf16.msra.mxu1 %v3790_v34 }
 0x22e   :  { %2776 = vmatprep.subr.bf16.mxu0 %v3797_v41  ;;  %2808 = vmatprep.subr.bf16.mxu1 %v3799_v42 }
 0x231   :  { %2778 = vmatpush1.bf16.msra.mxu0 %v3803_v49  ;;  %2810 = vmatpush1.bf16.msra.mxu1 %v3805_v50 }
 0x232   :  { %2780 = vmatprep.subr.bf16.mxu0 %v3813_v59  ;;  %2812 = vmatprep.subr.bf16.mxu1 %v3815_v60 }
 0x235   :  { %2782 = vmatpush1.bf16.msra.mxu0 %v3819_v3  ;;  %2814 = vmatpush1.bf16.msra.mxu1 %v3821_v4 }
 0x236   :  { %2784 = vmatprep.subr.bf16.mxu0 %v3828_v15  ;;  %2816 = vmatprep.subr.bf16.mxu1 %v3830_v16 }
 0x239   :  { %2786 = vmatpush1.bf16.msra.mxu0 %v3834_v24  ;;  %2818 = vmatpush1.bf16.msra.mxu1 %v3836_v25 }
 0x23a   :  { %2788 = vmatprep.subr.bf16.mxu0 %v3844_v38  ;;  %2820 = vmatprep.subr.bf16.mxu1 %v3846_v39 }
 0x23d   :  { %2790 = vmatpush1.bf16.msra.mxu0 %v3850_v33  ;;  %2822 = vmatpush1.bf16.msra.mxu1 %v3852_v21 }
 0x23e   :  { %2824 = vmatprep.subr.bf16.mxu0 %v3729_v29  ;;  %2856 = vmatprep.subr.bf16.mxu1 %v3732_v32 }
 0x2f3   :  { %v874_v54 = vpop.f32.mrb[0].mxu0  ;;  %v945_v57 = vpop.f32.mrb[16].mxu1 }
 0x2f4   :  { %v3239_v63 = vadd.f32 %v874_v54, %v3903_v52  ;;  %v876_v0 = vpop.f32.mrb[1].mxu0  ;;  %v947_v1 = vpop.f32.mrb[17].mxu1  ;;  %v3255_v18 = vadd.f32 %v945_v57, %v3912_v12 }
 0x2f5   :  { %v3240_v2 = vadd.f32 %v876_v0, %v3905_v53  ;;  %v3256_v11 = vadd.f32 %v947_v1, %v3909_v9 }
 0x2f6   :  { %v2415_v5 = vmul.f32 -1.442695, %v3239_v63 }
 0x2f7   :  { %v2416_v7 = vmul.f32 -1.442695, %v3240_v2  ;;  %v2417_v17 = vmul.f32 -1.442695, %v3256_v11 }
 0x2f8   :  { %3313 = vpow2.f32 %v2415_v5 }
 0x2f9   :  { %3315 = vpow2.f32 %v2416_v7 }
 0x2fa   :  { %3317 = vpow2.f32 %v2417_v17 }
 0x2fb   :  { %3319 = vtanh.f32 %v3255_v18 }
 0x302   :  { %v3314_v19 = vpop.eup %3313 }
 0x303   :  { %v3316_v20 = vpop.eup %3315  ;;  %v957_v26 = vadd.f32 1.0, %v3314_v19 }
 0x304   :  { %v963_v27 = vadd.f32 1.0, %v3316_v20  ;;  %v3318_v28 = vpop.eup %3317 }
 0x305   :  { %3321 = vrcp.f32 %v957_v26  ;;  %v3320_v35 = vpop.eup %3319  ;;  %v970_v43 = vadd.f32 1.0, %v3318_v28 }
 0x306   :  { %3323 = vrcp.f32 %v963_v27 }
 0x307   :  { %3325 = vrcp.f32 %v970_v43 }
 0x30f   :  { %v3322_v36 = vpop.eup %3321 }
 0x310   :  { %v3324_v37 = vpop.eup %3323  ;;  %v974_v40 = vmul.f32 %v3322_v36, %v3320_v35 }
 0x311   :  { %v973_v44 = vmul.f32 0.0, %v3324_v37  ;;  %v3326_v48 = vpop.eup %3325 }
 0x313   :  { %v3915_v47 = vadd.f32 %v974_v40, %v973_v44 }
 0x315   :  { %3327 = vtanh.f32 %v3915_v47 }
 0x31f   :  { %v3328_v51 = vpop.eup %3327 }
 0x320   :  { %v3918_v54 = vmul.f32 %v3328_v51, %v3326_v48 }
 0x322   :  { %1051 = vmatmul.mubr.f32.vlgmr.msra.gmra.mrb[2].mxu0 %v3918_v54  ;;  %1122 = vmatmul.mubr.f32.vlgmr.msra.gmra.mrb[18].mxu1 %v3918_v54 }
 0x323   :  { %2826 = vmatpush1.bf16.msra.mxu0 %v3743_v45  ;;  %2858 = vmatpush1.bf16.msra.mxu1 %v3745_v46 }
 0x324   :  { %2828 = vmatprep.subr.bf16.mxu0 %v3748_v55  ;;  %2860 = vmatprep.subr.bf16.mxu1 %v3750_v56 }
 0x325   :  { %1229 = vmatprep.mubr.f32.mxu0 %v3567_v31  ;;  %1300 = vmatprep.mubr.f32.mxu1 %v3567_v31 }
 0x327   :  { %2830 = vmatpush1.bf16.msra.mxu0 %v3754_v61  ;;  %2862 = vmatpush1.bf16.msra.mxu1 %v3756_v62 }
 0x328   :  { %2832 = vmatprep.subr.bf16.mxu0 %v3765_v6  ;;  %2864 = vmatprep.subr.bf16.mxu1 %v3767_v8 }
 0x32b   :  { %2834 = vmatpush1.bf16.msra.mxu0 %v3771_v13  ;;  %2866 = vmatpush1.bf16.msra.mxu1 %v3773_v14 }
 0x32c   :  { %2836 = vmatprep.subr.bf16.mxu0 %v3782_v22  ;;  %2868 = vmatprep.subr.bf16.mxu1 %v3784_v23 }
 0x32f   :  { %2838 = vmatpush1.bf16.msra.mxu0 %v3788_v30  ;;  %2870 = vmatpush1.bf16.msra.mxu1 %v3790_v34 }
 0x330   :  { %2840 = vmatprep.subr.bf16.mxu0 %v3797_v41  ;;  %2872 = vmatprep.subr.bf16.mxu1 %v3799_v42 }
 0x333   :  { %2842 = vmatpush1.bf16.msra.mxu0 %v3803_v49  ;;  %2874 = vmatpush1.bf16.msra.mxu1 %v3805_v50 }
 0x334   :  { %2844 = vmatprep.subr.bf16.mxu0 %v3813_v59  ;;  %2876 = vmatprep.subr.bf16.mxu1 %v3815_v60 }
 0x337   :  { %2846 = vmatpush1.bf16.msra.mxu0 %v3819_v3  ;;  %2878 = vmatpush1.bf16.msra.mxu1 %v3821_v4 }
 0x338   :  { %2848 = vmatprep.subr.bf16.mxu0 %v3828_v15  ;;  %2880 = vmatprep.subr.bf16.mxu1 %v3830_v16 }
 0x33b   :  { %2850 = vmatpush1.bf16.msra.mxu0 %v3834_v24  ;;  %2882 = vmatpush1.bf16.msra.mxu1 %v3836_v25 }
 0x33c   :  { %2852 = vmatprep.subr.bf16.mxu0 %v3844_v38  ;;  %2884 = vmatprep.subr.bf16.mxu1 %v3846_v39 }
 0x33f   :  { %2854 = vmatpush1.bf16.msra.mxu0 %v3850_v33  ;;  %2886 = vmatpush1.bf16.msra.mxu1 %v3852_v21 }
 0x340   :  { %2888 = vmatprep.subr.bf16.mxu0 %v3729_v29  ;;  %2920 = vmatprep.subr.bf16.mxu1 %v3732_v32 }
 0x3f5   :  { %v1052_v57 = vpop.f32.mrb[2].mxu0  ;;  %v1123_v58 = vpop.f32.mrb[18].mxu1 }
 0x3f6   :  { %v3241_v63 = vadd.f32 %v1052_v57, %v3903_v52  ;;  %v1054_v0 = vpop.f32.mrb[3].mxu0  ;;  %v1125_v1 = vpop.f32.mrb[19].mxu1  ;;  %v3257_v17 = vadd.f32 %v1123_v58, %v3912_v12 }
 0x3f7   :  { %v3242_v2 = vadd.f32 %v1054_v0, %v3905_v53  ;;  %v3258_v10 = vadd.f32 %v1125_v1, %v3909_v9 }
 0x3f8   :  { %v2418_v5 = vmul.f32 -1.442695, %v3241_v63 }
 0x3f9   :  { %v2419_v7 = vmul.f32 -1.442695, %v3242_v2  ;;  %v2420_v11 = vmul.f32 -1.442695, %v3258_v10 }
 0x3fa   :  { %3329 = vpow2.f32 %v2418_v5 }
 0x3fb   :  { %3331 = vpow2.f32 %v2419_v7 }
 0x3fc   :  { %3333 = vpow2.f32 %v2420_v11 }
 0x3fd   :  { %3335 = vtanh.f32 %v3257_v17 }
 0x404   :  { %v3330_v18 = vpop.eup %3329 }
 0x405   :  { %v3332_v19 = vpop.eup %3331  ;;  %v1135_v20 = vadd.f32 1.0, %v3330_v18 }
 0x406   :  { %v1141_v26 = vadd.f32 1.0, %v3332_v19  ;;  %v3334_v27 = vpop.eup %3333 }
 0x407   :  { %3337 = vrcp.f32 %v1135_v20  ;;  %v3336_v28 = vpop.eup %3335  ;;  %v1148_v40 = vadd.f32 1.0, %v3334_v27 }
 0x408   :  { %3339 = vrcp.f32 %v1141_v26 }
 0x409   :  { %3341 = vrcp.f32 %v1148_v40 }
 0x411   :  { %v3338_v35 = vpop.eup %3337 }
 0x412   :  { %v3340_v36 = vpop.eup %3339  ;;  %v1152_v37 = vmul.f32 %v3338_v35, %v3336_v28 }
 0x413   :  { %v1151_v43 = vmul.f32 %v3340_v36, %v3915_v47  ;;  %v3342_v48 = vpop.eup %3341 }
 0x415   :  { %v3961_v44 = vadd.f32 %v1152_v37, %v1151_v43 }
 0x417   :  { %3343 = vtanh.f32 %v3961_v44 }
 0x421   :  { %v3344_v51 = vpop.eup %3343 }
 0x422   :  { %v3964_v57 = vmul.f32 %v3344_v51, %v3342_v48 }
 0x424   :  { %1230 = vmatmul.mubr.f32.vlgmr.msra.gmra.mrb[4].mxu0 %v3964_v57  ;;  %1301 = vmatmul.mubr.f32.vlgmr.msra.gmra.mrb[20].mxu1 %v3964_v57 }
 0x425   :  { %2890 = vmatpush1.bf16.msra.mxu0 %v3743_v45  ;;  %2922 = vmatpush1.bf16.msra.mxu1 %v3745_v46 }
 0x426   :  { %2892 = vmatprep.subr.bf16.mxu0 %v3748_v55  ;;  %2924 = vmatprep.subr.bf16.mxu1 %v3750_v56 }
 0x427   :  { %1408 = vmatprep.mubr.f32.mxu0 %v3567_v31  ;;  %1479 = vmatprep.mubr.f32.mxu1 %v3567_v31 }
 0x429   :  { %2894 = vmatpush1.bf16.msra.mxu0 %v3754_v61  ;;  %2926 = vmatpush1.bf16.msra.mxu1 %v3756_v62 }
 0x42a   :  { %2896 = vmatprep.subr.bf16.mxu0 %v3765_v6  ;;  %2928 = vmatprep.subr.bf16.mxu1 %v3767_v8 }
 0x42d   :  { %2898 = vmatpush1.bf16.msra.mxu0 %v3771_v13  ;;  %2930 = vmatpush1.bf16.msra.mxu1 %v3773_v14 }
 0x42e   :  { %2900 = vmatprep.subr.bf16.mxu0 %v3782_v22  ;;  %2932 = vmatprep.subr.bf16.mxu1 %v3784_v23 }
 0x431   :  { %2902 = vmatpush1.bf16.msra.mxu0 %v3788_v30  ;;  %2934 = vmatpush1.bf16.msra.mxu1 %v3790_v34 }
 0x432   :  { %2904 = vmatprep.subr.bf16.mxu0 %v3797_v41  ;;  %2936 = vmatprep.subr.bf16.mxu1 %v3799_v42 }
 0x435   :  { %2906 = vmatpush1.bf16.msra.mxu0 %v3803_v49  ;;  %2938 = vmatpush1.bf16.msra.mxu1 %v3805_v50 }
 0x436   :  { %2908 = vmatprep.subr.bf16.mxu0 %v3813_v59  ;;  %2940 = vmatprep.subr.bf16.mxu1 %v3815_v60 }
 0x439   :  { %2910 = vmatpush1.bf16.msra.mxu0 %v3819_v3  ;;  %2942 = vmatpush1.bf16.msra.mxu1 %v3821_v4 }
 0x43a   :  { %2912 = vmatprep.subr.bf16.mxu0 %v3828_v15  ;;  %2944 = vmatprep.subr.bf16.mxu1 %v3830_v16 }
 0x43d   :  { %2914 = vmatpush1.bf16.msra.mxu0 %v3834_v24  ;;  %2946 = vmatpush1.bf16.msra.mxu1 %v3836_v25 }
 0x43e   :  { %2916 = vmatprep.subr.bf16.mxu0 %v3844_v38  ;;  %2948 = vmatprep.subr.bf16.mxu1 %v3846_v39 }
 0x441   :  { %2918 = vmatpush1.bf16.msra.mxu0 %v3850_v33  ;;  %2950 = vmatpush1.bf16.msra.mxu1 %v3852_v21 }
 0x442   :  { %2952 = vmatprep.subr.bf16.mxu0 %v3729_v29  ;;  %2984 = vmatprep.subr.bf16.mxu1 %v3732_v32 }
 0x4f7   :  { %v1231_v47 = vpop.f32.mrb[4].mxu0  ;;  %v1302_v58 = vpop.f32.mrb[20].mxu1 }
 0x4f8   :  { %v3243_v63 = vadd.f32 %v1231_v47, %v3903_v52  ;;  %v1233_v0 = vpop.f32.mrb[5].mxu0  ;;  %v1304_v1 = vpop.f32.mrb[21].mxu1  ;;  %v3259_v17 = vadd.f32 %v1302_v58, %v3912_v12 }
 0x4f9   :  { %v3244_v2 = vadd.f32 %v1233_v0, %v3905_v53  ;;  %v3260_v10 = vadd.f32 %v1304_v1, %v3909_v9 }
 0x4fa   :  { %v2421_v5 = vmul.f32 -1.442695, %v3243_v63 }
 0x4fb   :  { %v2422_v7 = vmul.f32 -1.442695, %v3244_v2  ;;  %v2423_v11 = vmul.f32 -1.442695, %v3260_v10 }
 0x4fc   :  { %3345 = vpow2.f32 %v2421_v5 }
 0x4fd   :  { %3347 = vpow2.f32 %v2422_v7 }
 0x4fe   :  { %3349 = vpow2.f32 %v2423_v11 }
 0x4ff   :  { %3351 = vtanh.f32 %v3259_v17 }
 0x506   :  { %v3346_v18 = vpop.eup %3345 }
 0x507   :  { %v3348_v19 = vpop.eup %3347  ;;  %v1314_v20 = vadd.f32 1.0, %v3346_v18 }
 0x508   :  { %v1320_v26 = vadd.f32 1.0, %v3348_v19  ;;  %v3350_v27 = vpop.eup %3349 }
 0x509   :  { %3353 = vrcp.f32 %v1314_v20  ;;  %v3352_v28 = vpop.eup %3351  ;;  %v1327_v40 = vadd.f32 1.0, %v3350_v27 }
 0x50a   :  { %3355 = vrcp.f32 %v1320_v26 }
 0x50b   :  { %3357 = vrcp.f32 %v1327_v40 }
 0x513   :  { %v3354_v35 = vpop.eup %3353 }
 0x514   :  { %v3356_v36 = vpop.eup %3355  ;;  %v1331_v37 = vmul.f32 %v3354_v35, %v3352_v28 }
 0x515   :  { %v1330_v43 = vmul.f32 %v3356_v36, %v3961_v44  ;;  %v3358_v51 = vpop.eup %3357 }
 0x517   :  { %v4007_v48 = vadd.f32 %v1331_v37, %v1330_v43 }
 0x519   :  { %3359 = vtanh.f32 %v4007_v48 }
 0x523   :  { %v3360_v47 = vpop.eup %3359 }
 0x524   :  { %v4010_v58 = vmul.f32 %v3360_v47, %v3358_v51 }
 0x526   :  { %1409 = vmatmul.mubr.f32.vlgmr.msra.gmra.mrb[6].mxu0 %v4010_v58  ;;  %1480 = vmatmul.mubr.f32.vlgmr.msra.gmra.mrb[22].mxu1 %v4010_v58 }
 0x527   :  { %2954 = vmatpush1.bf16.msra.mxu0 %v3743_v45  ;;  %2986 = vmatpush1.bf16.msra.mxu1 %v3745_v46 }
 0x528   :  { %2956 = vmatprep.subr.bf16.mxu0 %v3748_v55  ;;  %2988 = vmatprep.subr.bf16.mxu1 %v3750_v56 }
 0x529   :  { %1587 = vmatprep.mubr.f32.mxu0 %v3567_v31  ;;  %1658 = vmatprep.mubr.f32.mxu1 %v3567_v31 }
 0x52b   :  { %2958 = vmatpush1.bf16.msra.mxu0 %v3754_v61  ;;  %2990 = vmatpush1.bf16.msra.mxu1 %v3756_v62 }
 0x52c   :  { %2960 = vmatprep.subr.bf16.mxu0 %v3765_v6  ;;  %2992 = vmatprep.subr.bf16.mxu1 %v3767_v8 }
 0x52f   :  { %2962 = vmatpush1.bf16.msra.mxu0 %v3771_v13  ;;  %2994 = vmatpush1.bf16.msra.mxu1 %v3773_v14 }
 0x530   :  { %2964 = vmatprep.subr.bf16.mxu0 %v3782_v22  ;;  %2996 = vmatprep.subr.bf16.mxu1 %v3784_v23 }
 0x533   :  { %2966 = vmatpush1.bf16.msra.mxu0 %v3788_v30  ;;  %2998 = vmatpush1.bf16.msra.mxu1 %v3790_v34 }
 0x534   :  { %2968 = vmatprep.subr.bf16.mxu0 %v3797_v41  ;;  %3000 = vmatprep.subr.bf16.mxu1 %v3799_v42 }
 0x537   :  { %2970 = vmatpush1.bf16.msra.mxu0 %v3803_v49  ;;  %3002 = vmatpush1.bf16.msra.mxu1 %v3805_v50 }
 0x538   :  { %2972 = vmatprep.subr.bf16.mxu0 %v3813_v59  ;;  %3004 = vmatprep.subr.bf16.mxu1 %v3815_v60 }
 0x53b   :  { %2974 = vmatpush1.bf16.msra.mxu0 %v3819_v3  ;;  %3006 = vmatpush1.bf16.msra.mxu1 %v3821_v4 }
 0x53c   :  { %2976 = vmatprep.subr.bf16.mxu0 %v3828_v15  ;;  %3008 = vmatprep.subr.bf16.mxu1 %v3830_v16 }
 0x53f   :  { %2978 = vmatpush1.bf16.msra.mxu0 %v3834_v24  ;;  %3010 = vmatpush1.bf16.msra.mxu1 %v3836_v25 }
 0x540   :  { %2980 = vmatprep.subr.bf16.mxu0 %v3844_v38  ;;  %3012 = vmatprep.subr.bf16.mxu1 %v3846_v39 }
 0x543   :  { %2982 = vmatpush1.bf16.msra.mxu0 %v3850_v33  ;;  %3014 = vmatpush1.bf16.msra.mxu1 %v3852_v21 }
 0x544   :  { %3016 = vmatprep.subr.bf16.mxu0 %v3729_v29  ;;  %3048 = vmatprep.subr.bf16.mxu1 %v3732_v32 }
 0x5f9   :  { %v1410_v44 = vpop.f32.mrb[6].mxu0  ;;  %v1481_v63 = vpop.f32.mrb[22].mxu1 }
 0x5fa   :  { %v3245_v0 = vadd.f32 %v1410_v44, %v3903_v52  ;;  %v1412_v1 = vpop.f32.mrb[7].mxu0  ;;  %v1483_v2 = vpop.f32.mrb[23].mxu1  ;;  %v3261_v18 = vadd.f32 %v1481_v63, %v3912_v12 }
 0x5fb   :  { %v3246_v5 = vadd.f32 %v1412_v1, %v3905_v53  ;;  %v3262_v11 = vadd.f32 %v1483_v2, %v3909_v9 }
 0x5fc   :  { %v2424_v7 = vmul.f32 -1.442695, %v3245_v0 }
 0x5fd   :  { %v2425_v10 = vmul.f32 -1.442695, %v3246_v5  ;;  %v2426_v17 = vmul.f32 -1.442695, %v3262_v11 }
 0x5fe   :  { %3361 = vpow2.f32 %v2424_v7 }
 0x5ff   :  { %3363 = vpow2.f32 %v2425_v10 }
 0x600   :  { %3365 = vpow2.f32 %v2426_v17 }
 0x601   :  { %3367 = vtanh.f32 %v3261_v18 }
 0x608   :  { %v3362_v19 = vpop.eup %3361 }
 0x609   :  { %v3364_v20 = vpop.eup %3363  ;;  %v1493_v26 = vadd.f32 1.0, %v3362_v19 }
 0x60a   :  { %v1499_v27 = vadd.f32 1.0, %v3364_v20  ;;  %v3366_v28 = vpop.eup %3365 }
 0x60b   :  { %3369 = vrcp.f32 %v1493_v26  ;;  %v3368_v35 = vpop.eup %3367  ;;  %v1506_v43 = vadd.f32 1.0, %v3366_v28 }
 0x60c   :  { %3371 = vrcp.f32 %v1499_v27 }
 0x60d   :  { %3373 = vrcp.f32 %v1506_v43 }
 0x615   :  { %v3370_v36 = vpop.eup %3369 }
 0x616   :  { %v3372_v37 = vpop.eup %3371  ;;  %v1510_v40 = vmul.f32 %v3370_v36, %v3368_v35 }
 0x617   :  { %v1509_v51 = vmul.f32 %v3372_v37, %v4007_v48  ;;  %v3374_v44 = vpop.eup %3373 }
 0x619   :  { %v4053_v47 = vadd.f32 %v1510_v40, %v1509_v51 }
 0x61b   :  { %3375 = vtanh.f32 %v4053_v47 }
 0x625   :  { %v3376_v63 = vpop.eup %3375 }
 0x626   :  { %v4056_v0 = vmul.f32 %v3376_v63, %v3374_v44 }
 0x628   :  { %1588 = vmatmul.mubr.f32.vlgmr.msra.gmra.mrb[8].mxu0 %v4056_v0  ;;  %1659 = vmatmul.mubr.f32.vlgmr.msra.gmra.mrb[24].mxu1 %v4056_v0 }
 0x629   :  { %3018 = vmatpush1.bf16.msra.mxu0 %v3743_v45  ;;  %3050 = vmatpush1.bf16.msra.mxu1 %v3745_v46 }
 0x62a   :  { %3020 = vmatprep.subr.bf16.mxu0 %v3748_v55  ;;  %3052 = vmatprep.subr.bf16.mxu1 %v3750_v56 }
 0x62b   :  { %1766 = vmatprep.mubr.f32.mxu0 %v3567_v31  ;;  %1837 = vmatprep.mubr.f32.mxu1 %v3567_v31 }
 0x62d   :  { %3022 = vmatpush1.bf16.msra.mxu0 %v3754_v61  ;;  %3054 = vmatpush1.bf16.msra.mxu1 %v3756_v62 }
 0x62e   :  { %3024 = vmatprep.subr.bf16.mxu0 %v3765_v6  ;;  %3056 = vmatprep.subr.bf16.mxu1 %v3767_v8 }
 0x631   :  { %3026 = vmatpush1.bf16.msra.mxu0 %v3771_v13  ;;  %3058 = vmatpush1.bf16.msra.mxu1 %v3773_v14 }
 0x632   :  { %3028 = vmatprep.subr.bf16.mxu0 %v3782_v22  ;;  %3060 = vmatprep.subr.bf16.mxu1 %v3784_v23 }
 0x635   :  { %3030 = vmatpush1.bf16.msra.mxu0 %v3788_v30  ;;  %3062 = vmatpush1.bf16.msra.mxu1 %v3790_v34 }
 0x636   :  { %3032 = vmatprep.subr.bf16.mxu0 %v3797_v41  ;;  %3064 = vmatprep.subr.bf16.mxu1 %v3799_v42 }
 0x639   :  { %3034 = vmatpush1.bf16.msra.mxu0 %v3803_v49  ;;  %3066 = vmatpush1.bf16.msra.mxu1 %v3805_v50 }
 0x63a   :  { %3036 = vmatprep.subr.bf16.mxu0 %v3813_v59  ;;  %3068 = vmatprep.subr.bf16.mxu1 %v3815_v60 }
 0x63d   :  { %3038 = vmatpush1.bf16.msra.mxu0 %v3819_v3  ;;  %3070 = vmatpush1.bf16.msra.mxu1 %v3821_v4 }
 0x63e   :  { %3040 = vmatprep.subr.bf16.mxu0 %v3828_v15  ;;  %3072 = vmatprep.subr.bf16.mxu1 %v3830_v16 }
 0x641   :  { %3042 = vmatpush1.bf16.msra.mxu0 %v3834_v24  ;;  %3074 = vmatpush1.bf16.msra.mxu1 %v3836_v25 }
 0x642   :  { %3044 = vmatprep.subr.bf16.mxu0 %v3844_v38  ;;  %3076 = vmatprep.subr.bf16.mxu1 %v3846_v39 }
 0x645   :  { %3046 = vmatpush1.bf16.msra.mxu0 %v3850_v33  ;;  %3078 = vmatpush1.bf16.msra.mxu1 %v3852_v21 }
 0x646   :  { %3080 = vmatprep.subr.bf16.mxu0 %v3729_v29  ;;  %3112 = vmatprep.subr.bf16.mxu1 %v3732_v32 }
 0x6fb   :  { %v1589_v48 = vpop.f32.mrb[8].mxu0  ;;  %v1660_v1 = vpop.f32.mrb[24].mxu1 }
 0x6fc   :  { %v3247_v2 = vadd.f32 %v1589_v48, %v3903_v52  ;;  %v1591_v5 = vpop.f32.mrb[9].mxu0  ;;  %v1662_v7 = vpop.f32.mrb[25].mxu1  ;;  %v3263_v20 = vadd.f32 %v1660_v1, %v3912_v12 }
 0x6fd   :  { %v3248_v10 = vadd.f32 %v1591_v5, %v3905_v53  ;;  %v3264_v18 = vadd.f32 %v1662_v7, %v3909_v9 }
 0x6fe   :  { %v2427_v11 = vmul.f32 -1.442695, %v3247_v2 }
 0x6ff   :  { %v2428_v17 = vmul.f32 -1.442695, %v3248_v10  ;;  %v2429_v19 = vmul.f32 -1.442695, %v3264_v18 }
 0x700   :  { %3377 = vpow2.f32 %v2427_v11 }
 0x701   :  { %3379 = vpow2.f32 %v2428_v17 }
 0x702   :  { %3381 = vpow2.f32 %v2429_v19 }
 0x703   :  { %3383 = vtanh.f32 %v3263_v20 }
 0x70a   :  { %v3378_v26 = vpop.eup %3377 }
 0x70b   :  { %v3380_v27 = vpop.eup %3379  ;;  %v1672_v28 = vadd.f32 1.0, %v3378_v26 }
 0x70c   :  { %v1678_v35 = vadd.f32 1.0, %v3380_v27  ;;  %v3382_v36 = vpop.eup %3381 }
 0x70d   :  { %3385 = vrcp.f32 %v1672_v28  ;;  %v3384_v37 = vpop.eup %3383  ;;  %v1685_v44 = vadd.f32 1.0, %v3382_v36 }
 0x70e   :  { %3387 = vrcp.f32 %v1678_v35 }
 0x70f   :  { %3389 = vrcp.f32 %v1685_v44 }
 0x717   :  { %v3386_v40 = vpop.eup %3385 }
 0x718   :  { %v3388_v43 = vpop.eup %3387  ;;  %v1689_v51 = vmul.f32 %v3386_v40, %v3384_v37 }
 0x719   :  { %v1688_v63 = vmul.f32 %v3388_v43, %v4053_v47  ;;  %v3390_v1 = vpop.eup %3389 }
 0x71b   :  { %v4099_v48 = vadd.f32 %v1689_v51, %v1688_v63 }
 0x71d   :  { %3391 = vtanh.f32 %v4099_v48 }
 0x727   :  { %v3392_v2 = vpop.eup %3391 }
 0x728   :  { %v4102_v5 = vmul.f32 %v3392_v2, %v3390_v1 }
 0x72a   :  { %1767 = vmatmul.mubr.f32.vlgmr.msra.gmra.mrb[10].mxu0 %v4102_v5  ;;  %1838 = vmatmul.mubr.f32.vlgmr.msra.gmra.mrb[26].mxu1 %v4102_v5 }
 0x72b   :  { %3082 = vmatpush1.bf16.msra.mxu0 %v3743_v45  ;;  %3114 = vmatpush1.bf16.msra.mxu1 %v3745_v46 }
 0x72c   :  { %3084 = vmatprep.subr.bf16.mxu0 %v3748_v55  ;;  %3116 = vmatprep.subr.bf16.mxu1 %v3750_v56 }
 0x72d   :  { %1945 = vmatprep.mubr.f32.mxu0 %v3567_v31  ;;  %2016 = vmatprep.mubr.f32.mxu1 %v3567_v31 }
 0x72f   :  { %3086 = vmatpush1.bf16.msra.mxu0 %v3754_v61  ;;  %3118 = vmatpush1.bf16.msra.mxu1 %v3756_v62 }
 0x730   :  { %3088 = vmatprep.subr.bf16.mxu0 %v3765_v6  ;;  %3120 = vmatprep.subr.bf16.mxu1 %v3767_v8 }
 0x733   :  { %3090 = vmatpush1.bf16.msra.mxu0 %v3771_v13  ;;  %3122 = vmatpush1.bf16.msra.mxu1 %v3773_v14 }
 0x734   :  { %3092 = vmatprep.subr.bf16.mxu0 %v3782_v22  ;;  %3124 = vmatprep.subr.bf16.mxu1 %v3784_v23 }
 0x737   :  { %3094 = vmatpush1.bf16.msra.mxu0 %v3788_v30  ;;  %3126 = vmatpush1.bf16.msra.mxu1 %v3790_v34 }
 0x738   :  { %3096 = vmatprep.subr.bf16.mxu0 %v3797_v41  ;;  %3128 = vmatprep.subr.bf16.mxu1 %v3799_v42 }
 0x73b   :  { %3098 = vmatpush1.bf16.msra.mxu0 %v3803_v49  ;;  %3130 = vmatpush1.bf16.msra.mxu1 %v3805_v50 }
 0x73c   :  { %3100 = vmatprep.subr.bf16.mxu0 %v3813_v59  ;;  %3132 = vmatprep.subr.bf16.mxu1 %v3815_v60 }
 0x73f   :  { %3102 = vmatpush1.bf16.msra.mxu0 %v3819_v3  ;;  %3134 = vmatpush1.bf16.msra.mxu1 %v3821_v4 }
 0x740   :  { %3104 = vmatprep.subr.bf16.mxu0 %v3828_v15  ;;  %3136 = vmatprep.subr.bf16.mxu1 %v3830_v16 }
 0x743   :  { %3106 = vmatpush1.bf16.msra.mxu0 %v3834_v24  ;;  %3138 = vmatpush1.bf16.msra.mxu1 %v3836_v25 }
 0x744   :  { %3108 = vmatprep.subr.bf16.mxu0 %v3844_v38  ;;  %3140 = vmatprep.subr.bf16.mxu1 %v3846_v39 }
 0x747   :  { %3110 = vmatpush1.bf16.msra.mxu0 %v3850_v33  ;;  %3142 = vmatpush1.bf16.msra.mxu1 %v3852_v21 }
 0x748   :  { %3144 = vmatprep.subr.bf16.mxu0 %v3729_v29  ;;  %3176 = vmatprep.subr.bf16.mxu1 %v3732_v32 }
 0x7fd   :  { %v1768_v47 = vpop.f32.mrb[10].mxu0  ;;  %v1839_v7 = vpop.f32.mrb[26].mxu1 }
 0x7fe   :  { %v3249_v10 = vadd.f32 %v1768_v47, %v3903_v52  ;;  %v1770_v11 = vpop.f32.mrb[11].mxu0  ;;  %v1841_v17 = vpop.f32.mrb[27].mxu1  ;;  %v3265_v28 = vadd.f32 %v1839_v7, %v3912_v12 }
 0x7ff   :  { %v3250_v18 = vadd.f32 %v1770_v11, %v3905_v53  ;;  %v3266_v26 = vadd.f32 %v1841_v17, %v3909_v9  ;;  %v2246_v11 = vld [vmem:[#allocation12 + $0x20] sm:$0xff]  ;;  %v2247_v17 = vld [vmem:[#allocation12 + $0x28] sm:$0xff] }
 0x800   :  { %v2430_v19 = vmul.f32 -1.442695, %v3249_v10 }
 0x801   :  { %v2431_v20 = vmul.f32 -1.442695, %v3250_v18  ;;  %v2432_v27 = vmul.f32 -1.442695, %v3266_v26  ;;  %v3215_v18 = vpack.c.bf16 %v2247_v17, %v2246_v11 }
 0x802   :  { %3393 = vpow2.f32 %v2430_v19  ;;  %v2248_v19 = vld [vmem:[#allocation12 + $0x30] sm:$0xff] }
 0x803   :  { %3395 = vpow2.f32 %v2431_v20  ;;  %v2249_v20 = vld [vmem:[#allocation12 + $0x38] sm:$0xff] }
 0x804   :  { %3397 = vpow2.f32 %v2432_v27  ;;  %v3219_v26 = vpack.c.bf16 %v2249_v20, %v2248_v19  ;;  %v2250_v27 = vld [vmem:[#allocation12 + $0x40] sm:$0xff] }
 0x805   :  { %3399 = vtanh.f32 %v3265_v28  ;;  %v2251_v28 = vld [vmem:[#allocation12 + $0x48] sm:$0xff] }
 0x80c   :  { %v3394_v29 = vpop.eup %3393 }
 0x80d   :  { %v3396_v35 = vpop.eup %3395  ;;  %v1851_v32 = vadd.f32 1.0, %v3394_v29  ;;  %v3223_v29 = vpack.c.bf16 %v2251_v28, %v2250_v27 }
 0x80e   :  { %v1857_v36 = vadd.f32 1.0, %v3396_v35  ;;  %v3398_v37 = vpop.eup %3397  ;;  %v2252_v35 = vld [vmem:[#allocation12 + $0x50] sm:$0xff] }
 0x80f   :  { %3401 = vrcp.f32 %v1851_v32  ;;  %v3400_v40 = vpop.eup %3399  ;;  %v1864_v63 = vadd.f32 1.0, %v3398_v37  ;;  %v2253_v32 = vld [vmem:[#allocation12 + $0x58] sm:$0xff]  ;;  %v2254_v37 = vld [vmem:[#allocation12 + $0x60] sm:$0xff] }
 0x810   :  { %3403 = vrcp.f32 %v1857_v36  ;;  %v3227_v36 = vpack.c.bf16 %v2253_v32, %v2252_v35 }
 0x811   :  { %3405 = vrcp.f32 %v1864_v63 }
 0x819   :  { %v3402_v43 = vpop.eup %3401 }
 0x81a   :  { %v3404_v51 = vpop.eup %3403  ;;  %v1868_v44 = vmul.f32 %v3402_v43, %v3400_v40  ;;  %v2255_v40 = vld [vmem:[#allocation12 + $0x68] sm:$0xff]  ;;  %v2256_v43 = vld [vmem:[#allocation12 + $0x70] sm:$0xff] }
 0x81b   :  { %v1867_v1 = vmul.f32 %v3404_v51, %v4099_v48  ;;  %v3406_v47 = vpop.eup %3405  ;;  %v2257_v51 = vld [vmem:[#allocation12 + $0x78] sm:$0xff] }
 0x81d   :  { %v4145_v2 = vadd.f32 %v1868_v44, %v1867_v1  ;;  %v3235_v44 = vpack.c.bf16 %v2257_v51, %v2256_v43 }
 0x81f   :  { %3407 = vtanh.f32 %v4145_v2 }
 0x829   :  { %v3408_v7 = vpop.eup %3407 }
 0x82a   :  { %v4148_v10 = vmul.f32 %v3408_v7, %v3406_v47 }
 0x82c   :  { %1946 = vmatmul.mubr.f32.vlgmr.msra.gmra.mrb[12].mxu0 %v4148_v10  ;;  %2017 = vmatmul.mubr.f32.vlgmr.msra.gmra.mrb[28].mxu1 %v4148_v10 }
 0x82d   :  { %3146 = vmatpush1.bf16.msra.mxu0 %v3743_v45  ;;  %3178 = vmatpush1.bf16.msra.mxu1 %v3745_v46  ;;  %v2243_v45 = vld [vmem:[#allocation12 + $0x8] sm:$0xff] }
 0x82e   :  { %3148 = vmatprep.subr.bf16.mxu0 %v3748_v55  ;;  %3180 = vmatprep.subr.bf16.mxu1 %v3750_v56 }
 0x82f   :  { %2124 = vmatprep.mubr.f32.mxu0 %v3567_v31  ;;  %2195 = vmatprep.mubr.f32.mxu1 %v3567_v31  ;;  %v2242_v31 = vld [vmem:[#allocation12] sm:$0xff] }
 0x830   :  { %v3207_v46 = vpack.c.bf16 %v2243_v45, %v2242_v31 }
 0x831   :  { %3150 = vmatpush1.bf16.msra.mxu0 %v3754_v61  ;;  %3182 = vmatpush1.bf16.msra.mxu1 %v3756_v62 }
 0x832   :  { %3152 = vmatprep.subr.bf16.mxu0 %v3765_v6  ;;  %3184 = vmatprep.subr.bf16.mxu1 %v3767_v8 }
 0x835   :  { %3154 = vmatpush1.bf16.msra.mxu0 %v3771_v13  ;;  %3186 = vmatpush1.bf16.msra.mxu1 %v3773_v14 }
 0x836   :  { %3156 = vmatprep.subr.bf16.mxu0 %v3782_v22  ;;  %3188 = vmatprep.subr.bf16.mxu1 %v3784_v23 }
 0x839   :  { %3158 = vmatpush1.bf16.msra.mxu0 %v3788_v30  ;;  %3190 = vmatpush1.bf16.msra.mxu1 %v3790_v34 }
 0x83a   :  { %3160 = vmatprep.subr.bf16.mxu0 %v3797_v41  ;;  %3192 = vmatprep.subr.bf16.mxu1 %v3799_v42 }
 0x83d   :  { %3162 = vmatpush1.bf16.msra.mxu0 %v3803_v49  ;;  %3194 = vmatpush1.bf16.msra.mxu1 %v3805_v50 }
 0x83e   :  { %3164 = vmatprep.subr.bf16.mxu0 %v3813_v59  ;;  %3196 = vmatprep.subr.bf16.mxu1 %v3815_v60 }
 0x841   :  { %3166 = vmatpush1.bf16.msra.mxu0 %v3819_v3  ;;  %3198 = vmatpush1.bf16.msra.mxu1 %v3821_v4 }
 0x842   :  { %3168 = vmatprep.subr.bf16.mxu0 %v3828_v15  ;;  %3200 = vmatprep.subr.bf16.mxu1 %v3830_v16 }
 0x845   :  { %3170 = vmatpush1.bf16.msra.mxu0 %v3834_v24  ;;  %3202 = vmatpush1.bf16.msra.mxu1 %v3836_v25  ;;  %v2244_v25 = vld [vmem:[#allocation12 + $0x10] sm:$0xff] }
 0x846   :  { %3172 = vmatprep.subr.bf16.mxu0 %v3844_v38  ;;  %3204 = vmatprep.subr.bf16.mxu1 %v3846_v39  ;;  %v2245_v38 = vld [vmem:[#allocation12 + $0x18] sm:$0xff] }
 0x847   :  { %v3211_v48 = vpack.c.bf16 %v2245_v38, %v2244_v25 }
 0x849   :  { %3174 = vmatpush1.bf16.msra.mxu0 %v3850_v33  ;;  %3206 = vmatpush1.bf16.msra.mxu1 %v3852_v21 }
 0x84a   :  { %3208 = vmatprep.subr.bf16.mxu0 %v3207_v46 }
 0x8ff   :  { %v1947_v55 = vpop.f32.mrb[12].mxu0  ;;  %v2018_v56 = vpop.f32.mrb[28].mxu1 }
 0x900   :  { %v3251_v61 = vadd.f32 %v1947_v55, %v3903_v52  ;;  %v1949_v62 = vpop.f32.mrb[13].mxu0  ;;  %v2020_v6 = vpop.f32.mrb[29].mxu1  ;;  %v3267_v30 = vadd.f32 %v2018_v56, %v3912_v12 }
 0x901   :  { %v3252_v8 = vadd.f32 %v1949_v62, %v3905_v53  ;;  %v3268_v22 = vadd.f32 %v2020_v6, %v3909_v9 }
 0x902   :  { %v2433_v13 = vmul.f32 -1.442695, %v3251_v61 }
 0x903   :  { %v2434_v14 = vmul.f32 -1.442695, %v3252_v8  ;;  %v2435_v23 = vmul.f32 -1.442695, %v3268_v22 }
 0x904   :  { %3409 = vpow2.f32 %v2433_v13 }
 0x905   :  { %3411 = vpow2.f32 %v2434_v14 }
 0x906   :  { %3413 = vpow2.f32 %v2435_v23 }
 0x907   :  { %3415 = vtanh.f32 %v3267_v30 }
 0x90e   :  { %v3410_v34 = vpop.eup %3409 }
 0x90f   :  { %v3412_v41 = vpop.eup %3411  ;;  %v2030_v42 = vadd.f32 1.0, %v3410_v34 }
 0x910   :  { %v2036_v49 = vadd.f32 1.0, %v3412_v41  ;;  %v3414_v50 = vpop.eup %3413 }
 0x911   :  { %3417 = vrcp.f32 %v2030_v42  ;;  %v3416_v59 = vpop.eup %3415  ;;  %v2043_v15 = vadd.f32 1.0, %v3414_v50 }
 0x912   :  { %3419 = vrcp.f32 %v2036_v49 }
 0x913   :  { %3421 = vrcp.f32 %v2043_v15 }
 0x91b   :  { %v3418_v60 = vpop.eup %3417 }
 0x91c   :  { %v3420_v3 = vpop.eup %3419  ;;  %v2047_v4 = vmul.f32 %v3418_v60, %v3416_v59 }
 0x91d   :  { %v2046_v16 = vmul.f32 %v3420_v3, %v4145_v2  ;;  %v3422_v39 = vpop.eup %3421 }
 0x91f   :  { %v4189_v24 = vadd.f32 %v2047_v4, %v2046_v16 }
 0x921   :  { %3423 = vtanh.f32 %v4189_v24 }
 0x92b   :  { %v3424_v33 = vpop.eup %3423 }
 0x92c   :  { %v2050_v21 = vmul.f32 %v3424_v33, %v3422_v39 }
 0x92e   :  { %2125 = vmatmul.mubr.f32.vlgmr.msra.gmra.mrb[14].mxu0 %v2050_v21  ;;  %2196 = vmatmul.mubr.f32.vlgmr.msra.gmra.mrb[30].mxu1 %v2050_v21 }
 0x92f   :  { %3210 = vmatpush3.bf16.msra.mxu0 %v3207_v46  ;;  %2587 = vmatprep.mubr.f32.mxu0 %v3918_v54  ;;  %v3231_v54 = vpack.c.bf16 %v2255_v40, %v2254_v37 }
 0x930   :  { %3212 = vmatprep.subr.bf16.mxu0 %v3211_v48 }
 0x933   :  { %3214 = vmatpush3.bf16.msra.mxu0 %v3211_v48 }
 0x934   :  { %3216 = vmatprep.subr.bf16.mxu0 %v3215_v18 }
 0x937   :  { %3218 = vmatpush3.bf16.msra.mxu0 %v3215_v18 }
 0x938   :  { %3220 = vmatprep.subr.bf16.mxu0 %v3219_v26 }
 0x93b   :  { %3222 = vmatpush3.bf16.msra.mxu0 %v3219_v26 }
 0x93c   :  { %3224 = vmatprep.subr.bf16.mxu0 %v3223_v29 }
 0x93f   :  { %3226 = vmatpush3.bf16.msra.mxu0 %v3223_v29 }
 0x940   :  { %3228 = vmatprep.subr.bf16.mxu0 %v3227_v36 }
 0x943   :  { %3230 = vmatpush3.bf16.msra.mxu0 %v3227_v36 }
 0x944   :  { %3232 = vmatprep.subr.bf16.mxu0 %v3231_v54 }
 0x947   :  { %3234 = vmatpush3.bf16.msra.mxu0 %v3231_v54 }
 0x948   :  { %3236 = vmatprep.subr.bf16.mxu0 %v3235_v44 }
 0x94b   :  { %3238 = vmatpush3.bf16.msra.mxu0 %v3235_v44 }
 0x94e   :  { %2588 = vmatmul.mubr.f32.vlgmr.msra.gmra.mrb[16].mxu0 %v3964_v57 }
 0x94f   :  { %2590 = vmatprep.mubr.f32.mxu0 %v4010_v58 }
 0x952   :  { %2591 = vmatmul.mubr.f32.gmra.mrb[18].mxu0 %v4056_v0 }
 0x953   :  { %2593 = vmatprep.mubr.f32.mxu0 %v4102_v5 }
 0x956   :  { %2594 = vmatmul.mubr.f32.gmra.mrb[20].mxu0 %v4148_v10 }
 0x957   :  { %2596 = vmatprep.mubr.f32.mxu0 %v2050_v21 }
 0xa01   :  { %v2126_v63 = vpop.f32.mrb[14].mxu0  ;;  %v2197_v1 = vpop.f32.mrb[30].mxu1 }
 0xa02   :  { %v3253_v2 = vadd.f32 %v2126_v63, %v3903_v52  ;;  %v2128_v47 = vpop.f32.mrb[15].mxu0  ;;  %v2199_v7 = vpop.f32.mrb[31].mxu1  ;;  %v3269_v0 = vadd.f32 %v2197_v1, %v3912_v12 }
 0xa03   :  { %v3254_v31 = vadd.f32 %v2128_v47, %v3905_v53  ;;  %v3270_v57 = vadd.f32 %v2199_v7, %v3909_v9  ;;  %v2439_v9 = vld [vmem:[%s4230_s9] ss:$0 sm:$0xff]  ;;  %s3568_s9 = smov [#allocation14]  }
 0xa04   :  { %v2436_v45 = vmul.f32 -1.442695, %v3253_v2  ;;  %s2383_s23 = sshll.u32 %s3568_s9, 4  ;;  %s2384_s23 = int_to_ptr.vmem [resolvable:$true] %s2383_s23 }
 0xa05   :  { %v2437_v46 = vmul.f32 -1.442695, %v3254_v31  ;;  %v2438_v58 = vmul.f32 -1.442695, %v3270_v57  ;;  %s3529_s24 = scalar_lea.vmem %s2384_s23, 1024  ;;  %p3534_p5 = scmp.lt.s32.totalorder %s2384_s23, %s2384_s23 }
 0xa06   :  { %3425 = vpow2.f32 %v2436_v45  ;;  %p3530_p4 = scmp.ne.s32.totalorder %s2384_s23, %s3529_s24  ;;  %p3535_p6 = scmp.lt.s32.totalorder %s3529_s24, %s3529_s24 }
 0xa07   :  { %3427 = vpow2.f32 %v2437_v46 }
 0xa08   :  { %3429 = vpow2.f32 %v2438_v58  ;;  %p3536_p7 = por %p3535_p6, %p3534_p5 }
 0xa09   :  { %3431 = vtanh.f32 %v3269_v0 }
 0xa0a   :  { %p3537_p8 = pnand %p3536_p7, %p3530_p4 }
 0xa10   :  { %v3426_v5 = vpop.eup %3425 }
 0xa11   :  { %v3428_v10 = vpop.eup %3427  ;;  %v2209_v55 = vadd.f32 1.0, %v3426_v5 }
 0xa12   :  { %v2215_v56 = vadd.f32 1.0, %v3428_v10  ;;  %v3430_v52 = vpop.eup %3429 }
 0xa13   :  { %3433 = vrcp.f32 %v2209_v55  ;;  %v3432_v61 = vpop.eup %3431  ;;  %v2222_v8 = vadd.f32 1.0, %v3430_v52 }
 0xa14   :  { %3435 = vrcp.f32 %v2215_v56 }
 0xa15   :  { %3437 = vrcp.f32 %v2222_v8 }
 0xa1d   :  { %v3434_v53 = vpop.eup %3433 }
 0xa1e   :  { %v3436_v62 = vpop.eup %3435  ;;  %v2226_v6 = vmul.f32 %v3434_v53, %v3432_v61 }
 0xa1f   :  { %v2225_v13 = vmul.f32 %v3436_v62, %v4189_v24  ;;  %v3438_v4 = vpop.eup %3437 }
 0xa21   :  { %v2589_v12 = vpop.f32.mrb[16].mxu0  ;;  %v2227_v14 = vadd.f32 %v2226_v6, %v2225_v13 }
 0xa22   :  { %v2337_v22 = vadd.f32 %v2589_v12, %v2439_v9  ;;  %v2331_v23 = vpop.f32.mrb[17].mxu0 }
 0xa23   :  { %v2332_v30 = vadd.f32 %v2439_v9, %v2331_v23  ;;  %3439 = vtanh.f32 %v2227_v14 }
 0xa24   :  { %2371 = vst [vmem:[#allocation14 + $0x8] sm:$0xff] %v2337_v22 }
 0xa25   :  { %2370 = vst [vmem:[#allocation14] sm:$0xff] %v2332_v30  ;;  %v2592_v34 = vpop.f32.mrb[18].mxu0 }
 0xa26   :  { %v2347_v41 = vadd.f32 %v2592_v34, %v2439_v9  ;;  %v2341_v42 = vpop.f32.mrb[19].mxu0 }
 0xa27   :  { %v2342_v49 = vadd.f32 %v2439_v9, %v2341_v42 }
 0xa28   :  { %2373 = vst [vmem:[#allocation14 + $0x18] sm:$0xff] %v2347_v41 }
 0xa29   :  { %2372 = vst [vmem:[#allocation14 + $0x10] sm:$0xff] %v2342_v49  ;;  %v2595_v50 = vpop.f32.mrb[20].mxu0 }
 0xa2a   :  { %v2357_v59 = vadd.f32 %v2595_v50, %v2439_v9  ;;  %v2351_v60 = vpop.f32.mrb[21].mxu0 }
 0xa2b   :  { %v2352_v3 = vadd.f32 %v2439_v9, %v2351_v60 }
 0xa2c   :  { %2375 = vst [vmem:[#allocation14 + $0x28] sm:$0xff] %v2357_v59 }
 0xa2d   :  { %v3440_v15 = vpop.eup %3439  ;;  %2374 = vst [vmem:[#allocation14 + $0x20] sm:$0xff] %v2352_v3 }
 0xa2e   :  { %v2229_v16 = vmul.f32 %v3440_v15, %v3438_v4 }
 0xa30   :  { %2597 = vmatmul.mubr.f32.gmra.mrb[22].mxu0 %v2229_v16 }
 0xb03   :  { %v2598_v24 = vpop.f32.mrb[22].mxu0 }
 0xb04   :  { %v2367_v25 = vadd.f32 %v2598_v24, %v2439_v9  ;;  %v2361_v38 = vpop.f32.mrb[23].mxu0 }
 0xb05   :  { %v2362_v39 = vadd.f32 %v2439_v9, %v2361_v38 }
 0xb06   :  { %2377 = vst [vmem:[#allocation14 + $0x38] sm:$0xff] %v2367_v25 }
 0xb07   :  { %2376 = vst [vmem:[#allocation14 + $0x30] sm:$0xff] %v2362_v39 }
 0xb08   :  { %3540 = shalt.err (!%p3537_p8)
}
 0xb09   :  { %s3541_s30 = scalar_lea.hbm %s4231_s10, 1024 }
 0xb0a   :  { %p3542_p9 = scmp.ne.s32.totalorder %s4231_s10, %s3541_s30  ;;  %p3545_p10 = scmp.lt.u32.totalorder %s3541_s30, %s4231_s10 }
 0xb0c   :  { %p3547_p11 = pnand %p3545_p10, %p3542_p9 }
 0xb0e   :  { %3550 = shalt.err (!%p3547_p11)
}
 0xb0f   :  { %2389 = dma.vmem_to_hbm [thread:$0]  %s2384_s23, 1024, %s4231_s10, [#allocation8], %s3563_s5, %s3563_s5, %s3564_s14  }
 0xb10   :  { %3557 = dma.done.wait [#allocation8], 1024  }
 0xb11   :  { %3558 = vsyncadd [#allocation8], 4294966272 }
 0xb12   :  { %2393 = vsyncpa [#allocation7], 1 }
 0xb13   :  { %2394 = vsyncpa [#allocation10], 1 }
 0xb14   :  { %2395 = vsyncpa [#allocation13], 1 }
 0xb15   :  { %2396 = vsyncpa [#allocation8], 1 }

// kernel: tpu_custom_call.1
= control target key start
LH: loop header
LB: loop body
LE: loop exit
PB: predicated region body
PF: predicated region fallthrough
CT: control target
= control target key end

     0   :  { %15 = vsyncpa [#allocation7], 0  ;;  %s4221_s0 = inlined_call_operand.vmem [shape: f32[64,6], index: 0, kind: input, shape index: {}]   ;;  %s4222_s1 = inlined_call_operand.vmem [shape: f32[6,128], index: 1, kind: input, shape index: {}]   ;;  %s4223_s2 = inlined_call_operand.vmem [shape: f32[1,128], index: 2, kind: input, shape index: {}]   ;;  %s4224_s3 = inlined_call_operand.hbm [shape: f32[128,128], index: 3, kind: input, shape index: {}]   ;;  %s4225_s4 = inlined_call_operand.vmem [shape: f32[1,128], index: 4, kind: input, shape index: {}]   ;;  %s4226_s5 = inlined_call_operand.hbm [shape: f32[128,512], index: 5, kind: input, shape index: {}]   ;;  %s4227_s6 = inlined_call_operand.hbm [shape: f32[128,512], index: 6, kind: input, shape index: {}]   ;;  %s4228_s7 = inlined_call_operand.vmem [shape: f32[1,512], index: 7, kind: input, shape index: {}]   ;;  %s4229_s8 = inlined_call_operand.hbm [shape: f32[128,128], index: 8, kind: input, shape index: {}]   ;;  %s4230_s9 = inlined_call_operand.vmem [shape: f32[1,128], index: 9, kind: input, shape index: {}]   ;;  %s4231_s10 = inlined_call_operand.hbm [shape: f32[64,128], index: 10, kind: output, shape index: {}]  }
   0x1   :  { %16 = vsyncpa [#allocation10], 0 }
   0x2   :  { %17 = vsyncpa [#allocation13], 0 }
   0x3   :  { %18 = vsyncpa [#allocation8], 0  ;;  %s3559_s13 = smov [#allocation9]   ;;  %s3441_s17 = scalar_lea.hbm %s4226_s5, 8192 }
   0x4   :  { %s44_s14 = sshll.u32 %s3559_s13, 4  ;;  %p3442_p0 = scmp.ne.s32.totalorder %s4226_s5, %s3441_s17  ;;  %s45_s14 = int_to_ptr.vmem [resolvable:$true] %s44_s14 }
   0x5   :  { %p3445_p1 = scmp.lt.u32.totalorder %s3441_s17, %s4226_s5 }
   0x7   :  { %p3447_p2 = pnand %p3445_p1, %p3442_p0 }
   0x9   :  { %3450 = shalt.err (!%p3447_p2)
}
   0xa   :  { %s3451_s22 = scalar_lea.vmem %s45_s14, 8192  ;;  %p3456_p4 = scmp.lt.s32.totalorder %s45_s14, %s45_s14 }
   0xb   :  { %p3452_p3 = scmp.ne.s32.totalorder %s45_s14, %s3451_s22  ;;  %p3457_p5 = scmp.lt.s32.totalorder %s3451_s22, %s3451_s22 }
   0xd   :  { %p3458_p6 = por %p3457_p5, %p3456_p4 }
   0xf   :  { %p3459_p7 = pnand %p3458_p6, %p3452_p3 }
  0x11   :  { %3462 = shalt.err (!%p3459_p7)
}
  0x12   :  { %s3560_s23 = smov 512   ;;  %s3561_s24 = smov 32  }
  0x13   :  { %50 = dma.hbm_to_vmem [thread:$0]  %s4226_s5, 8192, %s45_s14, [#allocation10], %s3560_s23, %s3560_s23, %s3561_s24  }
  0x14   :  { %s3562_s27 = smov [#allocation6]   ;;  %s3463_s11 = scalar_lea.hbm %s4224_s3, 2048 }
  0x15   :  { %s30_s28 = sshll.u32 %s3562_s27, 4  ;;  %p3464_p8 = scmp.ne.s32.totalorder %s4224_s3, %s3463_s11  ;;  %s31_s28 = int_to_ptr.vmem [resolvable:$true] %s30_s28 }
  0x16   :  { %p3467_p9 = scmp.lt.u32.totalorder %s3463_s11, %s4224_s3 }
  0x18   :  { %p3469_p10 = pnand %p3467_p9, %p3464_p8 }
  0x1a   :  { %3472 = shalt.err (!%p3469_p10)
}
  0x1b   :  { %s3473_s17 = scalar_lea.vmem %s31_s28, 2048  ;;  %p3478_p12 = scmp.lt.s32.totalorder %s31_s28, %s31_s28 }
  0x1c   :  { %p3474_p11 = scmp.ne.s32.totalorder %s31_s28, %s3473_s17  ;;  %p3479_p13 = scmp.lt.s32.totalorder %s3473_s17, %s3473_s17 }
  0x1e   :  { %p3480_p0 = por %p3479_p13, %p3478_p12 }
  0x20   :  { %p3481_p1 = pnand %p3480_p0, %p3474_p11 }
  0x22   :  { %3484 = shalt.err (!%p3481_p1)
}
  0x23   :  { %s3563_s5 = smov 128   ;;  %s3564_s14 = smov 8  }
  0x24   :  { %36 = dma.hbm_to_vmem [thread:$0]  %s4224_s3, 2048, %s31_s28, [#allocation7], %s3563_s5, %s3563_s5, %s3564_s14  }
  0x25   :  { %s3565_s20 = smov [#allocation11]   ;;  %s3566_s22 = smov [#allocation12]  }
  0x26   :  { %s56_s21 = sshll.u32 %s3565_s20, 4  ;;  %s70_s25 = sshll.u32 %s3566_s22, 4  ;;  %s57_s21 = int_to_ptr.vmem [resolvable:$true] %s56_s21  ;;  %s3654_s25 = int_to_ptr.vmem [resolvable:$true] %s70_s25 }
  0x27   :  { %s3485_s29 = scalar_lea.hbm %s4227_s6, 8192 }
  0x28   :  { %p3486_p2 = scmp.ne.s32.totalorder %s4227_s6, %s3485_s29  ;;  %p3489_p3 = scmp.lt.u32.totalorder %s3485_s29, %s4227_s6 }
  0x2a   :  { %p3491_p4 = pnand %p3489_p3, %p3486_p2 }
  0x2c   :  { %3494 = shalt.err (!%p3491_p4)
}
  0x2d   :  { %s3495_s3 = scalar_lea.vmem %s57_s21, 8192  ;;  %p3500_p6 = scmp.lt.s32.totalorder %s57_s21, %s57_s21 }
  0x2e   :  { %p3496_p5 = scmp.ne.s32.totalorder %s57_s21, %s3495_s3  ;;  %p3501_p7 = scmp.lt.s32.totalorder %s3495_s3, %s3495_s3 }
  0x30   :  { %p3502_p8 = por %p3501_p7, %p3500_p6 }
  0x32   :  { %p3503_p9 = pnand %p3502_p8, %p3496_p5 }
  0x34   :  { %3506 = shalt.err (!%p3503_p9)
}
  0x35   :  { %62 = dma.hbm_to_vmem [thread:$0]  %s4227_s6, 8192, %s57_s21, [#allocation10], %s3560_s23, %s3560_s23, %s3561_s24  }
  0x36   :  { %s3507_s18 = scalar_lea.hbm %s4229_s8, 2048 }
  0x37   :  { %p3508_p10 = scmp.ne.s32.totalorder %s4229_s8, %s3507_s18  ;;  %p3511_p11 = scmp.lt.u32.totalorder %s3507_s18, %s4229_s8 }
  0x39   :  { %p3513_p12 = pnand %p3511_p11, %p3508_p10 }
  0x3b   :  { %3516 = shalt.err (!%p3513_p12)
}
  0x3c   :  { %s3517_s27 = scalar_lea.vmem %s3654_s25, 2048  ;;  %p3522_p0 = scmp.lt.s32.totalorder %s3654_s25, %s3654_s25 }
  0x3d   :  { %p3518_p13 = scmp.ne.s32.totalorder %s3654_s25, %s3517_s27  ;;  %p3523_p1 = scmp.lt.s32.totalorder %s3517_s27, %s3517_s27 }
  0x3f   :  { %p3524_p2 = por %p3523_p1, %p3522_p0 }
  0x41   :  { %p3525_p3 = pnand %p3524_p2, %p3518_p13 }
  0x43   :  { %3528 = shalt.err (!%p3525_p3)
}
  0x44   :  { %76 = dma.hbm_to_vmem [thread:$0]  %s4229_s8, 2048, %s3654_s25, [#allocation13], %s3563_s5, %s3563_s5, %s3564_s14  }
  0x45   :  { %3551 = dma.done.wait [#allocation7], 2048  }
  0x46   :  { %3552 = vsyncadd [#allocation7], 4294965248 }
  0x47   :  { %3553 = dma.done.wait [#allocation10], 16384  }
  0x48   :  { %3554 = vsyncadd [#allocation10], 4294950912 }
  0x49   :  { %3555 = dma.done.wait [#allocation13], 2048  }
  0x4a   :  { %3556 = vsyncadd [#allocation13], 4294965248  ;;  %vm138_vm0 = vcmask 1045504   ;;  %vm113_vm1 = vcmask 48128   ;;  %v105_v0 = vld [vmem:[%s4222_s1] sm:$0x3f] }
  0x4b   :  { %v97_v1 = vld [vmem:[%s4221_s0] sm:$0xff]  ;;  %v98_v2 = vld [vmem:[%s4221_s0 + $0x8] sm:$0xff]  ;;  %2497 = vmatprep.subr.msk.mxu1 %vm138_vm0, %v105_v0  ;;  %v99_v3 = vld [vmem:[%s4221_s0 + $0x10] sm:$0xff] }
  0x4c   :  { %2499 = vmatprep.mubr.msk.f32.mxu1 %vm113_vm1, %v97_v1  ;;  %2498 = vmatpush3.msk.msra.mxu1 %vm138_vm0, %v105_v0  ;;  %v255_v4 = vld [vmem:[#allocation6] sm:$0xff]  ;;  %v256_v5 = vld [vmem:[#allocation6 + $0x8] sm:$0xff]  ;;  %v257_v6 = vld [vmem:[#allocation6 + $0x10] sm:$0xff] }
  0x4d   :  { %2500 = vmatmul.mubr.msk.f32.vlgmr.msra.gmra.mrb[0].mxu1 %vm113_vm1, %v98_v2  ;;  %v100_v7 = vld [vmem:[%s4221_s0 + $0x18] sm:$0xff]  ;;  %v2599_v8 = vpack.c.bf16 %v256_v5, %v255_v4  ;;  %v258_v9 = vld [vmem:[#allocation6 + $0x18] sm:$0xff]  ;;  %v259_v12 = vld [vmem:[#allocation6 + $0x20] sm:$0xff] }
  0x4e   :  { %2502 = vmatprep.mubr.msk.f32.mxu1 %vm113_vm1, %v99_v3  ;;  %v101_v10 = vld [vmem:[%s4221_s0 + $0x20] sm:$0xff]  ;;  %v2603_v11 = vpack.c.bf16 %v258_v9, %v257_v6  ;;  %v260_v13 = vld [vmem:[#allocation6 + $0x28] sm:$0xff]  ;;  %v102_v14 = vld [vmem:[%s4221_s0 + $0x28] sm:$0xff] }
  0x4f   :  { %2600 = vmatprep.subr.bf16.mxu1 %v2599_v8  ;;  %v103_v15 = vld [vmem:[%s4221_s0 + $0x30] sm:$0xff]  ;;  %v2607_v16 = vpack.c.bf16 %v260_v13, %v259_v12  ;;  %v261_v17 = vld [vmem:[#allocation6 + $0x30] sm:$0xff]  ;;  %v262_v18 = vld [vmem:[#allocation6 + $0x38] sm:$0xff] }
  0x50   :  { %2602 = vmatpush3.bf16.msra.mxu1 %v2599_v8  ;;  %v104_v19 = vld [vmem:[%s4221_s0 + $0x38] sm:$0xff]  ;;  %v2611_v20 = vpack.c.bf16 %v262_v18, %v261_v17  ;;  %v263_v21 = vld [vmem:[#allocation6 + $0x40] sm:$0xff]  ;;  %v264_v22 = vld [vmem:[#allocation6 + $0x48] sm:$0xff] }
  0x51   :  { %2503 = vmatmul.mubr.msk.f32.gmra.mrb[2].mxu1 %vm113_vm1, %v100_v7  ;;  %2604 = vmatprep.subr.bf16.mxu1 %v2603_v11  ;;  %v2615_v23 = vpack.c.bf16 %v264_v22, %v263_v21  ;;  %v265_v24 = vld [vmem:[#allocation6 + $0x50] sm:$0xff]  ;;  %v266_v25 = vld [vmem:[#allocation6 + $0x58] sm:$0xff]  ;;  %v267_v27 = vld [vmem:[#allocation6 + $0x60] sm:$0xff] }
  0x52   :  { %2505 = vmatprep.mubr.msk.f32.mxu1 %vm113_vm1, %v101_v10  ;;  %v2619_v26 = vpack.c.bf16 %v266_v25, %v265_v24  ;;  %v268_v28 = vld [vmem:[#allocation6 + $0x68] sm:$0xff]  ;;  %v269_v30 = vld [vmem:[#allocation6 + $0x70] sm:$0xff]  ;;  %v270_v31 = vld [vmem:[#allocation6 + $0x78] sm:$0xff] }
  0x53   :  { %v2623_v29 = vpack.c.bf16 %v268_v28, %v267_v27  ;;  %v2627_v32 = vpack.c.bf16 %v270_v31, %v269_v30  ;;  %v392_v33 = vld [vmem:[#allocation9 + $0x8] sm:$0xff]  ;;  %v391_v35 = vld [vmem:[#allocation9] sm:$0xff]  ;;  %v394_v38 = vld [vmem:[#allocation9 + $0x18] sm:$0xff] }
  0x54   :  { %2606 = vmatpush3.bf16.msra.mxu1 %v2603_v11  ;;  %v396_v34 = vld [vmem:[#allocation9 + $0x28] sm:$0xff]  ;;  %v395_v37 = vld [vmem:[#allocation9 + $0x20] sm:$0xff]  ;;  %v398_v39 = vld [vmem:[#allocation9 + $0x38] sm:$0xff] }
  0x55   :  { %2506 = vmatmul.mubr.msk.f32.gmra.mrb[4].mxu1 %vm113_vm1, %v102_v14  ;;  %2608 = vmatprep.subr.bf16.mxu1 %v2607_v16  ;;  %v2631_v36 = vpack.c.bf16 %v396_v34, %v392_v33  ;;  %v2633_v40 = vpack.c.bf16 %v395_v37, %v391_v35  ;;  %v2663_v41 = vpack.c.bf16 %v398_v39, %v394_v38  ;;  %v400_v42 = vld [vmem:[#allocation9 + $0x48] sm:$0xff]  ;;  %v399_v44 = vld [vmem:[#allocation9 + $0x40] sm:$0xff]  ;;  %v2404_v14 = vld [vmem:[%s4223_s2] ss:$0 sm:$0xff] }
  0x56   :  { %2508 = vmatprep.mubr.msk.f32.mxu1 %vm113_vm1, %v103_v15  ;;  %v404_v43 = vld [vmem:[#allocation9 + $0x68] sm:$0xff]  ;;  %v403_v45 = vld [vmem:[#allocation9 + $0x60] sm:$0xff]  ;;  %v393_v18 = vld [vmem:[#allocation9 + $0x10] sm:$0xff] }
  0x57   :  { %2632 = vmatprep.subr.bf16.mxu0 %v2631_v36  ;;  %v2635_v46 = vpack.c.bf16 %v404_v43, %v400_v42  ;;  %v2637_v47 = vpack.c.bf16 %v403_v45, %v399_v44  ;;  %v408_v48 = vld [vmem:[#allocation9 + $0x88] sm:$0xff]  ;;  %v407_v51 = vld [vmem:[#allocation9 + $0x80] sm:$0xff]  ;;  %v402_v21 = vld [vmem:[#allocation9 + $0x58] sm:$0xff] }
  0x58   :  { %2610 = vmatpush3.bf16.msra.mxu1 %v2607_v16  ;;  %2634 = vmatpush1.bf16.msra.mxu0 %v2633_v40  ;;  %v412_v49 = vld [vmem:[#allocation9 + $0xa8] sm:$0xff]  ;;  %v411_v52 = vld [vmem:[#allocation9 + $0xa0] sm:$0xff]  ;;  %v406_v22 = vld [vmem:[#allocation9 + $0x78] sm:$0xff] }
  0x59   :  { %2509 = vmatmul.mubr.msk.f32.gmra.mrb[6].mxu1 %vm113_vm1, %v104_v19  ;;  %2612 = vmatprep.subr.bf16.mxu1 %v2611_v20  ;;  %v2639_v50 = vpack.c.bf16 %v412_v49, %v408_v48  ;;  %v2641_v53 = vpack.c.bf16 %v411_v52, %v407_v51  ;;  %v416_v54 = vld [vmem:[#allocation9 + $0xc8] sm:$0xff]  ;;  %v415_v57 = vld [vmem:[#allocation9 + $0xc0] sm:$0xff]  ;;  %v397_v19 = vld [vmem:[#allocation9 + $0x30] sm:$0xff] }
  0x5a   :  { %2636 = vmatprep.subr.bf16.mxu0 %v2635_v46  ;;  %v420_v55 = vld [vmem:[#allocation9 + $0xe8] sm:$0xff]  ;;  %v419_v58 = vld [vmem:[#allocation9 + $0xe0] sm:$0xff]  ;;  %v2665_v25 = vpack.c.bf16 %v397_v19, %v393_v18  ;;  %v401_v30 = vld [vmem:[#allocation9 + $0x50] sm:$0xff] }
  0x5b   :  { %v2643_v56 = vpack.c.bf16 %v420_v55, %v416_v54  ;;  %v424_v59 = vld [vmem:[#allocation9 + $0x108] sm:$0xff]  ;;  %v2645_v61 = vpack.c.bf16 %v419_v58, %v415_v57  ;;  %v423_v63 = vld [vmem:[#allocation9 + $0x100] sm:$0xff]  ;;  %v405_v31 = vld [vmem:[#allocation9 + $0x70] sm:$0xff] }
  0x5c   :  { %2614 = vmatpush3.bf16.msra.mxu1 %v2611_v20  ;;  %2638 = vmatpush1.bf16.msra.mxu0 %v2637_v47  ;;  %v428_v60 = vld [vmem:[#allocation9 + $0x128] sm:$0xff]  ;;  %v427_v0 = vld [vmem:[#allocation9 + $0x120] sm:$0xff]  ;;  %v410_v33 = vld [vmem:[#allocation9 + $0x98] sm:$0xff]  ;;  %v2669_v38 = vpack.c.bf16 %v405_v31, %v401_v30  ;;  %v3567_v31 = vmov 0.0  }
  0x5d   :  { %2616 = vmatprep.subr.bf16.mxu1 %v2615_v23  ;;  %2640 = vmatprep.subr.bf16.mxu0 %v2639_v50  ;;  %v2647_v62 = vpack.c.bf16 %v428_v60, %v424_v59  ;;  %v432_v1 = vld [vmem:[#allocation9 + $0x148] sm:$0xff]  ;;  %v2649_v3 = vpack.c.bf16 %v427_v0, %v423_v63  ;;  %v431_v5 = vld [vmem:[#allocation9 + $0x140] sm:$0xff]  ;;  %v414_v34 = vld [vmem:[#allocation9 + $0xb8] sm:$0xff] }
  0x5e   :  { %v436_v2 = vld [vmem:[#allocation9 + $0x168] sm:$0xff]  ;;  %v435_v6 = vld [vmem:[#allocation9 + $0x160] sm:$0xff]  ;;  %v409_v42 = vld [vmem:[#allocation9 + $0x90] sm:$0xff]  ;;  %541 = vmatprep.mubr.f32.mxu0 %v3567_v31 }
  0x5f   :  { %v2651_v4 = vpack.c.bf16 %v436_v2, %v432_v1  ;;  %v440_v7 = vld [vmem:[#allocation9 + $0x188] sm:$0xff]  ;;  %v2653_v9 = vpack.c.bf16 %v435_v6, %v431_v5  ;;  %v439_v11 = vld [vmem:[#allocation9 + $0x180] sm:$0xff]  ;;  %v413_v43 = vld [vmem:[#allocation9 + $0xb0] sm:$0xff] }
  0x60   :  { %2618 = vmatpush3.bf16.msra.mxu1 %v2615_v23  ;;  %2642 = vmatpush1.bf16.msra.mxu0 %v2641_v53  ;;  %v444_v8 = vld [vmem:[#allocation9 + $0x1a8] sm:$0xff]  ;;  %v443_v12 = vld [vmem:[#allocation9 + $0x1a0] sm:$0xff]  ;;  %v418_v45 = vld [vmem:[#allocation9 + $0xd8] sm:$0xff]  ;;  %v2673_v50 = vpack.c.bf16 %v413_v43, %v409_v42 }
  0x61   :  { %2620 = vmatprep.subr.bf16.mxu1 %v2619_v26  ;;  %2644 = vmatprep.subr.bf16.mxu0 %v2643_v56  ;;  %v2655_v10 = vpack.c.bf16 %v444_v8, %v440_v7  ;;  %v2657_v13 = vpack.c.bf16 %v443_v12, %v439_v11  ;;  %v422_v46 = vld [vmem:[#allocation9 + $0xf8] sm:$0xff]  ;;  %v417_v54 = vld [vmem:[#allocation9 + $0xd0] sm:$0xff]  ;;  %v447_v18 = vld [vmem:[#allocation9 + $0x1c0] sm:$0xff] }
  0x62   :  { %v2675_v53 = vpack.c.bf16 %v422_v46, %v418_v45  ;;  %v421_v55 = vld [vmem:[#allocation9 + $0xf0] sm:$0xff]  ;;  %v426_v57 = vld [vmem:[#allocation9 + $0x118] sm:$0xff]  ;;  %v451_v19 = vld [vmem:[#allocation9 + $0x1e0] sm:$0xff] }
  0x63   :  { %v430_v58 = vld [vmem:[#allocation9 + $0x138] sm:$0xff]  ;;  %v425_v63 = vld [vmem:[#allocation9 + $0x110] sm:$0xff]  ;;  %v748_v42 = vld [vmem:[#allocation11 + $0x68] sm:$0xff] }
  0x64   :  { %2622 = vmatpush3.bf16.msra.mxu1 %v2619_v26  ;;  %2646 = vmatpush1.bf16.msra.mxu0 %v2645_v61  ;;  %v2677_v61 = vpack.c.bf16 %v421_v55, %v417_v54  ;;  %v429_v0 = vld [vmem:[#allocation9 + $0x130] sm:$0xff]  ;;  %v434_v1 = vld [vmem:[#allocation9 + $0x158] sm:$0xff] }
  0x65   :  { %2624 = vmatprep.subr.bf16.mxu1 %v2623_v29  ;;  %2648 = vmatprep.subr.bf16.mxu0 %v2647_v62  ;;  %v2679_v62 = vpack.c.bf16 %v430_v58, %v426_v57  ;;  %v438_v2 = vld [vmem:[#allocation9 + $0x178] sm:$0xff]  ;;  %v433_v5 = vld [vmem:[#allocation9 + $0x150] sm:$0xff]  ;;  %v752_v57 = vld [vmem:[#allocation11 + $0x88] sm:$0xff] }
  0x66   :  { %v437_v6 = vld [vmem:[#allocation9 + $0x170] sm:$0xff]  ;;  %v442_v7 = vld [vmem:[#allocation9 + $0x198] sm:$0xff]  ;;  %v756_v58 = vld [vmem:[#allocation11 + $0xa8] sm:$0xff] }
  0x67   :  { %v446_v8 = vld [vmem:[#allocation9 + $0x1b8] sm:$0xff]  ;;  %v441_v11 = vld [vmem:[#allocation9 + $0x190] sm:$0xff] }
  0x68   :  { %2626 = vmatpush3.bf16.msra.mxu1 %v2623_v29  ;;  %2650 = vmatpush1.bf16.msra.mxu0 %v2649_v3  ;;  %v2667_v29 = vpack.c.bf16 %v406_v22, %v402_v21  ;;  %v2681_v3 = vpack.c.bf16 %v429_v0, %v425_v63  ;;  %v445_v12 = vld [vmem:[#allocation9 + $0x1b0] sm:$0xff]  ;;  %v454_v21 = vld [vmem:[#allocation9 + $0x1f8] sm:$0xff]  ;;  %v751_v63 = vld [vmem:[#allocation11 + $0x80] sm:$0xff] }
  0x69   :  { %2628 = vmatprep.subr.bf16.mxu1 %v2627_v32  ;;  %2652 = vmatprep.subr.bf16.mxu0 %v2651_v4  ;;  %v2683_v4 = vpack.c.bf16 %v438_v2, %v434_v1  ;;  %v449_v22 = vld [vmem:[#allocation9 + $0x1d0] sm:$0xff]  ;;  %v742_v30 = vld [vmem:[#allocation11 + $0x38] sm:$0xff] }
  0x6a   :  { %v746_v43 = vld [vmem:[#allocation11 + $0x58] sm:$0xff] }
  0x6c   :  { %2630 = vmatpush3.bf16.msra.mxu1 %v2627_v32  ;;  %2654 = vmatpush1.bf16.msra.mxu0 %v2653_v9  ;;  %v2685_v9 = vpack.c.bf16 %v437_v6, %v433_v5  ;;  %v757_v5 = vld [vmem:[#allocation11 + $0xb0] sm:$0xff]  ;;  %v3765_v6 = vpack.c.bf16 %v756_v58, %v752_v57 }
  0x6d   :  { %2664 = vmatprep.subr.bf16.mxu1 %v2663_v41  ;;  %2656 = vmatprep.subr.bf16.mxu0 %v2655_v10  ;;  %v2671_v41 = vpack.c.bf16 %v414_v34, %v410_v33  ;;  %v2687_v10 = vpack.c.bf16 %v446_v8, %v442_v7  ;;  %v3740_v33 = vld [vmem:[%s4225_s4] ss:$0 sm:$0xff]  ;;  %v735_v34 = vld [vmem:[#allocation11] sm:$0xff]  ;;  %v777_v57 = vld [vmem:[#allocation11 + $0x150] sm:$0xff] }
  0x6e   :  { %v781_v58 = vld [vmem:[#allocation11 + $0x170] sm:$0xff] }
  0x70   :  { %2658 = vmatpush1.bf16.msra.mxu0 %v2657_v13  ;;  %v2689_v13 = vpack.c.bf16 %v445_v12, %v441_v11  ;;  %v762_v11 = vld [vmem:[#allocation11 + $0xd8] sm:$0xff] }
  0x71   :  { %v766_v12 = vld [vmem:[#allocation11 + $0xf8] sm:$0xff] }
 0x120   :  { %v2501_v15 = vpop.f32.mrb[0].mxu1 }
 0x121   :  { %v214_v16 = vadd.f32 %v2501_v15, %v2404_v14  ;;  %v208_v17 = vpop.f32.mrb[1].mxu1  ;;  %v452_v15 = vld [vmem:[#allocation9 + $0x1e8] sm:$0xff] }
 0x122   :  { %v209_v20 = vadd.f32 %v2404_v14, %v208_v17 }
 0x123   :  { %v248_v26 = vmax.f32 %v214_v16, 0.0  ;;  %v450_v16 = vld [vmem:[#allocation9 + $0x1d8] sm:$0xff] }
 0x124   :  { %v247_v23 = vmax.f32 %v209_v20, 0.0  ;;  %v2504_v24 = vpop.f32.mrb[2].mxu1  ;;  %v2661_v20 = vpack.c.bf16 %v451_v19, %v447_v18  ;;  %v763_v18 = vld [vmem:[#allocation11 + $0xe0] sm:$0xff]  ;;  %v761_v19 = vld [vmem:[#allocation11 + $0xd0] sm:$0xff] }
 0x125   :  { %v224_v27 = vadd.f32 %v2504_v24, %v2404_v14  ;;  %v218_v28 = vpop.f32.mrb[3].mxu1  ;;  %v2691_v24 = vpack.c.bf16 %v454_v21, %v450_v16 }
 0x126   :  { %v219_v32 = vadd.f32 %v2404_v14, %v218_v28  ;;  %2543 = vmatprep.mubr.f32.mxu1 %v247_v23  ;;  %v453_v23 = vld [vmem:[#allocation9 + $0x1f0] sm:$0xff]  ;;  %v738_v28 = vld [vmem:[#allocation11 + $0x18] sm:$0xff] }
 0x127   :  { %v250_v35 = vmax.f32 %v224_v27, 0.0  ;;  %2544 = vmatmul.mubr.f32.vlgmr.msra.gmra.mrb[8].mxu1 %v248_v26  ;;  %v736_v26 = vld [vmem:[#allocation11 + $0x8] sm:$0xff] }
 0x128   :  { %v249_v36 = vmax.f32 %v219_v32, 0.0  ;;  %v2507_v37 = vpop.f32.mrb[4].mxu1  ;;  %2666 = vmatpush1.bf16.msra.mxu1 %v2665_v25  ;;  %v2693_v25 = vpack.c.bf16 %v453_v23, %v449_v22  ;;  %v740_v27 = vld [vmem:[#allocation11 + $0x28] sm:$0xff]  ;;  %v3732_v32 = vpack.c.bf16 %v742_v30, %v738_v28  ;;  %v3784_v23 = vpack.c.bf16 %v766_v12, %v762_v11  ;;  %v774_v28 = vld [vmem:[#allocation11 + $0x138] sm:$0xff]  ;;  %v785_v11 = vld [vmem:[#allocation11 + $0x190] sm:$0xff] }
 0x129   :  { %v234_v39 = vadd.f32 %v2507_v37, %v2404_v14  ;;  %v228_v40 = vpop.f32.mrb[5].mxu1  ;;  %2668 = vmatprep.subr.bf16.mxu1 %v2667_v29  ;;  %v3729_v29 = vpack.c.bf16 %v740_v27, %v736_v26  ;;  %v737_v37 = vld [vmem:[#allocation11 + $0x10] sm:$0xff]  ;;  %v772_v26 = vld [vmem:[#allocation11 + $0x128] sm:$0xff]  ;;  %v770_v27 = vld [vmem:[#allocation11 + $0x118] sm:$0xff] }
 0x12a   :  { %2546 = vmatprep.mubr.f32.mxu1 %v249_v36  ;;  %v229_v44 = vadd.f32 %v2404_v14, %v228_v40  ;;  %v739_v36 = vld [vmem:[#allocation11 + $0x20] sm:$0xff]  ;;  %v744_v40 = vld [vmem:[#allocation11 + $0x48] sm:$0xff]  ;;  %v789_v12 = vld [vmem:[#allocation11 + $0x1b0] sm:$0xff] }
 0x12b   :  { %2547 = vmatmul.mubr.f32.gmra.mrb[10].mxu1 %v250_v35  ;;  %v252_v47 = vmax.f32 %v234_v39, 0.0  ;;  %v3743_v45 = vpack.c.bf16 %v739_v36, %v735_v34  ;;  %v3748_v55 = vpack.c.bf16 %v748_v42, %v744_v40  ;;  %v773_v40 = vld [vmem:[#allocation11 + $0x130] sm:$0xff]  ;;  %v3799_v42 = vpack.c.bf16 %v774_v28, %v770_v27 }
 0x12c   :  { %v251_v48 = vmax.f32 %v229_v44, 0.0  ;;  %v2510_v49 = vpop.f32.mrb[6].mxu1  ;;  %2670 = vmatpush1.bf16.msra.mxu1 %v2669_v38  ;;  %v741_v38 = vld [vmem:[#allocation11 + $0x30] sm:$0xff]  ;;  %v750_v44 = vld [vmem:[#allocation11 + $0x78] sm:$0xff] }
 0x12d   :  { %v244_v51 = vadd.f32 %v2510_v49, %v2404_v14  ;;  %v238_v52 = vpop.f32.mrb[7].mxu1  ;;  %2672 = vmatprep.subr.bf16.mxu1 %v2671_v41  ;;  %v3745_v46 = vpack.c.bf16 %v741_v38, %v737_v37  ;;  %v771_v38 = vld [vmem:[#allocation11 + $0x120] sm:$0xff] }
 0x12e   :  { %2549 = vmatprep.mubr.f32.mxu1 %v251_v48  ;;  %v239_v56 = vadd.f32 %v2404_v14, %v238_v52  ;;  %v448_v14 = vld [vmem:[#allocation9 + $0x1c8] sm:$0xff]  ;;  %v745_v52 = vld [vmem:[#allocation11 + $0x50] sm:$0xff] }
 0x12f   :  { %2550 = vmatmul.mubr.f32.gmra.mrb[12].mxu1 %v252_v47  ;;  %v254_v59 = vmax.f32 %v244_v51, 0.0  ;;  %v2659_v17 = vpack.c.bf16 %v452_v15, %v448_v14  ;;  %v743_v47 = vld [vmem:[#allocation11 + $0x40] sm:$0xff] }
 0x130   :  { %v253_v60 = vmax.f32 %v239_v56, 0.0  ;;  %2674 = vmatpush1.bf16.msra.mxu1 %v2673_v50  ;;  %v747_v51 = vld [vmem:[#allocation11 + $0x60] sm:$0xff]  ;;  %v3750_v56 = vpack.c.bf16 %v750_v44, %v746_v43  ;;  %v776_v43 = vld [vmem:[#allocation11 + $0x148] sm:$0xff] }
 0x131   :  { %2676 = vmatprep.subr.bf16.mxu1 %v2675_v53  ;;  %2660 = vmatprep.subr.bf16.mxu0 %v2659_v17  ;;  %v749_v53 = vld [vmem:[#allocation11 + $0x70] sm:$0xff]  ;;  %v759_v15 = vld [vmem:[#allocation11 + $0xc0] sm:$0xff]  ;;  %v780_v44 = vld [vmem:[#allocation11 + $0x168] sm:$0xff] }
 0x132   :  { %2552 = vmatprep.mubr.f32.mxu1 %v253_v60  ;;  %2662 = vmatpush1.bf16.msra.mxu0 %v2661_v20  ;;  %v758_v60 = vld [vmem:[#allocation11 + $0xb8] sm:$0xff]  ;;  %v765_v20 = vld [vmem:[#allocation11 + $0xf0] sm:$0xff]  ;;  %v3788_v30 = vpack.c.bf16 %v763_v18, %v759_v15  ;;  %v796_v18 = vld [vmem:[#allocation11 + $0x1e8] sm:$0xff] }
 0x133   :  { %2553 = vmatmul.mubr.f32.gmra.mrb[14].mxu1 %v254_v59  ;;  %2696 = vmatprep.subr.bf16.mxu0 %v3729_v29  ;;  %v754_v59 = vld [vmem:[#allocation11 + $0x98] sm:$0xff]  ;;  %v3790_v34 = vpack.c.bf16 %v765_v20, %v761_v19 }
 0x134   :  { %2678 = vmatpush1.bf16.msra.mxu1 %v2677_v61  ;;  %654 = vmatprep.mubr.f32.mxu1 %v3567_v31  ;;  %v3754_v61 = vpack.c.bf16 %v747_v51, %v743_v47  ;;  %v3767_v8 = vpack.c.bf16 %v758_v60, %v754_v59  ;;  %v778_v47 = vld [vmem:[#allocation11 + $0x158] sm:$0xff]  ;;  %v775_v51 = vld [vmem:[#allocation11 + $0x140] sm:$0xff]  ;;  %v3813_v59 = vpack.c.bf16 %v780_v44, %v776_v43  ;;  %v457_v43 = vlaneseq }
 0x135   :  { %2680 = vmatprep.subr.bf16.mxu1 %v2679_v62  ;;  %v3756_v62 = vpack.c.bf16 %v749_v53, %v745_v52  ;;  %v794_v19 = vld [vmem:[#allocation11 + $0x1d8] sm:$0xff] }
 0x136   :  { %v798_v20 = vld [vmem:[#allocation11 + $0x1f8] sm:$0xff]  ;;  %v458_v44 = vshrl.u32 %v457_v43, 7 }
 0x138   :  { %2682 = vmatpush1.bf16.msra.mxu1 %v2681_v3  ;;  %v755_v3 = vld [vmem:[#allocation11 + $0xa0] sm:$0xff] }
 0x139   :  { %2684 = vmatprep.subr.bf16.mxu1 %v2683_v4  ;;  %v753_v4 = vld [vmem:[#allocation11 + $0x90] sm:$0xff] }
 0x13a   :  { %v3773_v14 = vpack.c.bf16 %v757_v5, %v753_v4  ;;  %v3821_v4 = vpack.c.bf16 %v781_v58, %v777_v57  ;;  %v783_v5 = vld [vmem:[#allocation11 + $0x180] sm:$0xff]  ;;  %v471_v58 = vsub.s32 3, %v458_v44 }
 0x13c   :  { %2686 = vmatpush1.bf16.msra.mxu1 %v2685_v9  ;;  %v760_v9 = vld [vmem:[#allocation11 + $0xc8] sm:$0xff] }
 0x13d   :  { %2688 = vmatprep.subr.bf16.mxu1 %v2687_v10  ;;  %v764_v10 = vld [vmem:[#allocation11 + $0xe8] sm:$0xff] }
 0x13e   :  { %v3782_v22 = vpack.c.bf16 %v764_v10, %v760_v9  ;;  %v787_v10 = vld [vmem:[#allocation11 + $0x1a0] sm:$0xff] }
 0x140   :  { %2690 = vmatpush1.bf16.msra.mxu1 %v2689_v13  ;;  %v3771_v13 = vpack.c.bf16 %v755_v3, %v751_v63  ;;  %v784_v63 = vld [vmem:[#allocation11 + $0x188] sm:$0xff] }
 0x141   :  { %2692 = vmatprep.subr.bf16.mxu1 %v2691_v24  ;;  %v768_v24 = vld [vmem:[#allocation11 + $0x108] sm:$0xff] }
 0x144   :  { %2694 = vmatpush1.bf16.msra.mxu1 %v2693_v25 }
 0x145   :  { %2728 = vmatprep.subr.bf16.mxu1 %v3732_v32 }
 0x1fa   :  { %v2545_v35 = vpop.f32.mrb[8].mxu1 }
 0x1fb   :  { %v344_v39 = vpop.f32.mrb[9].mxu1  ;;  %v350_v48 = vadd.f32 %v2545_v35, %v3740_v33  ;;  %v767_v35 = vld [vmem:[#allocation11 + $0x100] sm:$0xff] }
 0x1fc   :  { %v345_v41 = vadd.f32 %v3740_v33, %v344_v39  ;;  %v769_v39 = vld [vmem:[#allocation11 + $0x110] sm:$0xff] }
 0x1fd   :  { %v384_v0 = vmax.f32 %v350_v48, 0.0  ;;  %v782_v48 = vld [vmem:[#allocation11 + $0x178] sm:$0xff] }
 0x1fe   :  { %v383_v49 = vmax.f32 %v345_v41, 0.0  ;;  %v2548_v50 = vpop.f32.mrb[10].mxu1  ;;  %v3797_v41 = vpack.c.bf16 %v772_v26, %v768_v24  ;;  %v3815_v60 = vpack.c.bf16 %v782_v48, %v778_v47  ;;  %v3834_v24 = vpack.c.bf16 %v787_v10, %v783_v5  ;;  %v791_v26 = vld [vmem:[#allocation11 + $0x1c0] sm:$0xff]  ;;  %v455_v48 = vld [vmem:[%s4228_s7] sm:$0xf] }
 0x1ff   :  { %v354_v54 = vpop.f32.mrb[11].mxu1  ;;  %v360_v16 = vadd.f32 %v2548_v50, %v3740_v33  ;;  %v3805_v50 = vpack.c.bf16 %v773_v40, %v769_v39  ;;  %v3846_v39 = vpack.c.bf16 %v798_v20, %v794_v19  ;;  %v459_v47 = vsub.s32 0, %v458_v44 }
 0x200   :  { %542 = vmatmul.mubr.f32.vlgmr.msra.gmra.mrb[0].mxu0 %v383_v49  ;;  %655 = vmatmul.mubr.f32.vlgmr.msra.gmra.mrb[16].mxu1 %v383_v49  ;;  %v355_v1 = vadd.f32 %v3740_v33, %v354_v54  ;;  %v3803_v49 = vpack.c.bf16 %v771_v38, %v767_v35  ;;  %v779_v54 = vld [vmem:[#allocation11 + $0x160] sm:$0xff]  ;;  %v467_v10 = vsub.s32 2, %v458_v44 }
 0x201   :  { %2698 = vmatpush1.bf16.msra.mxu0 %v3743_v45  ;;  %2730 = vmatpush1.bf16.msra.mxu1 %v3745_v46  ;;  %v386_v36 = vmax.f32 %v360_v16, 0.0  ;;  %v3819_v3 = vpack.c.bf16 %v779_v54, %v775_v51  ;;  %v795_v35 = vld [vmem:[#allocation11 + $0x1e0] sm:$0xff]  ;;  %v463_v51 = vsub.s32 1, %v458_v44 }
 0x202   :  { %547 = vmatprep.mubr.f32.mxu0 %v3567_v31  ;;  %660 = vmatprep.mubr.f32.mxu1 %v3567_v31  ;;  %v3761_v2 = vpop.f32.mrb[12].mxu1  ;;  %v385_v17 = vmax.f32 %v355_v1, 0.0  ;;  %v786_v1 = vld [vmem:[#allocation11 + $0x198] sm:$0xff] }
 0x203   :  { %2700 = vmatprep.subr.bf16.mxu0 %v3748_v55  ;;  %2732 = vmatprep.subr.bf16.mxu1 %v3750_v56  ;;  %v364_v7 = vpop.f32.mrb[13].mxu1  ;;  %v370_v52 = vadd.f32 %v3761_v2, %v3740_v33  ;;  %v790_v2 = vld [vmem:[#allocation11 + $0x1b8] sm:$0xff] }
 0x204   :  { %548 = vmatmul.mubr.f32.gmra.mrb[2].mxu0 %v384_v0  ;;  %661 = vmatmul.mubr.f32.gmra.mrb[18].mxu1 %v384_v0  ;;  %v365_v37 = vadd.f32 %v3740_v33, %v364_v7  ;;  %v788_v0 = vld [vmem:[#allocation11 + $0x1a8] sm:$0xff]  ;;  %v3830_v16 = vpack.c.bf16 %v790_v2, %v786_v1 }
 0x205   :  { %2702 = vmatpush1.bf16.msra.mxu0 %v3754_v61  ;;  %2734 = vmatpush1.bf16.msra.mxu1 %v3756_v62  ;;  %v388_v7 = vmax.f32 %v370_v52, 0.0  ;;  %v3828_v15 = vpack.c.bf16 %v788_v0, %v784_v63  ;;  %v3903_v52 = vrot.slane %v455_v48, %v459_v47 }
 0x206   :  { %553 = vmatprep.mubr.f32.mxu0 %v3567_v31  ;;  %666 = vmatprep.mubr.f32.mxu1 %v3567_v31  ;;  %v3778_v21 = vpop.f32.mrb[14].mxu1  ;;  %v387_v53 = vmax.f32 %v365_v37, 0.0  ;;  %v797_v37 = vld [vmem:[#allocation11 + $0x1f0] sm:$0xff] }
 0x207   :  { %2704 = vmatprep.subr.bf16.mxu0 %v3765_v6  ;;  %2736 = vmatprep.subr.bf16.mxu1 %v3767_v8  ;;  %v374_v25 = vpop.f32.mrb[15].mxu1  ;;  %v380_v27 = vadd.f32 %v3778_v21, %v3740_v33 }
 0x208   :  { %554 = vmatmul.mubr.f32.gmra.mrb[4].mxu0 %v385_v17  ;;  %667 = vmatmul.mubr.f32.gmra.mrb[20].mxu1 %v385_v17  ;;  %v375_v9 = vadd.f32 %v3740_v33, %v374_v25  ;;  %v792_v17 = vld [vmem:[#allocation11 + $0x1c8] sm:$0xff]  ;;  %v3836_v25 = vpack.c.bf16 %v789_v12, %v785_v11  ;;  %v3850_v33 = vpack.c.bf16 %v795_v35, %v791_v26 }
 0x209   :  { %2706 = vmatpush1.bf16.msra.mxu0 %v3771_v13  ;;  %2738 = vmatpush1.bf16.msra.mxu1 %v3773_v14  ;;  %v3844_v38 = vpack.c.bf16 %v796_v18, %v792_v17  ;;  %v390_v40 = vmax.f32 %v380_v27, 0.0  ;;  %v3912_v12 = vrot.slane %v455_v48, %v467_v10 }
 0x20a   :  { %559 = vmatprep.mubr.f32.mxu0 %v3567_v31  ;;  %672 = vmatprep.mubr.f32.mxu1 %v3567_v31  ;;  %v389_v28 = vmax.f32 %v375_v9, 0.0  ;;  %v3909_v9 = vrot.slane %v455_v48, %v471_v58 }
 0x20b   :  { %2708 = vmatprep.subr.bf16.mxu0 %v3782_v22  ;;  %2740 = vmatprep.subr.bf16.mxu1 %v3784_v23 }
 0x20c   :  { %560 = vmatmul.mubr.f32.gmra.mrb[6].mxu0 %v386_v36  ;;  %673 = vmatmul.mubr.f32.gmra.mrb[22].mxu1 %v386_v36  ;;  %v793_v36 = vld [vmem:[#allocation11 + $0x1d0] sm:$0xff] }
 0x20d   :  { %2710 = vmatpush1.bf16.msra.mxu0 %v3788_v30  ;;  %2742 = vmatpush1.bf16.msra.mxu1 %v3790_v34  ;;  %v3852_v21 = vpack.c.bf16 %v797_v37, %v793_v36 }
 0x20e   :  { %565 = vmatprep.mubr.f32.mxu0 %v3567_v31  ;;  %678 = vmatprep.mubr.f32.mxu1 %v3567_v31 }
 0x20f   :  { %2712 = vmatprep.subr.bf16.mxu0 %v3797_v41  ;;  %2744 = vmatprep.subr.bf16.mxu1 %v3799_v42 }
 0x210   :  { %566 = vmatmul.mubr.f32.gmra.mrb[8].mxu0 %v387_v53  ;;  %679 = vmatmul.mubr.f32.gmra.mrb[24].mxu1 %v387_v53  ;;  %v3905_v53 = vrot.slane %v455_v48, %v463_v51 }
 0x211   :  { %2714 = vmatpush1.bf16.msra.mxu0 %v3803_v49  ;;  %2746 = vmatpush1.bf16.msra.mxu1 %v3805_v50 }
 0x212   :  { %571 = vmatprep.mubr.f32.mxu0 %v3567_v31  ;;  %684 = vmatprep.mubr.f32.mxu1 %v3567_v31 }
 0x213   :  { %2716 = vmatprep.subr.bf16.mxu0 %v3813_v59  ;;  %2748 = vmatprep.subr.bf16.mxu1 %v3815_v60 }
 0x214   :  { %572 = vmatmul.mubr.f32.gmra.mrb[10].mxu0 %v388_v7  ;;  %685 = vmatmul.mubr.f32.gmra.mrb[26].mxu1 %v388_v7 }
 0x215   :  { %2718 = vmatpush1.bf16.msra.mxu0 %v3819_v3  ;;  %2750 = vmatpush1.bf16.msra.mxu1 %v3821_v4 }
 0x216   :  { %577 = vmatprep.mubr.f32.mxu0 %v3567_v31  ;;  %690 = vmatprep.mubr.f32.mxu1 %v3567_v31 }
 0x217   :  { %2720 = vmatprep.subr.bf16.mxu0 %v3828_v15  ;;  %2752 = vmatprep.subr.bf16.mxu1 %v3830_v16 }
 0x218   :  { %578 = vmatmul.mubr.f32.gmra.mrb[12].mxu0 %v389_v28  ;;  %691 = vmatmul.mubr.f32.gmra.mrb[28].mxu1 %v389_v28 }
 0x219   :  { %2722 = vmatpush1.bf16.msra.mxu0 %v3834_v24  ;;  %2754 = vmatpush1.bf16.msra.mxu1 %v3836_v25 }
 0x21a   :  { %583 = vmatprep.mubr.f32.mxu0 %v3567_v31  ;;  %696 = vmatprep.mubr.f32.mxu1 %v3567_v31 }
 0x21b   :  { %2724 = vmatprep.subr.bf16.mxu0 %v3844_v38  ;;  %2756 = vmatprep.subr.bf16.mxu1 %v3846_v39 }
 0x21c   :  { %584 = vmatmul.mubr.f32.gmra.mrb[14].mxu0 %v390_v40  ;;  %697 = vmatmul.mubr.f32.gmra.mrb[30].mxu1 %v390_v40 }
 0x21d   :  { %2726 = vmatpush1.bf16.msra.mxu0 %v3850_v33  ;;  %2758 = vmatpush1.bf16.msra.mxu1 %v3852_v21 }
 0x21e   :  { %872 = vmatprep.mubr.f32.mxu0 %v3567_v31  ;;  %943 = vmatprep.mubr.f32.mxu1 %v3567_v31 }
 0x21f   :  { %2760 = vmatprep.subr.bf16.mxu0 %v3729_v29  ;;  %2792 = vmatprep.subr.bf16.mxu1 %v3732_v32 }
 0x220   :  { %873 = vmatmul.mubr.f32.vlgmr.msra.gmra.mrb[0].mxu0 %v3567_v31  ;;  %944 = vmatmul.mubr.f32.vlgmr.msra.gmra.mrb[16].mxu1 %v3567_v31 }
 0x221   :  { %2762 = vmatpush1.bf16.msra.mxu0 %v3743_v45  ;;  %2794 = vmatpush1.bf16.msra.mxu1 %v3745_v46 }
 0x222   :  { %2764 = vmatprep.subr.bf16.mxu0 %v3748_v55  ;;  %2796 = vmatprep.subr.bf16.mxu1 %v3750_v56 }
 0x223   :  { %1050 = vmatprep.mubr.f32.mxu0 %v3567_v31  ;;  %1121 = vmatprep.mubr.f32.mxu1 %v3567_v31 }
 0x225   :  { %2766 = vmatpush1.bf16.msra.mxu0 %v3754_v61  ;;  %2798 = vmatpush1.bf16.msra.mxu1 %v3756_v62 }
 0x226   :  { %2768 = vmatprep.subr.bf16.mxu0 %v3765_v6  ;;  %2800 = vmatprep.subr.bf16.mxu1 %v3767_v8 }
 0x229   :  { %2770 = vmatpush1.bf16.msra.mxu0 %v3771_v13  ;;  %2802 = vmatpush1.bf16.msra.mxu1 %v3773_v14 }
 0x22a   :  { %2772 = vmatprep.subr.bf16.mxu0 %v3782_v22  ;;  %2804 = vmatprep.subr.bf16.mxu1 %v3784_v23 }
 0x22d   :  { %2774 = vmatpush1.bf16.msra.mxu0 %v3788_v30  ;;  %2806 = vmatpush1.bf16.msra.mxu1 %v3790_v34 }
 0x22e   :  { %2776 = vmatprep.subr.bf16.mxu0 %v3797_v41  ;;  %2808 = vmatprep.subr.bf16.mxu1 %v3799_v42 }
 0x231   :  { %2778 = vmatpush1.bf16.msra.mxu0 %v3803_v49  ;;  %2810 = vmatpush1.bf16.msra.mxu1 %v3805_v50 }
 0x232   :  { %2780 = vmatprep.subr.bf16.mxu0 %v3813_v59  ;;  %2812 = vmatprep.subr.bf16.mxu1 %v3815_v60 }
 0x235   :  { %2782 = vmatpush1.bf16.msra.mxu0 %v3819_v3  ;;  %2814 = vmatpush1.bf16.msra.mxu1 %v3821_v4 }
 0x236   :  { %2784 = vmatprep.subr.bf16.mxu0 %v3828_v15  ;;  %2816 = vmatprep.subr.bf16.mxu1 %v3830_v16 }
 0x239   :  { %2786 = vmatpush1.bf16.msra.mxu0 %v3834_v24  ;;  %2818 = vmatpush1.bf16.msra.mxu1 %v3836_v25 }
 0x23a   :  { %2788 = vmatprep.subr.bf16.mxu0 %v3844_v38  ;;  %2820 = vmatprep.subr.bf16.mxu1 %v3846_v39 }
 0x23d   :  { %2790 = vmatpush1.bf16.msra.mxu0 %v3850_v33  ;;  %2822 = vmatpush1.bf16.msra.mxu1 %v3852_v21 }
 0x23e   :  { %2824 = vmatprep.subr.bf16.mxu0 %v3729_v29  ;;  %2856 = vmatprep.subr.bf16.mxu1 %v3732_v32 }
 0x2f3   :  { %v874_v54 = vpop.f32.mrb[0].mxu0  ;;  %v945_v57 = vpop.f32.mrb[16].mxu1 }
 0x2f4   :  { %v3239_v63 = vadd.f32 %v874_v54, %v3903_v52  ;;  %v876_v0 = vpop.f32.mrb[1].mxu0  ;;  %v947_v1 = vpop.f32.mrb[17].mxu1  ;;  %v3255_v18 = vadd.f32 %v945_v57, %v3912_v12 }
 0x2f5   :  { %v3240_v2 = vadd.f32 %v876_v0, %v3905_v53  ;;  %v3256_v11 = vadd.f32 %v947_v1, %v3909_v9 }
 0x2f6   :  { %v2415_v5 = vmul.f32 -1.442695, %v3239_v63 }
 0x2f7   :  { %v2416_v7 = vmul.f32 -1.442695, %v3240_v2  ;;  %v2417_v17 = vmul.f32 -1.442695, %v3256_v11 }
 0x2f8   :  { %3313 = vpow2.f32 %v2415_v5 }
 0x2f9   :  { %3315 = vpow2.f32 %v2416_v7 }
 0x2fa   :  { %3317 = vpow2.f32 %v2417_v17 }
 0x2fb   :  { %3319 = vtanh.f32 %v3255_v18 }
 0x302   :  { %v3314_v19 = vpop.eup %3313 }
 0x303   :  { %v3316_v20 = vpop.eup %3315  ;;  %v957_v26 = vadd.f32 1.0, %v3314_v19 }
 0x304   :  { %v963_v27 = vadd.f32 1.0, %v3316_v20  ;;  %v3318_v28 = vpop.eup %3317 }
 0x305   :  { %3321 = vrcp.f32 %v957_v26  ;;  %v3320_v35 = vpop.eup %3319  ;;  %v970_v43 = vadd.f32 1.0, %v3318_v28 }
 0x306   :  { %3323 = vrcp.f32 %v963_v27 }
 0x307   :  { %3325 = vrcp.f32 %v970_v43 }
 0x30f   :  { %v3322_v36 = vpop.eup %3321 }
 0x310   :  { %v3324_v37 = vpop.eup %3323  ;;  %v974_v40 = vmul.f32 %v3322_v36, %v3320_v35 }
 0x311   :  { %v973_v44 = vmul.f32 0.0, %v3324_v37  ;;  %v3326_v48 = vpop.eup %3325 }
 0x313   :  { %v3915_v47 = vadd.f32 %v974_v40, %v973_v44 }
 0x315   :  { %3327 = vtanh.f32 %v3915_v47 }
 0x31f   :  { %v3328_v51 = vpop.eup %3327 }
 0x320   :  { %v3918_v54 = vmul.f32 %v3328_v51, %v3326_v48 }
 0x322   :  { %1051 = vmatmul.mubr.f32.vlgmr.msra.gmra.mrb[2].mxu0 %v3918_v54  ;;  %1122 = vmatmul.mubr.f32.vlgmr.msra.gmra.mrb[18].mxu1 %v3918_v54 }
 0x323   :  { %2826 = vmatpush1.bf16.msra.mxu0 %v3743_v45  ;;  %2858 = vmatpush1.bf16.msra.mxu1 %v3745_v46 }
 0x324   :  { %2828 = vmatprep.subr.bf16.mxu0 %v3748_v55  ;;  %2860 = vmatprep.subr.bf16.mxu1 %v3750_v56 }
 0x325   :  { %1229 = vmatprep.mubr.f32.mxu0 %v3567_v31  ;;  %1300 = vmatprep.mubr.f32.mxu1 %v3567_v31 }
 0x327   :  { %2830 = vmatpush1.bf16.msra.mxu0 %v3754_v61  ;;  %2862 = vmatpush1.bf16.msra.mxu1 %v3756_v62 }
 0x328   :  { %2832 = vmatprep.subr.bf16.mxu0 %v3765_v6  ;;  %2864 = vmatprep.subr.bf16.mxu1 %v3767_v8 }
 0x32b   :  { %2834 = vmatpush1.bf16.msra.mxu0 %v3771_v13  ;;  %2866 = vmatpush1.bf16.msra.mxu1 %v3773_v14 }
 0x32c   :  { %2836 = vmatprep.subr.bf16.mxu0 %v3782_v22  ;;  %2868 = vmatprep.subr.bf16.mxu1 %v3784_v23 }
 0x32f   :  { %2838 = vmatpush1.bf16.msra.mxu0 %v3788_v30  ;;  %2870 = vmatpush1.bf16.msra.mxu1 %v3790_v34 }
 0x330   :  { %2840 = vmatprep.subr.bf16.mxu0 %v3797_v41  ;;  %2872 = vmatprep.subr.bf16.mxu1 %v3799_v42 }
 0x333   :  { %2842 = vmatpush1.bf16.msra.mxu0 %v3803_v49  ;;  %2874 = vmatpush1.bf16.msra.mxu1 %v3805_v50 }
 0x334   :  { %2844 = vmatprep.subr.bf16.mxu0 %v3813_v59  ;;  %2876 = vmatprep.subr.bf16.mxu1 %v3815_v60 }
 0x337   :  { %2846 = vmatpush1.bf16.msra.mxu0 %v3819_v3  ;;  %2878 = vmatpush1.bf16.msra.mxu1 %v3821_v4 }
 0x338   :  { %2848 = vmatprep.subr.bf16.mxu0 %v3828_v15  ;;  %2880 = vmatprep.subr.bf16.mxu1 %v3830_v16 }
 0x33b   :  { %2850 = vmatpush1.bf16.msra.mxu0 %v3834_v24  ;;  %2882 = vmatpush1.bf16.msra.mxu1 %v3836_v25 }
 0x33c   :  { %2852 = vmatprep.subr.bf16.mxu0 %v3844_v38  ;;  %2884 = vmatprep.subr.bf16.mxu1 %v3846_v39 }
 0x33f   :  { %2854 = vmatpush1.bf16.msra.mxu0 %v3850_v33  ;;  %2886 = vmatpush1.bf16.msra.mxu1 %v3852_v21 }
 0x340   :  { %2888 = vmatprep.subr.bf16.mxu0 %v3729_v29  ;;  %2920 = vmatprep.subr.bf16.mxu1 %v3732_v32 }
 0x3f5   :  { %v1052_v57 = vpop.f32.mrb[2].mxu0  ;;  %v1123_v58 = vpop.f32.mrb[18].mxu1 }
 0x3f6   :  { %v3241_v63 = vadd.f32 %v1052_v57, %v3903_v52  ;;  %v1054_v0 = vpop.f32.mrb[3].mxu0  ;;  %v1125_v1 = vpop.f32.mrb[19].mxu1  ;;  %v3257_v17 = vadd.f32 %v1123_v58, %v3912_v12 }
 0x3f7   :  { %v3242_v2 = vadd.f32 %v1054_v0, %v3905_v53  ;;  %v3258_v10 = vadd.f32 %v1125_v1, %v3909_v9 }
 0x3f8   :  { %v2418_v5 = vmul.f32 -1.442695, %v3241_v63 }
 0x3f9   :  { %v2419_v7 = vmul.f32 -1.442695, %v3242_v2  ;;  %v2420_v11 = vmul.f32 -1.442695, %v3258_v10 }
 0x3fa   :  { %3329 = vpow2.f32 %v2418_v5 }
 0x3fb   :  { %3331 = vpow2.f32 %v2419_v7 }
 0x3fc   :  { %3333 = vpow2.f32 %v2420_v11 }
 0x3fd   :  { %3335 = vtanh.f32 %v3257_v17 }
 0x404   :  { %v3330_v18 = vpop.eup %3329 }
 0x405   :  { %v3332_v19 = vpop.eup %3331  ;;  %v1135_v20 = vadd.f32 1.0, %v3330_v18 }
 0x406   :  { %v1141_v26 = vadd.f32 1.0, %v3332_v19  ;;  %v3334_v27 = vpop.eup %3333 }
 0x407   :  { %3337 = vrcp.f32 %v1135_v20  ;;  %v3336_v28 = vpop.eup %3335  ;;  %v1148_v40 = vadd.f32 1.0, %v3334_v27 }
 0x408   :  { %3339 = vrcp.f32 %v1141_v26 }
 0x409   :  { %3341 = vrcp.f32 %v1148_v40 }
 0x411   :  { %v3338_v35 = vpop.eup %3337 }
 0x412   :  { %v3340_v36 = vpop.eup %3339  ;;  %v1152_v37 = vmul.f32 %v3338_v35, %v3336_v28 }
 0x413   :  { %v1151_v43 = vmul.f32 %v3340_v36, %v3915_v47  ;;  %v3342_v48 = vpop.eup %3341 }
 0x415   :  { %v3961_v44 = vadd.f32 %v1152_v37, %v1151_v43 }
 0x417   :  { %3343 = vtanh.f32 %v3961_v44 }
 0x421   :  { %v3344_v51 = vpop.eup %3343 }
 0x422   :  { %v3964_v57 = vmul.f32 %v3344_v51, %v3342_v48 }
 0x424   :  { %1230 = vmatmul.mubr.f32.vlgmr.msra.gmra.mrb[4].mxu0 %v3964_v57  ;;  %1301 = vmatmul.mubr.f32.vlgmr.msra.gmra.mrb[20].mxu1 %v3964_v57 }
 0x425   :  { %2890 = vmatpush1.bf16.msra.mxu0 %v3743_v45  ;;  %2922 = vmatpush1.bf16.msra.mxu1 %v3745_v46 }
 0x426   :  { %2892 = vmatprep.subr.bf16.mxu0 %v3748_v55  ;;  %2924 = vmatprep.subr.bf16.mxu1 %v3750_v56 }
 0x427   :  { %1408 = vmatprep.mubr.f32.mxu0 %v3567_v31  ;;  %1479 = vmatprep.mubr.f32.mxu1 %v3567_v31 }
 0x429   :  { %2894 = vmatpush1.bf16.msra.mxu0 %v3754_v61  ;;  %2926 = vmatpush1.bf16.msra.mxu1 %v3756_v62 }
 0x42a   :  { %2896 = vmatprep.subr.bf16.mxu0 %v3765_v6  ;;  %2928 = vmatprep.subr.bf16.mxu1 %v3767_v8 }
 0x42d   :  { %2898 = vmatpush1.bf16.msra.mxu0 %v3771_v13  ;;  %2930 = vmatpush1.bf16.msra.mxu1 %v3773_v14 }
 0x42e   :  { %2900 = vmatprep.subr.bf16.mxu0 %v3782_v22  ;;  %2932 = vmatprep.subr.bf16.mxu1 %v3784_v23 }
 0x431   :  { %2902 = vmatpush1.bf16.msra.mxu0 %v3788_v30  ;;  %2934 = vmatpush1.bf16.msra.mxu1 %v3790_v34 }
 0x432   :  { %2904 = vmatprep.subr.bf16.mxu0 %v3797_v41  ;;  %2936 = vmatprep.subr.bf16.mxu1 %v3799_v42 }
 0x435   :  { %2906 = vmatpush1.bf16.msra.mxu0 %v3803_v49  ;;  %2938 = vmatpush1.bf16.msra.mxu1 %v3805_v50 }
 0x436   :  { %2908 = vmatprep.subr.bf16.mxu0 %v3813_v59  ;;  %2940 = vmatprep.subr.bf16.mxu1 %v3815_v60 }
 0x439   :  { %2910 = vmatpush1.bf16.msra.mxu0 %v3819_v3  ;;  %2942 = vmatpush1.bf16.msra.mxu1 %v3821_v4 }
 0x43a   :  { %2912 = vmatprep.subr.bf16.mxu0 %v3828_v15  ;;  %2944 = vmatprep.subr.bf16.mxu1 %v3830_v16 }
 0x43d   :  { %2914 = vmatpush1.bf16.msra.mxu0 %v3834_v24  ;;  %2946 = vmatpush1.bf16.msra.mxu1 %v3836_v25 }
 0x43e   :  { %2916 = vmatprep.subr.bf16.mxu0 %v3844_v38  ;;  %2948 = vmatprep.subr.bf16.mxu1 %v3846_v39 }
 0x441   :  { %2918 = vmatpush1.bf16.msra.mxu0 %v3850_v33  ;;  %2950 = vmatpush1.bf16.msra.mxu1 %v3852_v21 }
 0x442   :  { %2952 = vmatprep.subr.bf16.mxu0 %v3729_v29  ;;  %2984 = vmatprep.subr.bf16.mxu1 %v3732_v32 }
 0x4f7   :  { %v1231_v47 = vpop.f32.mrb[4].mxu0  ;;  %v1302_v58 = vpop.f32.mrb[20].mxu1 }
 0x4f8   :  { %v3243_v63 = vadd.f32 %v1231_v47, %v3903_v52  ;;  %v1233_v0 = vpop.f32.mrb[5].mxu0  ;;  %v1304_v1 = vpop.f32.mrb[21].mxu1  ;;  %v3259_v17 = vadd.f32 %v1302_v58, %v3912_v12 }
 0x4f9   :  { %v3244_v2 = vadd.f32 %v1233_v0, %v3905_v53  ;;  %v3260_v10 = vadd.f32 %v1304_v1, %v3909_v9 }
 0x4fa   :  { %v2421_v5 = vmul.f32 -1.442695, %v3243_v63 }
 0x4fb   :  { %v2422_v7 = vmul.f32 -1.442695, %v3244_v2  ;;  %v2423_v11 = vmul.f32 -1.442695, %v3260_v10 }
 0x4fc   :  { %3345 = vpow2.f32 %v2421_v5 }
 0x4fd   :  { %3347 = vpow2.f32 %v2422_v7 }
 0x4fe   :  { %3349 = vpow2.f32 %v2423_v11 }
 0x4ff   :  { %3351 = vtanh.f32 %v3259_v17 }
 0x506   :  { %v3346_v18 = vpop.eup %3345 }
 0x507   :  { %v3348_v19 = vpop.eup %3347  ;;  %v1314_v20 = vadd.f32 1.0, %v3346_v18 }
 0x508   :  { %v1320_v26 = vadd.f32 1.0, %v3348_v19  ;;  %v3350_v27 = vpop.eup %3349 }
 0x509   :  { %3353 = vrcp.f32 %v1314_v20  ;;  %v3352_v28 = vpop.eup %3351  ;;  %v1327_v40 = vadd.f32 1.0, %v3350_v27 }
 0x50a   :  { %3355 = vrcp.f32 %v1320_v26 }
 0x50b   :  { %3357 = vrcp.f32 %v1327_v40 }
 0x513   :  { %v3354_v35 = vpop.eup %3353 }
 0x514   :  { %v3356_v36 = vpop.eup %3355  ;;  %v1331_v37 = vmul.f32 %v3354_v35, %v3352_v28 }
 0x515   :  { %v1330_v43 = vmul.f32 %v3356_v36, %v3961_v44  ;;  %v3358_v51 = vpop.eup %3357 }
 0x517   :  { %v4007_v48 = vadd.f32 %v1331_v37, %v1330_v43 }
 0x519   :  { %3359 = vtanh.f32 %v4007_v48 }
 0x523   :  { %v3360_v47 = vpop.eup %3359 }
 0x524   :  { %v4010_v58 = vmul.f32 %v3360_v47, %v3358_v51 }
 0x526   :  { %1409 = vmatmul.mubr.f32.vlgmr.msra.gmra.mrb[6].mxu0 %v4010_v58  ;;  %1480 = vmatmul.mubr.f32.vlgmr.msra.gmra.mrb[22].mxu1 %v4010_v58 }
 0x527   :  { %2954 = vmatpush1.bf16.msra.mxu0 %v3743_v45  ;;  %2986 = vmatpush1.bf16.msra.mxu1 %v3745_v46 }
 0x528   :  { %2956 = vmatprep.subr.bf16.mxu0 %v3748_v55  ;;  %2988 = vmatprep.subr.bf16.mxu1 %v3750_v56 }
 0x529   :  { %1587 = vmatprep.mubr.f32.mxu0 %v3567_v31  ;;  %1658 = vmatprep.mubr.f32.mxu1 %v3567_v31 }
 0x52b   :  { %2958 = vmatpush1.bf16.msra.mxu0 %v3754_v61  ;;  %2990 = vmatpush1.bf16.msra.mxu1 %v3756_v62 }
 0x52c   :  { %2960 = vmatprep.subr.bf16.mxu0 %v3765_v6  ;;  %2992 = vmatprep.subr.bf16.mxu1 %v3767_v8 }
 0x52f   :  { %2962 = vmatpush1.bf16.msra.mxu0 %v3771_v13  ;;  %2994 = vmatpush1.bf16.msra.mxu1 %v3773_v14 }
 0x530   :  { %2964 = vmatprep.subr.bf16.mxu0 %v3782_v22  ;;  %2996 = vmatprep.subr.bf16.mxu1 %v3784_v23 }
 0x533   :  { %2966 = vmatpush1.bf16.msra.mxu0 %v3788_v30  ;;  %2998 = vmatpush1.bf16.msra.mxu1 %v3790_v34 }
 0x534   :  { %2968 = vmatprep.subr.bf16.mxu0 %v3797_v41  ;;  %3000 = vmatprep.subr.bf16.mxu1 %v3799_v42 }
 0x537   :  { %2970 = vmatpush1.bf16.msra.mxu0 %v3803_v49  ;;  %3002 = vmatpush1.bf16.msra.mxu1 %v3805_v50 }
 0x538   :  { %2972 = vmatprep.subr.bf16.mxu0 %v3813_v59  ;;  %3004 = vmatprep.subr.bf16.mxu1 %v3815_v60 }
 0x53b   :  { %2974 = vmatpush1.bf16.msra.mxu0 %v3819_v3  ;;  %3006 = vmatpush1.bf16.msra.mxu1 %v3821_v4 }
 0x53c   :  { %2976 = vmatprep.subr.bf16.mxu0 %v3828_v15  ;;  %3008 = vmatprep.subr.bf16.mxu1 %v3830_v16 }
 0x53f   :  { %2978 = vmatpush1.bf16.msra.mxu0 %v3834_v24  ;;  %3010 = vmatpush1.bf16.msra.mxu1 %v3836_v25 }
 0x540   :  { %2980 = vmatprep.subr.bf16.mxu0 %v3844_v38  ;;  %3012 = vmatprep.subr.bf16.mxu1 %v3846_v39 }
 0x543   :  { %2982 = vmatpush1.bf16.msra.mxu0 %v3850_v33  ;;  %3014 = vmatpush1.bf16.msra.mxu1 %v3852_v21 }
 0x544   :  { %3016 = vmatprep.subr.bf16.mxu0 %v3729_v29  ;;  %3048 = vmatprep.subr.bf16.mxu1 %v3732_v32 }
 0x5f9   :  { %v1410_v44 = vpop.f32.mrb[6].mxu0  ;;  %v1481_v63 = vpop.f32.mrb[22].mxu1 }
 0x5fa   :  { %v3245_v0 = vadd.f32 %v1410_v44, %v3903_v52  ;;  %v1412_v1 = vpop.f32.mrb[7].mxu0  ;;  %v1483_v2 = vpop.f32.mrb[23].mxu1  ;;  %v3261_v18 = vadd.f32 %v1481_v63, %v3912_v12 }
 0x5fb   :  { %v3246_v5 = vadd.f32 %v1412_v1, %v3905_v53  ;;  %v3262_v11 = vadd.f32 %v1483_v2, %v3909_v9 }
 0x5fc   :  { %v2424_v7 = vmul.f32 -1.442695, %v3245_v0 }
 0x5fd   :  { %v2425_v10 = vmul.f32 -1.442695, %v3246_v5  ;;  %v2426_v17 = vmul.f32 -1.442695, %v3262_v11 }
 0x5fe   :  { %3361 = vpow2.f32 %v2424_v7 }
 0x5ff   :  { %3363 = vpow2.f32 %v2425_v10 }
 0x600   :  { %3365 = vpow2.f32 %v2426_v17 }
 0x601   :  { %3367 = vtanh.f32 %v3261_v18 }
 0x608   :  { %v3362_v19 = vpop.eup %3361 }
 0x609   :  { %v3364_v20 = vpop.eup %3363  ;;  %v1493_v26 = vadd.f32 1.0, %v3362_v19 }
 0x60a   :  { %v1499_v27 = vadd.f32 1.0, %v3364_v20  ;;  %v3366_v28 = vpop.eup %3365 }
 0x60b   :  { %3369 = vrcp.f32 %v1493_v26  ;;  %v3368_v35 = vpop.eup %3367  ;;  %v1506_v43 = vadd.f32 1.0, %v3366_v28 }
 0x60c   :  { %3371 = vrcp.f32 %v1499_v27 }
 0x60d   :  { %3373 = vrcp.f32 %v1506_v43 }
 0x615   :  { %v3370_v36 = vpop.eup %3369 }
 0x616   :  { %v3372_v37 = vpop.eup %3371  ;;  %v1510_v40 = vmul.f32 %v3370_v36, %v3368_v35 }
 0x617   :  { %v1509_v51 = vmul.f32 %v3372_v37, %v4007_v48  ;;  %v3374_v44 = vpop.eup %3373 }
 0x619   :  { %v4053_v47 = vadd.f32 %v1510_v40, %v1509_v51 }
 0x61b   :  { %3375 = vtanh.f32 %v4053_v47 }
 0x625   :  { %v3376_v63 = vpop.eup %3375 }
 0x626   :  { %v4056_v0 = vmul.f32 %v3376_v63, %v3374_v44 }
 0x628   :  { %1588 = vmatmul.mubr.f32.vlgmr.msra.gmra.mrb[8].mxu0 %v4056_v0  ;;  %1659 = vmatmul.mubr.f32.vlgmr.msra.gmra.mrb[24].mxu1 %v4056_v0 }
 0x629   :  { %3018 = vmatpush1.bf16.msra.mxu0 %v3743_v45  ;;  %3050 = vmatpush1.bf16.msra.mxu1 %v3745_v46 }
 0x62a   :  { %3020 = vmatprep.subr.bf16.mxu0 %v3748_v55  ;;  %3052 = vmatprep.subr.bf16.mxu1 %v3750_v56 }
 0x62b   :  { %1766 = vmatprep.mubr.f32.mxu0 %v3567_v31  ;;  %1837 = vmatprep.mubr.f32.mxu1 %v3567_v31 }
 0x62d   :  { %3022 = vmatpush1.bf16.msra.mxu0 %v3754_v61  ;;  %3054 = vmatpush1.bf16.msra.mxu1 %v3756_v62 }
 0x62e   :  { %3024 = vmatprep.subr.bf16.mxu0 %v3765_v6  ;;  %3056 = vmatprep.subr.bf16.mxu1 %v3767_v8 }
 0x631   :  { %3026 = vmatpush1.bf16.msra.mxu0 %v3771_v13  ;;  %3058 = vmatpush1.bf16.msra.mxu1 %v3773_v14 }
 0x632   :  { %3028 = vmatprep.subr.bf16.mxu0 %v3782_v22  ;;  %3060 = vmatprep.subr.bf16.mxu1 %v3784_v23 }
 0x635   :  { %3030 = vmatpush1.bf16.msra.mxu0 %v3788_v30  ;;  %3062 = vmatpush1.bf16.msra.mxu1 %v3790_v34 }
 0x636   :  { %3032 = vmatprep.subr.bf16.mxu0 %v3797_v41  ;;  %3064 = vmatprep.subr.bf16.mxu1 %v3799_v42 }
 0x639   :  { %3034 = vmatpush1.bf16.msra.mxu0 %v3803_v49  ;;  %3066 = vmatpush1.bf16.msra.mxu1 %v3805_v50 }
 0x63a   :  { %3036 = vmatprep.subr.bf16.mxu0 %v3813_v59  ;;  %3068 = vmatprep.subr.bf16.mxu1 %v3815_v60 }
 0x63d   :  { %3038 = vmatpush1.bf16.msra.mxu0 %v3819_v3  ;;  %3070 = vmatpush1.bf16.msra.mxu1 %v3821_v4 }
 0x63e   :  { %3040 = vmatprep.subr.bf16.mxu0 %v3828_v15  ;;  %3072 = vmatprep.subr.bf16.mxu1 %v3830_v16 }
 0x641   :  { %3042 = vmatpush1.bf16.msra.mxu0 %v3834_v24  ;;  %3074 = vmatpush1.bf16.msra.mxu1 %v3836_v25 }
 0x642   :  { %3044 = vmatprep.subr.bf16.mxu0 %v3844_v38  ;;  %3076 = vmatprep.subr.bf16.mxu1 %v3846_v39 }
 0x645   :  { %3046 = vmatpush1.bf16.msra.mxu0 %v3850_v33  ;;  %3078 = vmatpush1.bf16.msra.mxu1 %v3852_v21 }
 0x646   :  { %3080 = vmatprep.subr.bf16.mxu0 %v3729_v29  ;;  %3112 = vmatprep.subr.bf16.mxu1 %v3732_v32 }
 0x6fb   :  { %v1589_v48 = vpop.f32.mrb[8].mxu0  ;;  %v1660_v1 = vpop.f32.mrb[24].mxu1 }
 0x6fc   :  { %v3247_v2 = vadd.f32 %v1589_v48, %v3903_v52  ;;  %v1591_v5 = vpop.f32.mrb[9].mxu0  ;;  %v1662_v7 = vpop.f32.mrb[25].mxu1  ;;  %v3263_v20 = vadd.f32 %v1660_v1, %v3912_v12 }
 0x6fd   :  { %v3248_v10 = vadd.f32 %v1591_v5, %v3905_v53  ;;  %v3264_v18 = vadd.f32 %v1662_v7, %v3909_v9 }
 0x6fe   :  { %v2427_v11 = vmul.f32 -1.442695, %v3247_v2 }
 0x6ff   :  { %v2428_v17 = vmul.f32 -1.442695, %v3248_v10  ;;  %v2429_v19 = vmul.f32 -1.442695, %v3264_v18 }
 0x700   :  { %3377 = vpow2.f32 %v2427_v11 }
 0x701   :  { %3379 = vpow2.f32 %v2428_v17 }
 0x702   :  { %3381 = vpow2.f32 %v2429_v19 }
 0x703   :  { %3383 = vtanh.f32 %v3263_v20 }
 0x70a   :  { %v3378_v26 = vpop.eup %3377 }
 0x70b   :  { %v3380_v27 = vpop.eup %3379  ;;  %v1672_v28 = vadd.f32 1.0, %v3378_v26 }
 0x70c   :  { %v1678_v35 = vadd.f32 1.0, %v3380_v27  ;;  %v3382_v36 = vpop.eup %3381 }
 0x70d   :  { %3385 = vrcp.f32 %v1672_v28  ;;  %v3384_v37 = vpop.eup %3383  ;;  %v1685_v44 = vadd.f32 1.0, %v3382_v36 }
 0x70e   :  { %3387 = vrcp.f32 %v1678_v35 }
 0x70f   :  { %3389 = vrcp.f32 %v1685_v44 }
 0x717   :  { %v3386_v40 = vpop.eup %3385 }
 0x718   :  { %v3388_v43 = vpop.eup %3387  ;;  %v1689_v51 = vmul.f32 %v3386_v40, %v3384_v37 }
 0x719   :  { %v1688_v63 = vmul.f32 %v3388_v43, %v4053_v47  ;;  %v3390_v1 = vpop.eup %3389 }
 0x71b   :  { %v4099_v48 = vadd.f32 %v1689_v51, %v1688_v63 }
 0x71d   :  { %3391 = vtanh.f32 %v4099_v48 }
 0x727   :  { %v3392_v2 = vpop.eup %3391 }
 0x728   :  { %v4102_v5 = vmul.f32 %v3392_v2, %v3390_v1 }
 0x72a   :  { %1767 = vmatmul.mubr.f32.vlgmr.msra.gmra.mrb[10].mxu0 %v4102_v5  ;;  %1838 = vmatmul.mubr.f32.vlgmr.msra.gmra.mrb[26].mxu1 %v4102_v5 }
 0x72b   :  { %3082 = vmatpush1.bf16.msra.mxu0 %v3743_v45  ;;  %3114 = vmatpush1.bf16.msra.mxu1 %v3745_v46 }
 0x72c   :  { %3084 = vmatprep.subr.bf16.mxu0 %v3748_v55  ;;  %3116 = vmatprep.subr.bf16.mxu1 %v3750_v56 }
 0x72d   :  { %1945 = vmatprep.mubr.f32.mxu0 %v3567_v31  ;;  %2016 = vmatprep.mubr.f32.mxu1 %v3567_v31 }
 0x72f   :  { %3086 = vmatpush1.bf16.msra.mxu0 %v3754_v61  ;;  %3118 = vmatpush1.bf16.msra.mxu1 %v3756_v62 }
 0x730   :  { %3088 = vmatprep.subr.bf16.mxu0 %v3765_v6  ;;  %3120 = vmatprep.subr.bf16.mxu1 %v3767_v8 }
 0x733   :  { %3090 = vmatpush1.bf16.msra.mxu0 %v3771_v13  ;;  %3122 = vmatpush1.bf16.msra.mxu1 %v3773_v14 }
 0x734   :  { %3092 = vmatprep.subr.bf16.mxu0 %v3782_v22  ;;  %3124 = vmatprep.subr.bf16.mxu1 %v3784_v23 }
 0x737   :  { %3094 = vmatpush1.bf16.msra.mxu0 %v3788_v30  ;;  %3126 = vmatpush1.bf16.msra.mxu1 %v3790_v34 }
 0x738   :  { %3096 = vmatprep.subr.bf16.mxu0 %v3797_v41  ;;  %3128 = vmatprep.subr.bf16.mxu1 %v3799_v42 }
 0x73b   :  { %3098 = vmatpush1.bf16.msra.mxu0 %v3803_v49  ;;  %3130 = vmatpush1.bf16.msra.mxu1 %v3805_v50 }
 0x73c   :  { %3100 = vmatprep.subr.bf16.mxu0 %v3813_v59  ;;  %3132 = vmatprep.subr.bf16.mxu1 %v3815_v60 }
 0x73f   :  { %3102 = vmatpush1.bf16.msra.mxu0 %v3819_v3  ;;  %3134 = vmatpush1.bf16.msra.mxu1 %v3821_v4 }
 0x740   :  { %3104 = vmatprep.subr.bf16.mxu0 %v3828_v15  ;;  %3136 = vmatprep.subr.bf16.mxu1 %v3830_v16 }
 0x743   :  { %3106 = vmatpush1.bf16.msra.mxu0 %v3834_v24  ;;  %3138 = vmatpush1.bf16.msra.mxu1 %v3836_v25 }
 0x744   :  { %3108 = vmatprep.subr.bf16.mxu0 %v3844_v38  ;;  %3140 = vmatprep.subr.bf16.mxu1 %v3846_v39 }
 0x747   :  { %3110 = vmatpush1.bf16.msra.mxu0 %v3850_v33  ;;  %3142 = vmatpush1.bf16.msra.mxu1 %v3852_v21 }
 0x748   :  { %3144 = vmatprep.subr.bf16.mxu0 %v3729_v29  ;;  %3176 = vmatprep.subr.bf16.mxu1 %v3732_v32 }
 0x7fd   :  { %v1768_v47 = vpop.f32.mrb[10].mxu0  ;;  %v1839_v7 = vpop.f32.mrb[26].mxu1 }
 0x7fe   :  { %v3249_v10 = vadd.f32 %v1768_v47, %v3903_v52  ;;  %v1770_v11 = vpop.f32.mrb[11].mxu0  ;;  %v1841_v17 = vpop.f32.mrb[27].mxu1  ;;  %v3265_v28 = vadd.f32 %v1839_v7, %v3912_v12 }
 0x7ff   :  { %v3250_v18 = vadd.f32 %v1770_v11, %v3905_v53  ;;  %v3266_v26 = vadd.f32 %v1841_v17, %v3909_v9  ;;  %v2246_v11 = vld [vmem:[#allocation12 + $0x20] sm:$0xff]  ;;  %v2247_v17 = vld [vmem:[#allocation12 + $0x28] sm:$0xff] }
 0x800   :  { %v2430_v19 = vmul.f32 -1.442695, %v3249_v10 }
 0x801   :  { %v2431_v20 = vmul.f32 -1.442695, %v3250_v18  ;;  %v2432_v27 = vmul.f32 -1.442695, %v3266_v26  ;;  %v3215_v18 = vpack.c.bf16 %v2247_v17, %v2246_v11 }
 0x802   :  { %3393 = vpow2.f32 %v2430_v19  ;;  %v2248_v19 = vld [vmem:[#allocation12 + $0x30] sm:$0xff] }
 0x803   :  { %3395 = vpow2.f32 %v2431_v20  ;;  %v2249_v20 = vld [vmem:[#allocation12 + $0x38] sm:$0xff] }
 0x804   :  { %3397 = vpow2.f32 %v2432_v27  ;;  %v3219_v26 = vpack.c.bf16 %v2249_v20, %v2248_v19  ;;  %v2250_v27 = vld [vmem:[#allocation12 + $0x40] sm:$0xff] }
 0x805   :  { %3399 = vtanh.f32 %v3265_v28  ;;  %v2251_v28 = vld [vmem:[#allocation12 + $0x48] sm:$0xff] }
 0x80c   :  { %v3394_v29 = vpop.eup %3393 }
 0x80d   :  { %v3396_v35 = vpop.eup %3395  ;;  %v1851_v32 = vadd.f32 1.0, %v3394_v29  ;;  %v3223_v29 = vpack.c.bf16 %v2251_v28, %v2250_v27 }
 0x80e   :  { %v1857_v36 = vadd.f32 1.0, %v3396_v35  ;;  %v3398_v37 = vpop.eup %3397  ;;  %v2252_v35 = vld [vmem:[#allocation12 + $0x50] sm:$0xff] }
 0x80f   :  { %3401 = vrcp.f32 %v1851_v32  ;;  %v3400_v40 = vpop.eup %3399  ;;  %v1864_v63 = vadd.f32 1.0, %v3398_v37  ;;  %v2253_v32 = vld [vmem:[#allocation12 + $0x58] sm:$0xff]  ;;  %v2254_v37 = vld [vmem:[#allocation12 + $0x60] sm:$0xff] }
 0x810   :  { %3403 = vrcp.f32 %v1857_v36  ;;  %v3227_v36 = vpack.c.bf16 %v2253_v32, %v2252_v35 }
 0x811   :  { %3405 = vrcp.f32 %v1864_v63 }
 0x819   :  { %v3402_v43 = vpop.eup %3401 }
 0x81a   :  { %v3404_v51 = vpop.eup %3403  ;;  %v1868_v44 = vmul.f32 %v3402_v43, %v3400_v40  ;;  %v2255_v40 = vld [vmem:[#allocation12 + $0x68] sm:$0xff]  ;;  %v2256_v43 = vld [vmem:[#allocation12 + $0x70] sm:$0xff] }
 0x81b   :  { %v1867_v1 = vmul.f32 %v3404_v51, %v4099_v48  ;;  %v3406_v47 = vpop.eup %3405  ;;  %v2257_v51 = vld [vmem:[#allocation12 + $0x78] sm:$0xff] }
 0x81d   :  { %v4145_v2 = vadd.f32 %v1868_v44, %v1867_v1  ;;  %v3235_v44 = vpack.c.bf16 %v2257_v51, %v2256_v43 }
 0x81f   :  { %3407 = vtanh.f32 %v4145_v2 }
 0x829   :  { %v3408_v7 = vpop.eup %3407 }
 0x82a   :  { %v4148_v10 = vmul.f32 %v3408_v7, %v3406_v47 }
 0x82c   :  { %1946 = vmatmul.mubr.f32.vlgmr.msra.gmra.mrb[12].mxu0 %v4148_v10  ;;  %2017 = vmatmul.mubr.f32.vlgmr.msra.gmra.mrb[28].mxu1 %v4148_v10 }
 0x82d   :  { %3146 = vmatpush1.bf16.msra.mxu0 %v3743_v45  ;;  %3178 = vmatpush1.bf16.msra.mxu1 %v3745_v46  ;;  %v2243_v45 = vld [vmem:[#allocation12 + $0x8] sm:$0xff] }
 0x82e   :  { %3148 = vmatprep.subr.bf16.mxu0 %v3748_v55  ;;  %3180 = vmatprep.subr.bf16.mxu1 %v3750_v56 }
 0x82f   :  { %2124 = vmatprep.mubr.f32.mxu0 %v3567_v31  ;;  %2195 = vmatprep.mubr.f32.mxu1 %v3567_v31  ;;  %v2242_v31 = vld [vmem:[#allocation12] sm:$0xff] }
 0x830   :  { %v3207_v46 = vpack.c.bf16 %v2243_v45, %v2242_v31 }
 0x831   :  { %3150 = vmatpush1.bf16.msra.mxu0 %v3754_v61  ;;  %3182 = vmatpush1.bf16.msra.mxu1 %v3756_v62 }
 0x832   :  { %3152 = vmatprep.subr.bf16.mxu0 %v3765_v6  ;;  %3184 = vmatprep.subr.bf16.mxu1 %v3767_v8 }
 0x835   :  { %3154 = vmatpush1.bf16.msra.mxu0 %v3771_v13  ;;  %3186 = vmatpush1.bf16.msra.mxu1 %v3773_v14 }
 0x836   :  { %3156 = vmatprep.subr.bf16.mxu0 %v3782_v22  ;;  %3188 = vmatprep.subr.bf16.mxu1 %v3784_v23 }
 0x839   :  { %3158 = vmatpush1.bf16.msra.mxu0 %v3788_v30  ;;  %3190 = vmatpush1.bf16.msra.mxu1 %v3790_v34 }
 0x83a   :  { %3160 = vmatprep.subr.bf16.mxu0 %v3797_v41  ;;  %3192 = vmatprep.subr.bf16.mxu1 %v3799_v42 }
 0x83d   :  { %3162 = vmatpush1.bf16.msra.mxu0 %v3803_v49  ;;  %3194 = vmatpush1.bf16.msra.mxu1 %v3805_v50 }
 0x83e   :  { %3164 = vmatprep.subr.bf16.mxu0 %v3813_v59  ;;  %3196 = vmatprep.subr.bf16.mxu1 %v3815_v60 }
 0x841   :  { %3166 = vmatpush1.bf16.msra.mxu0 %v3819_v3  ;;  %3198 = vmatpush1.bf16.msra.mxu1 %v3821_v4 }
 0x842   :  { %3168 = vmatprep.subr.bf16.mxu0 %v3828_v15  ;;  %3200 = vmatprep.subr.bf16.mxu1 %v3830_v16 }
 0x845   :  { %3170 = vmatpush1.bf16.msra.mxu0 %v3834_v24  ;;  %3202 = vmatpush1.bf16.msra.mxu1 %v3836_v25  ;;  %v2244_v25 = vld [vmem:[#allocation12 + $0x10] sm:$0xff] }
 0x846   :  { %3172 = vmatprep.subr.bf16.mxu0 %v3844_v38  ;;  %3204 = vmatprep.subr.bf16.mxu1 %v3846_v39  ;;  %v2245_v38 = vld [vmem:[#allocation12 + $0x18] sm:$0xff] }
 0x847   :  { %v3211_v48 = vpack.c.bf16 %v2245_v38, %v2244_v25 }
 0x849   :  { %3174 = vmatpush1.bf16.msra.mxu0 %v3850_v33  ;;  %3206 = vmatpush1.bf16.msra.mxu1 %v3852_v21 }
 0x84a   :  { %3208 = vmatprep.subr.bf16.mxu0 %v3207_v46 }
 0x8ff   :  { %v1947_v55 = vpop.f32.mrb[12].mxu0  ;;  %v2018_v56 = vpop.f32.mrb[28].mxu1 }
 0x900   :  { %v3251_v61 = vadd.f32 %v1947_v55, %v3903_v52  ;;  %v1949_v62 = vpop.f32.mrb[13].mxu0  ;;  %v2020_v6 = vpop.f32.mrb[29].mxu1  ;;  %v3267_v30 = vadd.f32 %v2018_v56, %v3912_v12 }
 0x901   :  { %v3252_v8 = vadd.f32 %v1949_v62, %v3905_v53  ;;  %v3268_v22 = vadd.f32 %v2020_v6, %v3909_v9 }
 0x902   :  { %v2433_v13 = vmul.f32 -1.442695, %v3251_v61 }
 0x903   :  { %v2434_v14 = vmul.f32 -1.442695, %v3252_v8  ;;  %v2435_v23 = vmul.f32 -1.442695, %v3268_v22 }
 0x904   :  { %3409 = vpow2.f32 %v2433_v13 }
 0x905   :  { %3411 = vpow2.f32 %v2434_v14 }
 0x906   :  { %3413 = vpow2.f32 %v2435_v23 }
 0x907   :  { %3415 = vtanh.f32 %v3267_v30 }
 0x90e   :  { %v3410_v34 = vpop.eup %3409 }
 0x90f   :  { %v3412_v41 = vpop.eup %3411  ;;  %v2030_v42 = vadd.f32 1.0, %v3410_v34 }
 0x910   :  { %v2036_v49 = vadd.f32 1.0, %v3412_v41  ;;  %v3414_v50 = vpop.eup %3413 }
 0x911   :  { %3417 = vrcp.f32 %v2030_v42  ;;  %v3416_v59 = vpop.eup %3415  ;;  %v2043_v15 = vadd.f32 1.0, %v3414_v50 }
 0x912   :  { %3419 = vrcp.f32 %v2036_v49 }
 0x913   :  { %3421 = vrcp.f32 %v2043_v15 }
 0x91b   :  { %v3418_v60 = vpop.eup %3417 }
 0x91c   :  { %v3420_v3 = vpop.eup %3419  ;;  %v2047_v4 = vmul.f32 %v3418_v60, %v3416_v59 }
 0x91d   :  { %v2046_v16 = vmul.f32 %v3420_v3, %v4145_v2  ;;  %v3422_v39 = vpop.eup %3421 }
 0x91f   :  { %v4189_v24 = vadd.f32 %v2047_v4, %v2046_v16 }
 0x921   :  { %3423 = vtanh.f32 %v4189_v24 }
 0x92b   :  { %v3424_v33 = vpop.eup %3423 }
 0x92c   :  { %v2050_v21 = vmul.f32 %v3424_v33, %v3422_v39 }
 0x92e   :  { %2125 = vmatmul.mubr.f32.vlgmr.msra.gmra.mrb[14].mxu0 %v2050_v21  ;;  %2196 = vmatmul.mubr.f32.vlgmr.msra.gmra.mrb[30].mxu1 %v2050_v21 }
 0x92f   :  { %3210 = vmatpush3.bf16.msra.mxu0 %v3207_v46  ;;  %2587 = vmatprep.mubr.f32.mxu0 %v3918_v54  ;;  %v3231_v54 = vpack.c.bf16 %v2255_v40, %v2254_v37 }
 0x930   :  { %3212 = vmatprep.subr.bf16.mxu0 %v3211_v48 }
 0x933   :  { %3214 = vmatpush3.bf16.msra.mxu0 %v3211_v48 }
 0x934   :  { %3216 = vmatprep.subr.bf16.mxu0 %v3215_v18 }
 0x937   :  { %3218 = vmatpush3.bf16.msra.mxu0 %v3215_v18 }
 0x938   :  { %3220 = vmatprep.subr.bf16.mxu0 %v3219_v26 }
 0x93b   :  { %3222 = vmatpush3.bf16.msra.mxu0 %v3219_v26 }
 0x93c   :  { %3224 = vmatprep.subr.bf16.mxu0 %v3223_v29 }
 0x93f   :  { %3226 = vmatpush3.bf16.msra.mxu0 %v3223_v29 }
 0x940   :  { %3228 = vmatprep.subr.bf16.mxu0 %v3227_v36 }
 0x943   :  { %3230 = vmatpush3.bf16.msra.mxu0 %v3227_v36 }
 0x944   :  { %3232 = vmatprep.subr.bf16.mxu0 %v3231_v54 }
 0x947   :  { %3234 = vmatpush3.bf16.msra.mxu0 %v3231_v54 }
 0x948   :  { %3236 = vmatprep.subr.bf16.mxu0 %v3235_v44 }
 0x94b   :  { %3238 = vmatpush3.bf16.msra.mxu0 %v3235_v44 }
 0x94e   :  { %2588 = vmatmul.mubr.f32.vlgmr.msra.gmra.mrb[16].mxu0 %v3964_v57 }
 0x94f   :  { %2590 = vmatprep.mubr.f32.mxu0 %v4010_v58 }
 0x952   :  { %2591 = vmatmul.mubr.f32.gmra.mrb[18].mxu0 %v4056_v0 }
 0x953   :  { %2593 = vmatprep.mubr.f32.mxu0 %v4102_v5 }
 0x956   :  { %2594 = vmatmul.mubr.f32.gmra.mrb[20].mxu0 %v4148_v10 }
 0x957   :  { %2596 = vmatprep.mubr.f32.mxu0 %v2050_v21 }
 0xa01   :  { %v2126_v63 = vpop.f32.mrb[14].mxu0  ;;  %v2197_v1 = vpop.f32.mrb[30].mxu1 }
 0xa02   :  { %v3253_v2 = vadd.f32 %v2126_v63, %v3903_v52  ;;  %v2128_v47 = vpop.f32.mrb[15].mxu0  ;;  %v2199_v7 = vpop.f32.mrb[31].mxu1  ;;  %v3269_v0 = vadd.f32 %v2197_v1, %v3912_v12 }
 0xa03   :  { %v3254_v31 = vadd.f32 %v2128_v47, %v3905_v53  ;;  %v3270_v57 = vadd.f32 %v2199_v7, %v3909_v9  ;;  %v2439_v9 = vld [vmem:[%s4230_s9] ss:$0 sm:$0xff]  ;;  %s3568_s9 = smov [#allocation14]  }
 0xa04   :  { %v2436_v45 = vmul.f32 -1.442695, %v3253_v2  ;;  %s2383_s23 = sshll.u32 %s3568_s9, 4  ;;  %s2384_s23 = int_to_ptr.vmem [resolvable:$true] %s2383_s23 }
 0xa05   :  { %v2437_v46 = vmul.f32 -1.442695, %v3254_v31  ;;  %v2438_v58 = vmul.f32 -1.442695, %v3270_v57  ;;  %s3529_s24 = scalar_lea.vmem %s2384_s23, 1024  ;;  %p3534_p5 = scmp.lt.s32.totalorder %s2384_s23, %s2384_s23 }
 0xa06   :  { %3425 = vpow2.f32 %v2436_v45  ;;  %p3530_p4 = scmp.ne.s32.totalorder %s2384_s23, %s3529_s24  ;;  %p3535_p6 = scmp.lt.s32.totalorder %s3529_s24, %s3529_s24 }
 0xa07   :  { %3427 = vpow2.f32 %v2437_v46 }
 0xa08   :  { %3429 = vpow2.f32 %v2438_v58  ;;  %p3536_p7 = por %p3535_p6, %p3534_p5 }
 0xa09   :  { %3431 = vtanh.f32 %v3269_v0 }
 0xa0a   :  { %p3537_p8 = pnand %p3536_p7, %p3530_p4 }
 0xa10   :  { %v3426_v5 = vpop.eup %3425 }
 0xa11   :  { %v3428_v10 = vpop.eup %3427  ;;  %v2209_v55 = vadd.f32 1.0, %v3426_v5 }
 0xa12   :  { %v2215_v56 = vadd.f32 1.0, %v3428_v10  ;;  %v3430_v52 = vpop.eup %3429 }
 0xa13   :  { %3433 = vrcp.f32 %v2209_v55  ;;  %v3432_v61 = vpop.eup %3431  ;;  %v2222_v8 = vadd.f32 1.0, %v3430_v52 }
 0xa14   :  { %3435 = vrcp.f32 %v2215_v56 }
 0xa15   :  { %3437 = vrcp.f32 %v2222_v8 }
 0xa1d   :  { %v3434_v53 = vpop.eup %3433 }
 0xa1e   :  { %v3436_v62 = vpop.eup %3435  ;;  %v2226_v6 = vmul.f32 %v3434_v53, %v3432_v61 }
 0xa1f   :  { %v2225_v13 = vmul.f32 %v3436_v62, %v4189_v24  ;;  %v3438_v4 = vpop.eup %3437 }
 0xa21   :  { %v2589_v12 = vpop.f32.mrb[16].mxu0  ;;  %v2227_v14 = vadd.f32 %v2226_v6, %v2225_v13 }
 0xa22   :  { %v2337_v22 = vadd.f32 %v2589_v12, %v2439_v9  ;;  %v2331_v23 = vpop.f32.mrb[17].mxu0 }
 0xa23   :  { %v2332_v30 = vadd.f32 %v2439_v9, %v2331_v23  ;;  %3439 = vtanh.f32 %v2227_v14 }
 0xa24   :  { %2371 = vst [vmem:[#allocation14 + $0x8] sm:$0xff] %v2337_v22 }
 0xa25   :  { %2370 = vst [vmem:[#allocation14] sm:$0xff] %v2332_v30  ;;  %v2592_v34 = vpop.f32.mrb[18].mxu0 }
 0xa26   :  { %v2347_v41 = vadd.f32 %v2592_v34, %v2439_v9  ;;  %v2341_v42 = vpop.f32.mrb[19].mxu0 }
 0xa27   :  { %v2342_v49 = vadd.f32 %v2439_v9, %v2341_v42 }
 0xa28   :  { %2373 = vst [vmem:[#allocation14 + $0x18] sm:$0xff] %v2347_v41 }
 0xa29   :  { %2372 = vst [vmem:[#allocation14 + $0x10] sm:$0xff] %v2342_v49  ;;  %v2595_v50 = vpop.f32.mrb[20].mxu0 }
 0xa2a   :  { %v2357_v59 = vadd.f32 %v2595_v50, %v2439_v9  ;;  %v2351_v60 = vpop.f32.mrb[21].mxu0 }
 0xa2b   :  { %v2352_v3 = vadd.f32 %v2439_v9, %v2351_v60 }
 0xa2c   :  { %2375 = vst [vmem:[#allocation14 + $0x28] sm:$0xff] %v2357_v59 }
 0xa2d   :  { %v3440_v15 = vpop.eup %3439  ;;  %2374 = vst [vmem:[#allocation14 + $0x20] sm:$0xff] %v2352_v3 }
 0xa2e   :  { %v2229_v16 = vmul.f32 %v3440_v15, %v3438_v4 }
 0xa30   :  { %2597 = vmatmul.mubr.f32.gmra.mrb[22].mxu0 %v2229_v16 }
 0xb03   :  { %v2598_v24 = vpop.f32.mrb[22].mxu0 }
 0xb04   :  { %v2367_v25 = vadd.f32 %v2598_v24, %v2439_v9  ;;  %v2361_v38 = vpop.f32.mrb[23].mxu0 }
 0xb05   :  { %v2362_v39 = vadd.f32 %v2439_v9, %v2361_v38 }
 0xb06   :  { %2377 = vst [vmem:[#allocation14 + $0x38] sm:$0xff] %v2367_v25 }
 0xb07   :  { %2376 = vst [vmem:[#allocation14 + $0x30] sm:$0xff] %v2362_v39 }
 0xb08   :  { %3540 = shalt.err (!%p3537_p8)
}
 0xb09   :  { %s3541_s30 = scalar_lea.hbm %s4231_s10, 1024 }
 0xb0a   :  { %p3542_p9 = scmp.ne.s32.totalorder %s4231_s10, %s3541_s30  ;;  %p3545_p10 = scmp.lt.u32.totalorder %s3541_s30, %s4231_s10 }
 0xb0c   :  { %p3547_p11 = pnand %p3545_p10, %p3542_p9 }
 0xb0e   :  { %3550 = shalt.err (!%p3547_p11)
}
 0xb0f   :  { %2389 = dma.vmem_to_hbm [thread:$0]  %s2384_s23, 1024, %s4231_s10, [#allocation8], %s3563_s5, %s3563_s5, %s3564_s14  }
 0xb10   :  { %3557 = dma.done.wait [#allocation8], 1024  }
 0xb11   :  { %3558 = vsyncadd [#allocation8], 4294966272 }
 0xb12   :  { %2393 = vsyncpa [#allocation7], 1 }
 0xb13   :  { %2394 = vsyncpa [#allocation10], 1 }
 0xb14   :  { %2395 = vsyncpa [#allocation13], 1 }
 0xb15   :  { %2396 = vsyncpa [#allocation8], 1 }

</bundles_post_ra>
